<compile_context>
chip_gen: v7x
topology: tpu7x:2x2x1
jax: 0.10.0
libtpu: 0.0.40
codegen_flags: <defaults>
</compile_context>

<pallas_src>
import jax
import jax.numpy as jnp
import numpy as np
from jax import lax
from jax.experimental import pallas as pl
from jax.experimental.pallas import tpu as pltpu

# ----------------------------- configuration --------------------------------
B = 2
C_IN, H, W = 1, 16, 16
C_OUT = 8
KSIZE = 5
N1 = 64                      # hidden units in the k-sparse linear layer
K_LIN = 8                    # k for the linear KWinners
C_K = 32                     # k for the CNN KWinners2d
K_INFERENCE_FACTOR = 1.5
WEIGHT_SPARSITY = 0.3        # fraction of nonzero weights in the sparse linear
OUT_SIZE = 10

H_CONV = H - KSIZE + 1                      # 12
W_CONV = W - KSIZE + 1                      # 12
H_POOL, W_POOL = H_CONV // 2, W_CONV // 2   # 6, 6
POOL_FEATS = H_POOL * W_POOL                # 36
N_FLAT = C_OUT * POOL_FEATS                 # 288
FAN_C = C_IN * KSIZE * KSIZE                # 25
PATCH_LEN = H_CONV * W                      # 192  (H_CONV rows of the flat img)
XFLAT_LEN = C_IN * H * W + W                # 272  (zero tail so every tap slice
                                            #       stays in bounds)

K_CNN_INF = min(int(round(C_K * K_INFERENCE_FACTOR)), N_FLAT)   # 48
K_LIN_INF = min(int(round(K_LIN * K_INFERENCE_FACTOR)), N1)     # 12


# ------------------ pooling / flatten one-hot selection matrices ------------
def _make_pool_selectors():
  """sel[s, 16*(2p+di)+(2q+dj), 6p+q] = 1 for s = 2*di+dj.

  conv_wide[c, 16*i + j] holds conv[c, i, j]; multiplying by sel[s] extracts
  the four 2x2-window candidates, already flattened in torch (p, q) order.
  """
  sel = np.zeros((4, PATCH_LEN, POOL_FEATS), np.float32)
  for di in range(2):
    for dj in range(2):
      s = 2 * di + dj
      for p in range(H_POOL):
        for q in range(W_POOL):
          sel[s, (2 * p + di) * W + (2 * q + dj), p * W_POOL + q] = 1.0
  return jnp.asarray(sel)


_SEL = _make_pool_selectors()


# ------------------------------ fused Pallas kernel --------------------------
def _sparse_net_kernel(x_ref, wc_ref, bc_ref, sel_ref, w1_ref, b1_ref,
                       w2_ref, b2_ref, out_ref,
                       xflat, shifts, pooled_sc, frow):
  f32 = jnp.float32

  # ---- 0. flatten the NCHW input to one lane-major row per sample ----------
  xflat[...] = jnp.zeros((B, XFLAT_LEN), f32)
  for ci in range(C_IN):
    for r in range(H):
      off = (ci * H + r) * W
      xflat[:, off:off + W] = x_ref[:, ci, r, :]

  # ---- shared helpers (traced once, reused for both samples) ---------------
  def make_eye(n):
    ii = lax.broadcasted_iota(jnp.int32, (n, n), 0)
    jj = lax.broadcasted_iota(jnp.int32, (n, n), 1)
    return jnp.where(ii == jj, 1.0, 0.0).astype(f32)

  eye_flat = make_eye(N_FLAT)
  eye_hid = make_eye(N1)
  ones_flat = jnp.ones((1, N_FLAT), f32)
  ones_hid = jnp.ones((1, N1), f32)

  def kwinners_row(vrow, eye_n, ones_n, k):
    """Keep entries of vrow (1, N) with < k strictly-greater competitors.

    Equivalent to 'value >= k-th largest' (same tie behavior as the lax.top_k
    threshold reference).  Fully parallel: one pairwise compare on the VPU and
    one (1,N)@(N,N) count matmul on the MXU.
    """
    # exact row -> column copy without a transpose (one nonzero per row-sum)
    vcol = jnp.sum(eye_n * vrow, axis=1, keepdims=True)           # (N, 1)
    greater = jnp.where(vcol > vrow, 1.0, 0.0).astype(f32)        # (N, N)
    cnt = jnp.dot(ones_n, greater, preferred_element_type=f32)    # (1, N)
    return jnp.where(cnt < float(k), vrow, 0.0)

  for b in range(B):
    # ---- 1. im2col: row t of `shifts` = 192-wide window starting at tap t --
    for ci in range(C_IN):
      for kh in range(KSIZE):
        for kw in range(KSIZE):
          t = (ci * KSIZE + kh) * KSIZE + kw
          off = ci * H * W + kh * W + kw
          shifts[t:t + 1, :] = xflat[b:b + 1, off:off + PATCH_LEN]

    # ---- 2. Conv2d (all output channels at once) on the MXU ----------------
    conv = jnp.dot(wc_ref[...], shifts[...],
                   preferred_element_type=f32) + bc_ref[...]       # (C_OUT, 192)

    # ---- 3. MaxPool2d(2) + NCHW flatten via 4 one-hot selection matmuls ----
    cand0 = jnp.dot(conv, sel_ref[0], preferred_element_type=f32)  # (C_OUT, 36)
    cand1 = jnp.dot(conv, sel_ref[1], preferred_element_type=f32)
    cand2 = jnp.dot(conv, sel_ref[2], preferred_element_type=f32)
    cand3 = jnp.dot(conv, sel_ref[3], preferred_element_type=f32)
    pooled_sc[...] = jnp.maximum(jnp.maximum(cand0, cand1),
                                 jnp.maximum(cand2, cand3))
    for c in range(C_OUT):
      frow[:, c * POOL_FEATS:(c + 1) * POOL_FEATS] = pooled_sc[c:c + 1, :]
    vrow = frow[...]                                               # (1, 288)

    # ---- 4. KWinners2d -> sparse Linear -> KWinners -> fc ------------------
    kw1 = kwinners_row(vrow, eye_flat, ones_flat, K_CNN_INF)       # (1, 288)
    hrow = jnp.dot(kw1, w1_ref[...],
                   preferred_element_type=f32) + b1_ref[...]       # (1, 64)
    kw2 = kwinners_row(hrow, eye_hid, ones_hid, K_LIN_INF)         # (1, 64)
    out_ref[b:b + 1, :] = (jnp.dot(kw2, w2_ref[...],
                                   preferred_element_type=f32)
                           + b2_ref[...])                          # (1, 10)


@jax.jit
def sparse_net_forward(x, params):
  wc2d, bc, w1, b1, w2, b2 = params
  return pl.pallas_call(
      _sparse_net_kernel,
      out_shape=jax.ShapeDtypeStruct((B, OUT_SIZE), jnp.float32),
      grid=(1,),
      in_specs=[
          pl.BlockSpec((B, C_IN, H, W), lambda i: (0, 0, 0, 0)),
          pl.BlockSpec((C_OUT, FAN_C), lambda i: (0, 0)),
          pl.BlockSpec((C_OUT, 1), lambda i: (0, 0)),
          pl.BlockSpec((4, PATCH_LEN, POOL_FEATS), lambda i: (0, 0, 0)),
          pl.BlockSpec((N_FLAT, N1), lambda i: (0, 0)),
          pl.BlockSpec((1, N1), lambda i: (0, 0)),
          pl.BlockSpec((N1, OUT_SIZE), lambda i: (0, 0)),
          pl.BlockSpec((1, OUT_SIZE), lambda i: (0, 0)),
      ],
      out_specs=pl.BlockSpec((B, OUT_SIZE), lambda i: (0, 0)),
      scratch_shapes=[
          pltpu.VMEM((B, XFLAT_LEN), jnp.float32),       # flattened padded input
          pltpu.VMEM((FAN_C, PATCH_LEN), jnp.float32),   # im2col shifted windows
          pltpu.VMEM((C_OUT, POOL_FEATS), jnp.float32),  # pooled per-channel
          pltpu.VMEM((1, N_FLAT), jnp.float32),          # NCHW-flattened features
      ],
      compiler_params=pltpu.CompilerParams(
          dimension_semantics=("arbitrary",)),
  )(x, wc2d, bc, _SEL, w1, b1, w2, b2)


# ----------------------------- parameter setup -------------------------------
def init_params(key):
  kc, kcb, k1, k1b, k2, k2b, km = jax.random.split(key, 7)

  def u(k, shape, fan):
    bound = 1.0 / np.sqrt(fan)
    return jax.random.uniform(k, shape, jnp.float32, -bound, bound)

  wc = u(kc, (C_OUT, C_IN, KSIZE, KSIZE), FAN_C)     # torch Conv2d weight
  bc = u(kcb, (C_OUT,), FAN_C)
  w1 = u(k1, (N1, N_FLAT), N_FLAT)                   # torch Linear weight
  b1 = u(k1b, (N1,), N_FLAT)
  w2 = u(k2, (OUT_SIZE, N1), N1)
  b2 = u(k2b, (OUT_SIZE,), N1)

  # SparseWeights: per output unit, zero round((1-sparsity)*inputSize) weights.
  num_zeros = int(round((1.0 - WEIGHT_SPARSITY) * N_FLAT))
  scores = jax.random.uniform(km, (N1, N_FLAT))
  ranks = jnp.argsort(jnp.argsort(scores, axis=1), axis=1)
  mask = (ranks >= num_zeros).astype(jnp.float32)
  w1 = w1 * mask

  # Kernel-friendly layouts.
  return (wc.reshape(C_OUT, FAN_C),          # (C_OUT, FAN_C), torch (ci,kh,kw)
          bc.reshape(C_OUT, 1),
          w1.T,                               # (N_FLAT, N1)
          b1.reshape(1, N1),
          w2.T,                               # (N1, OUT_SIZE)
          b2.reshape(1, OUT_SIZE))


# ------------------------------ pure-JAX reference ---------------------------
def reference_forward(x, params):
  wc2d, bc, w1, b1, w2, b2 = params
  patches = []
  for ci in range(C_IN):
    for kh in range(KSIZE):
      for kw in range(KSIZE):
        patches.append(x[:, ci, kh:kh + H_CONV, kw:kw + W_CONV])
  cols = jnp.stack(patches, axis=-1).reshape(B * H_CONV * W_CONV, FAN_C)
  conv = jnp.dot(cols, wc2d.T, preferred_element_type=jnp.float32) + bc[:, 0]
  c = conv.reshape(B, H_CONV, W_CONV, C_OUT)
  wins = [c[:, di::2, dj::2, :] for di in range(2) for dj in range(2)]
  pooled = jnp.maximum(jnp.maximum(wins[0], wins[1]),
                       jnp.maximum(wins[2], wins[3]))
  flat = jnp.transpose(pooled, (0, 3, 1, 2)).reshape(B, N_FLAT)  # NCHW flatten

  def kwin(v, k):
    thr = lax.top_k(v, k)[0][:, -1:]
    return jnp.where(v >= thr, v, 0.0)

  h = jnp.dot(kwin(flat, K_CNN_INF), w1,
              preferred_element_type=jnp.float32) + b1
  return jnp.dot(kwin(h, K_LIN_INF), w2,
                 preferred_element_type=jnp.float32) + b2


# ----------------------------------- main ------------------------------------
if __name__ == "__main__":
  x = jax.random.normal(jax.random.PRNGKey(0), (B, C_IN, H, W), jnp.float32)
  params = init_params(jax.random.PRNGKey(42))

  out = sparse_net_forward(x, params)
  out = jax.block_until_ready(out)

  assert out.shape == (B, OUT_SIZE) and out.dtype == jnp.float32
  ref = reference_forward(x, params)
  np.testing.assert_allclose(np.asarray(out), np.asarray(ref),
                             rtol=2e-2, atol=2e-2)
  print("KERNEL_OK")
</pallas_src>

<mosaic_0001>
module attributes {stable_mosaic.version = 11 : i64} {
  func.func @_sparse_net_kernel(%arg0: i32, %arg1: memref<2x1x16x16xf32, #tpu.memory_space<vmem>>, %arg2: memref<8x25xf32, #tpu.memory_space<vmem>>, %arg3: memref<8x1xf32, #tpu.memory_space<vmem>>, %arg4: memref<4x192x36xf32, #tpu.memory_space<vmem>>, %arg5: memref<288x64xf32, #tpu.memory_space<vmem>>, %arg6: memref<1x64xf32, #tpu.memory_space<vmem>>, %arg7: memref<64x10xf32, #tpu.memory_space<vmem>>, %arg8: memref<1x10xf32, #tpu.memory_space<vmem>>, %arg9: memref<2x10xf32, #tpu.memory_space<vmem>>, %arg10: memref<2x272xf32, #tpu.memory_space<vmem>>, %arg11: memref<25x192xf32, #tpu.memory_space<vmem>>, %arg12: memref<8x36xf32, #tpu.memory_space<vmem>>, %arg13: memref<1x288xf32, #tpu.memory_space<vmem>>) attributes {dimension_semantics = [#tpu.dimension_semantics<arbitrary>], iteration_bounds = array<i64: 1>, scalar_prefetch = 0 : i64, scratch_operands = 4 : i64, tpu.core_type = #tpu.core_type<tc>, window_params = [{pipeline_mode = #tpu.pipeline_mode<synchronous>, transform_indices = @transform_0, window_bounds = array<i64: 2, 1, 16, 16>}, {pipeline_mode = #tpu.pipeline_mode<synchronous>, transform_indices = @transform_1, window_bounds = array<i64: 8, 25>}, {pipeline_mode = #tpu.pipeline_mode<synchronous>, transform_indices = @transform_2, window_bounds = array<i64: 8, 1>}, {pipeline_mode = #tpu.pipeline_mode<synchronous>, transform_indices = @transform_3, window_bounds = array<i64: 4, 192, 36>}, {pipeline_mode = #tpu.pipeline_mode<synchronous>, transform_indices = @transform_4, window_bounds = array<i64: 288, 64>}, {pipeline_mode = #tpu.pipeline_mode<synchronous>, transform_indices = @transform_5, window_bounds = array<i64: 1, 64>}, {pipeline_mode = #tpu.pipeline_mode<synchronous>, transform_indices = @transform_6, window_bounds = array<i64: 64, 10>}, {pipeline_mode = #tpu.pipeline_mode<synchronous>, transform_indices = @transform_7, window_bounds = array<i64: 1, 10>}, {pipeline_mode = #tpu.pipeline_mode<synchronous>, transform_indices = @transform_8, window_bounds = array<i64: 2, 10>}]} {
    %cst = arith.constant 0.000000e+00 : f32
    %0 = vector.broadcast %cst : f32 to vector<2x272xf32>
    %c0 = arith.constant 0 : index
    %c0_0 = arith.constant 0 : index
    %1 = vector.load %arg10[%c0, %c0_0] : memref<2x272xf32, #tpu.memory_space<vmem>>, vector<2x272xf32>
    tpu.vector_store %arg10[%c0, %c0_0], %0 {strides = array<i32>} : memref<2x272xf32, #tpu.memory_space<vmem>>, vector<2x272xf32>,
    %c0_1 = arith.constant 0 : index
    %c0_2 = arith.constant 0 : index
    %c0_3 = arith.constant 0 : index
    %c0_4 = arith.constant 0 : index
    %2 = vector.load %arg1[%c0_1, %c0_2, %c0_3, %c0_4] : memref<2x1x16x16xf32, #tpu.memory_space<vmem>>, vector<2x1x1x16xf32>
    %3 = vector.shape_cast %2 : vector<2x1x1x16xf32> to vector<2x16xf32>
    %c0_5 = arith.constant 0 : index
    %c0_6 = arith.constant 0 : index
    %4 = vector.load %arg10[%c0_5, %c0_6] : memref<2x272xf32, #tpu.memory_space<vmem>>, vector<2x16xf32>
    tpu.vector_store %arg10[%c0_5, %c0_6], %3 {strides = array<i32>} : memref<2x272xf32, #tpu.memory_space<vmem>>, vector<2x16xf32>,
    %c0_7 = arith.constant 0 : index
    %c0_8 = arith.constant 0 : index
    %c1 = arith.constant 1 : index
    %c0_9 = arith.constant 0 : index
    %5 = vector.load %arg1[%c0_7, %c0_8, %c1, %c0_9] : memref<2x1x16x16xf32, #tpu.memory_space<vmem>>, vector<2x1x1x16xf32>
    %6 = vector.shape_cast %5 : vector<2x1x1x16xf32> to vector<2x16xf32>
    %c0_10 = arith.constant 0 : index
    %c16 = arith.constant 16 : index
    %7 = vector.load %arg10[%c0_10, %c16] : memref<2x272xf32, #tpu.memory_space<vmem>>, vector<2x16xf32>
    tpu.vector_store %arg10[%c0_10, %c16], %6 {strides = array<i32>} : memref<2x272xf32, #tpu.memory_space<vmem>>, vector<2x16xf32>,
    %c0_11 = arith.constant 0 : index
    %c0_12 = arith.constant 0 : index
    %c2 = arith.constant 2 : index
    %c0_13 = arith.constant 0 : index
    %8 = vector.load %arg1[%c0_11, %c0_12, %c2, %c0_13] : memref<2x1x16x16xf32, #tpu.memory_space<vmem>>, vector<2x1x1x16xf32>
    %9 = vector.shape_cast %8 : vector<2x1x1x16xf32> to vector<2x16xf32>
    %c0_14 = arith.constant 0 : index
    %c32 = arith.constant 32 : index
    %10 = vector.load %arg10[%c0_14, %c32] : memref<2x272xf32, #tpu.memory_space<vmem>>, vector<2x16xf32>
    tpu.vector_store %arg10[%c0_14, %c32], %9 {strides = array<i32>} : memref<2x272xf32, #tpu.memory_space<vmem>>, vector<2x16xf32>,
    %c0_15 = arith.constant 0 : index
    %c0_16 = arith.constant 0 : index
    %c3 = arith.constant 3 : index
    %c0_17 = arith.constant 0 : index
    %11 = vector.load %arg1[%c0_15, %c0_16, %c3, %c0_17] : memref<2x1x16x16xf32, #tpu.memory_space<vmem>>, vector<2x1x1x16xf32>
    %12 = vector.shape_cast %11 : vector<2x1x1x16xf32> to vector<2x16xf32>
    %c0_18 = arith.constant 0 : index
    %c48 = arith.constant 48 : index
    %13 = vector.load %arg10[%c0_18, %c48] : memref<2x272xf32, #tpu.memory_space<vmem>>, vector<2x16xf32>
    tpu.vector_store %arg10[%c0_18, %c48], %12 {strides = array<i32>} : memref<2x272xf32, #tpu.memory_space<vmem>>, vector<2x16xf32>,
    %c0_19 = arith.constant 0 : index
    %c0_20 = arith.constant 0 : index
    %c4 = arith.constant 4 : index
    %c0_21 = arith.constant 0 : index
    %14 = vector.load %arg1[%c0_19, %c0_20, %c4, %c0_21] : memref<2x1x16x16xf32, #tpu.memory_space<vmem>>, vector<2x1x1x16xf32>
    %15 = vector.shape_cast %14 : vector<2x1x1x16xf32> to vector<2x16xf32>
    %c0_22 = arith.constant 0 : index
    %c64 = arith.constant 64 : index
    %16 = vector.load %arg10[%c0_22, %c64] : memref<2x272xf32, #tpu.memory_space<vmem>>, vector<2x16xf32>
    tpu.vector_store %arg10[%c0_22, %c64], %15 {strides = array<i32>} : memref<2x272xf32, #tpu.memory_space<vmem>>, vector<2x16xf32>,
    %c0_23 = arith.constant 0 : index
    %c0_24 = arith.constant 0 : index
    %c5 = arith.constant 5 : index
    %c0_25 = arith.constant 0 : index
    %17 = vector.load %arg1[%c0_23, %c0_24, %c5, %c0_25] : memref<2x1x16x16xf32, #tpu.memory_space<vmem>>, vector<2x1x1x16xf32>
    %18 = vector.shape_cast %17 : vector<2x1x1x16xf32> to vector<2x16xf32>
    %c0_26 = arith.constant 0 : index
    %c80 = arith.constant 80 : index
    %19 = vector.load %arg10[%c0_26, %c80] : memref<2x272xf32, #tpu.memory_space<vmem>>, vector<2x16xf32>
    tpu.vector_store %arg10[%c0_26, %c80], %18 {strides = array<i32>} : memref<2x272xf32, #tpu.memory_space<vmem>>, vector<2x16xf32>,
    %c0_27 = arith.constant 0 : index
    %c0_28 = arith.constant 0 : index
    %c6 = arith.constant 6 : index
    %c0_29 = arith.constant 0 : index
    %20 = vector.load %arg1[%c0_27, %c0_28, %c6, %c0_29] : memref<2x1x16x16xf32, #tpu.memory_space<vmem>>, vector<2x1x1x16xf32>
    %21 = vector.shape_cast %20 : vector<2x1x1x16xf32> to vector<2x16xf32>
    %c0_30 = arith.constant 0 : index
    %c96 = arith.constant 96 : index
    %22 = vector.load %arg10[%c0_30, %c96] : memref<2x272xf32, #tpu.memory_space<vmem>>, vector<2x16xf32>
    tpu.vector_store %arg10[%c0_30, %c96], %21 {strides = array<i32>} : memref<2x272xf32, #tpu.memory_space<vmem>>, vector<2x16xf32>,
    %c0_31 = arith.constant 0 : index
    %c0_32 = arith.constant 0 : index
    %c7 = arith.constant 7 : index
    %c0_33 = arith.constant 0 : index
    %23 = vector.load %arg1[%c0_31, %c0_32, %c7, %c0_33] : memref<2x1x16x16xf32, #tpu.memory_space<vmem>>, vector<2x1x1x16xf32>
    %24 = vector.shape_cast %23 : vector<2x1x1x16xf32> to vector<2x16xf32>
    %c0_34 = arith.constant 0 : index
    %c112 = arith.constant 112 : index
    %25 = vector.load %arg10[%c0_34, %c112] : memref<2x272xf32, #tpu.memory_space<vmem>>, vector<2x16xf32>
    tpu.vector_store %arg10[%c0_34, %c112], %24 {strides = array<i32>} : memref<2x272xf32, #tpu.memory_space<vmem>>, vector<2x16xf32>,
    %c0_35 = arith.constant 0 : index
    %c0_36 = arith.constant 0 : index
    %c8 = arith.constant 8 : index
    %c0_37 = arith.constant 0 : index
    %26 = vector.load %arg1[%c0_35, %c0_36, %c8, %c0_37] : memref<2x1x16x16xf32, #tpu.memory_space<vmem>>, vector<2x1x1x16xf32>
    %27 = vector.shape_cast %26 : vector<2x1x1x16xf32> to vector<2x16xf32>
    %c0_38 = arith.constant 0 : index
    %c128 = arith.constant 128 : index
    %28 = vector.load %arg10[%c0_38, %c128] : memref<2x272xf32, #tpu.memory_space<vmem>>, vector<2x16xf32>
    tpu.vector_store %arg10[%c0_38, %c128], %27 {strides = array<i32>} : memref<2x272xf32, #tpu.memory_space<vmem>>, vector<2x16xf32>,
    %c0_39 = arith.constant 0 : index
    %c0_40 = arith.constant 0 : index
    %c9 = arith.constant 9 : index
    %c0_41 = arith.constant 0 : index
    %29 = vector.load %arg1[%c0_39, %c0_40, %c9, %c0_41] : memref<2x1x16x16xf32, #tpu.memory_space<vmem>>, vector<2x1x1x16xf32>
    %30 = vector.shape_cast %29 : vector<2x1x1x16xf32> to vector<2x16xf32>
    %c0_42 = arith.constant 0 : index
    %c144 = arith.constant 144 : index
    %31 = vector.load %arg10[%c0_42, %c144] : memref<2x272xf32, #tpu.memory_space<vmem>>, vector<2x16xf32>
    tpu.vector_store %arg10[%c0_42, %c144], %30 {strides = array<i32>} : memref<2x272xf32, #tpu.memory_space<vmem>>, vector<2x16xf32>,
    %c0_43 = arith.constant 0 : index
    %c0_44 = arith.constant 0 : index
    %c10 = arith.constant 10 : index
    %c0_45 = arith.constant 0 : index
    %32 = vector.load %arg1[%c0_43, %c0_44, %c10, %c0_45] : memref<2x1x16x16xf32, #tpu.memory_space<vmem>>, vector<2x1x1x16xf32>
    %33 = vector.shape_cast %32 : vector<2x1x1x16xf32> to vector<2x16xf32>
    %c0_46 = arith.constant 0 : index
    %c160 = arith.constant 160 : index
    %34 = vector.load %arg10[%c0_46, %c160] : memref<2x272xf32, #tpu.memory_space<vmem>>, vector<2x16xf32>
    tpu.vector_store %arg10[%c0_46, %c160], %33 {strides = array<i32>} : memref<2x272xf32, #tpu.memory_space<vmem>>, vector<2x16xf32>,
    %c0_47 = arith.constant 0 : index
    %c0_48 = arith.constant 0 : index
    %c11 = arith.constant 11 : index
    %c0_49 = arith.constant 0 : index
    %35 = vector.load %arg1[%c0_47, %c0_48, %c11, %c0_49] : memref<2x1x16x16xf32, #tpu.memory_space<vmem>>, vector<2x1x1x16xf32>
    %36 = vector.shape_cast %35 : vector<2x1x1x16xf32> to vector<2x16xf32>
    %c0_50 = arith.constant 0 : index
    %c176 = arith.constant 176 : index
    %37 = vector.load %arg10[%c0_50, %c176] : memref<2x272xf32, #tpu.memory_space<vmem>>, vector<2x16xf32>
    tpu.vector_store %arg10[%c0_50, %c176], %36 {strides = array<i32>} : memref<2x272xf32, #tpu.memory_space<vmem>>, vector<2x16xf32>,
    %c0_51 = arith.constant 0 : index
    %c0_52 = arith.constant 0 : index
    %c12 = arith.constant 12 : index
    %c0_53 = arith.constant 0 : index
    %38 = vector.load %arg1[%c0_51, %c0_52, %c12, %c0_53] : memref<2x1x16x16xf32, #tpu.memory_space<vmem>>, vector<2x1x1x16xf32>
    %39 = vector.shape_cast %38 : vector<2x1x1x16xf32> to vector<2x16xf32>
    %c0_54 = arith.constant 0 : index
    %c192 = arith.constant 192 : index
    %40 = vector.load %arg10[%c0_54, %c192] : memref<2x272xf32, #tpu.memory_space<vmem>>, vector<2x16xf32>
    tpu.vector_store %arg10[%c0_54, %c192], %39 {strides = array<i32>} : memref<2x272xf32, #tpu.memory_space<vmem>>, vector<2x16xf32>,
    %c0_55 = arith.constant 0 : index
    %c0_56 = arith.constant 0 : index
    %c13 = arith.constant 13 : index
    %c0_57 = arith.constant 0 : index
    %41 = vector.load %arg1[%c0_55, %c0_56, %c13, %c0_57] : memref<2x1x16x16xf32, #tpu.memory_space<vmem>>, vector<2x1x1x16xf32>
    %42 = vector.shape_cast %41 : vector<2x1x1x16xf32> to vector<2x16xf32>
    %c0_58 = arith.constant 0 : index
    %c208 = arith.constant 208 : index
    %43 = vector.load %arg10[%c0_58, %c208] : memref<2x272xf32, #tpu.memory_space<vmem>>, vector<2x16xf32>
    tpu.vector_store %arg10[%c0_58, %c208], %42 {strides = array<i32>} : memref<2x272xf32, #tpu.memory_space<vmem>>, vector<2x16xf32>,
    %c0_59 = arith.constant 0 : index
    %c0_60 = arith.constant 0 : index
    %c14 = arith.constant 14 : index
    %c0_61 = arith.constant 0 : index
    %44 = vector.load %arg1[%c0_59, %c0_60, %c14, %c0_61] : memref<2x1x16x16xf32, #tpu.memory_space<vmem>>, vector<2x1x1x16xf32>
    %45 = vector.shape_cast %44 : vector<2x1x1x16xf32> to vector<2x16xf32>
    %c0_62 = arith.constant 0 : index
    %c224 = arith.constant 224 : index
    %46 = vector.load %arg10[%c0_62, %c224] : memref<2x272xf32, #tpu.memory_space<vmem>>, vector<2x16xf32>
    tpu.vector_store %arg10[%c0_62, %c224], %45 {strides = array<i32>} : memref<2x272xf32, #tpu.memory_space<vmem>>, vector<2x16xf32>,
    %c0_63 = arith.constant 0 : index
    %c0_64 = arith.constant 0 : index
    %c15 = arith.constant 15 : index
    %c0_65 = arith.constant 0 : index
    %47 = vector.load %arg1[%c0_63, %c0_64, %c15, %c0_65] : memref<2x1x16x16xf32, #tpu.memory_space<vmem>>, vector<2x1x1x16xf32>
    %48 = vector.shape_cast %47 : vector<2x1x1x16xf32> to vector<2x16xf32>
    %c0_66 = arith.constant 0 : index
    %c240 = arith.constant 240 : index
    %49 = vector.load %arg10[%c0_66, %c240] : memref<2x272xf32, #tpu.memory_space<vmem>>, vector<2x16xf32>
    tpu.vector_store %arg10[%c0_66, %c240], %48 {strides = array<i32>} : memref<2x272xf32, #tpu.memory_space<vmem>>, vector<2x16xf32>,
    %50 = tpu.iota {dimensions = array<i32: 0>} : vector<288x288xi32>
    %51 = tpu.iota {dimensions = array<i32: 1>} : vector<288x288xi32>
    %52 = arith.cmpi eq, %50, %51 : vector<288x288xi32>
    %cst_67 = arith.constant 1.000000e+00 : f32
    %cst_68 = arith.constant 0.000000e+00 : f32
    %53 = vector.broadcast %cst_67 : f32 to vector<288x288xf32>
    %54 = vector.broadcast %cst_68 : f32 to vector<288x288xf32>
    %55 = arith.select %52, %53, %54 : vector<288x288xi1>, vector<288x288xf32>
    %56 = tpu.iota {dimensions = array<i32: 0>} : vector<64x64xi32>
    %57 = tpu.iota {dimensions = array<i32: 1>} : vector<64x64xi32>
    %58 = arith.cmpi eq, %56, %57 : vector<64x64xi32>
    %cst_69 = arith.constant 1.000000e+00 : f32
    %cst_70 = arith.constant 0.000000e+00 : f32
    %59 = vector.broadcast %cst_69 : f32 to vector<64x64xf32>
    %60 = vector.broadcast %cst_70 : f32 to vector<64x64xf32>
    %61 = arith.select %58, %59, %60 : vector<64x64xi1>, vector<64x64xf32>
    %cst_71 = arith.constant 1.000000e+00 : f32
    %62 = vector.broadcast %cst_71 : f32 to vector<1x288xf32>
    %cst_72 = arith.constant 1.000000e+00 : f32
    %63 = vector.broadcast %cst_72 : f32 to vector<1x64xf32>
    %c0_73 = arith.constant 0 : index
    %c0_74 = arith.constant 0 : index
    %64 = vector.load %arg10[%c0_73, %c0_74] : memref<2x272xf32, #tpu.memory_space<vmem>>, vector<1x192xf32>
    %c0_75 = arith.constant 0 : index
    %c0_76 = arith.constant 0 : index
    %65 = vector.load %arg11[%c0_75, %c0_76] : memref<25x192xf32, #tpu.memory_space<vmem>>, vector<1x192xf32>
    tpu.vector_store %arg11[%c0_75, %c0_76], %64 {strides = array<i32>} : memref<25x192xf32, #tpu.memory_space<vmem>>, vector<1x192xf32>,
    %c0_77 = arith.constant 0 : index
    %c1_78 = arith.constant 1 : index
    %66 = vector.load %arg10[%c0_77, %c1_78] : memref<2x272xf32, #tpu.memory_space<vmem>>, vector<1x192xf32>
    %c1_79 = arith.constant 1 : index
    %c0_80 = arith.constant 0 : index
    %67 = vector.load %arg11[%c1_79, %c0_80] : memref<25x192xf32, #tpu.memory_space<vmem>>, vector<1x192xf32>
    tpu.vector_store %arg11[%c1_79, %c0_80], %66 {strides = array<i32>} : memref<25x192xf32, #tpu.memory_space<vmem>>, vector<1x192xf32>,
    %c0_81 = arith.constant 0 : index
    %c2_82 = arith.constant 2 : index
    %68 = vector.load %arg10[%c0_81, %c2_82] : memref<2x272xf32, #tpu.memory_space<vmem>>, vector<1x192xf32>
    %c2_83 = arith.constant 2 : index
    %c0_84 = arith.constant 0 : index
    %69 = vector.load %arg11[%c2_83, %c0_84] : memref<25x192xf32, #tpu.memory_space<vmem>>, vector<1x192xf32>
    tpu.vector_store %arg11[%c2_83, %c0_84], %68 {strides = array<i32>} : memref<25x192xf32, #tpu.memory_space<vmem>>, vector<1x192xf32>,
    %c0_85 = arith.constant 0 : index
    %c3_86 = arith.constant 3 : index
    %70 = vector.load %arg10[%c0_85, %c3_86] : memref<2x272xf32, #tpu.memory_space<vmem>>, vector<1x192xf32>
    %c3_87 = arith.constant 3 : index
    %c0_88 = arith.constant 0 : index
    %71 = vector.load %arg11[%c3_87, %c0_88] : memref<25x192xf32, #tpu.memory_space<vmem>>, vector<1x192xf32>
    tpu.vector_store %arg11[%c3_87, %c0_88], %70 {strides = array<i32>} : memref<25x192xf32, #tpu.memory_space<vmem>>, vector<1x192xf32>,
    %c0_89 = arith.constant 0 : index
    %c4_90 = arith.constant 4 : index
    %72 = vector.load %arg10[%c0_89, %c4_90] : memref<2x272xf32, #tpu.memory_space<vmem>>, vector<1x192xf32>
    %c4_91 = arith.constant 4 : index
    %c0_92 = arith.constant 0 : index
    %73 = vector.load %arg11[%c4_91, %c0_92] : memref<25x192xf32, #tpu.memory_space<vmem>>, vector<1x192xf32>
    tpu.vector_store %arg11[%c4_91, %c0_92], %72 {strides = array<i32>} : memref<25x192xf32, #tpu.memory_space<vmem>>, vector<1x192xf32>,
    %c0_93 = arith.constant 0 : index
    %c16_94 = arith.constant 16 : index
    %74 = vector.load %arg10[%c0_93, %c16_94] : memref<2x272xf32, #tpu.memory_space<vmem>>, vector<1x192xf32>
    %c5_95 = arith.constant 5 : index
    %c0_96 = arith.constant 0 : index
    %75 = vector.load %arg11[%c5_95, %c0_96] : memref<25x192xf32, #tpu.memory_space<vmem>>, vector<1x192xf32>
    tpu.vector_store %arg11[%c5_95, %c0_96], %74 {strides = array<i32>} : memref<25x192xf32, #tpu.memory_space<vmem>>, vector<1x192xf32>,
    %c0_97 = arith.constant 0 : index
    %c17 = arith.constant 17 : index
    %76 = vector.load %arg10[%c0_97, %c17] : memref<2x272xf32, #tpu.memory_space<vmem>>, vector<1x192xf32>
    %c6_98 = arith.constant 6 : index
    %c0_99 = arith.constant 0 : index
    %77 = vector.load %arg11[%c6_98, %c0_99] : memref<25x192xf32, #tpu.memory_space<vmem>>, vector<1x192xf32>
    tpu.vector_store %arg11[%c6_98, %c0_99], %76 {strides = array<i32>} : memref<25x192xf32, #tpu.memory_space<vmem>>, vector<1x192xf32>,
    %c0_100 = arith.constant 0 : index
    %c18 = arith.constant 18 : index
    %78 = vector.load %arg10[%c0_100, %c18] : memref<2x272xf32, #tpu.memory_space<vmem>>, vector<1x192xf32>
    %c7_101 = arith.constant 7 : index
    %c0_102 = arith.constant 0 : index
    %79 = vector.load %arg11[%c7_101, %c0_102] : memref<25x192xf32, #tpu.memory_space<vmem>>, vector<1x192xf32>
    tpu.vector_store %arg11[%c7_101, %c0_102], %78 {strides = array<i32>} : memref<25x192xf32, #tpu.memory_space<vmem>>, vector<1x192xf32>,
    %c0_103 = arith.constant 0 : index
    %c19 = arith.constant 19 : index
    %80 = vector.load %arg10[%c0_103, %c19] : memref<2x272xf32, #tpu.memory_space<vmem>>, vector<1x192xf32>
    %c8_104 = arith.constant 8 : index
    %c0_105 = arith.constant 0 : index
    %81 = vector.load %arg11[%c8_104, %c0_105] : memref<25x192xf32, #tpu.memory_space<vmem>>, vector<1x192xf32>
    tpu.vector_store %arg11[%c8_104, %c0_105], %80 {strides = array<i32>} : memref<25x192xf32, #tpu.memory_space<vmem>>, vector<1x192xf32>,
    %c0_106 = arith.constant 0 : index
    %c20 = arith.constant 20 : index
    %82 = vector.load %arg10[%c0_106, %c20] : memref<2x272xf32, #tpu.memory_space<vmem>>, vector<1x192xf32>
    %c9_107 = arith.constant 9 : index
    %c0_108 = arith.constant 0 : index
    %83 = vector.load %arg11[%c9_107, %c0_108] : memref<25x192xf32, #tpu.memory_space<vmem>>, vector<1x192xf32>
    tpu.vector_store %arg11[%c9_107, %c0_108], %82 {strides = array<i32>} : memref<25x192xf32, #tpu.memory_space<vmem>>, vector<1x192xf32>,
    %c0_109 = arith.constant 0 : index
    %c32_110 = arith.constant 32 : index
    %84 = vector.load %arg10[%c0_109, %c32_110] : memref<2x272xf32, #tpu.memory_space<vmem>>, vector<1x192xf32>
    %c10_111 = arith.constant 10 : index
    %c0_112 = arith.constant 0 : index
    %85 = vector.load %arg11[%c10_111, %c0_112] : memref<25x192xf32, #tpu.memory_space<vmem>>, vector<1x192xf32>
    tpu.vector_store %arg11[%c10_111, %c0_112], %84 {strides = array<i32>} : memref<25x192xf32, #tpu.memory_space<vmem>>, vector<1x192xf32>,
    %c0_113 = arith.constant 0 : index
    %c33 = arith.constant 33 : index
    %86 = vector.load %arg10[%c0_113, %c33] : memref<2x272xf32, #tpu.memory_space<vmem>>, vector<1x192xf32>
    %c11_114 = arith.constant 11 : index
    %c0_115 = arith.constant 0 : index
    %87 = vector.load %arg11[%c11_114, %c0_115] : memref<25x192xf32, #tpu.memory_space<vmem>>, vector<1x192xf32>
    tpu.vector_store %arg11[%c11_114, %c0_115], %86 {strides = array<i32>} : memref<25x192xf32, #tpu.memory_space<vmem>>, vector<1x192xf32>,
    %c0_116 = arith.constant 0 : index
    %c34 = arith.constant 34 : index
    %88 = vector.load %arg10[%c0_116, %c34] : memref<2x272xf32, #tpu.memory_space<vmem>>, vector<1x192xf32>
    %c12_117 = arith.constant 12 : index
    %c0_118 = arith.constant 0 : index
    %89 = vector.load %arg11[%c12_117, %c0_118] : memref<25x192xf32, #tpu.memory_space<vmem>>, vector<1x192xf32>
    tpu.vector_store %arg11[%c12_117, %c0_118], %88 {strides = array<i32>} : memref<25x192xf32, #tpu.memory_space<vmem>>, vector<1x192xf32>,
    %c0_119 = arith.constant 0 : index
    %c35 = arith.constant 35 : index
    %90 = vector.load %arg10[%c0_119, %c35] : memref<2x272xf32, #tpu.memory_space<vmem>>, vector<1x192xf32>
    %c13_120 = arith.constant 13 : index
    %c0_121 = arith.constant 0 : index
    %91 = vector.load %arg11[%c13_120, %c0_121] : memref<25x192xf32, #tpu.memory_space<vmem>>, vector<1x192xf32>
    tpu.vector_store %arg11[%c13_120, %c0_121], %90 {strides = array<i32>} : memref<25x192xf32, #tpu.memory_space<vmem>>, vector<1x192xf32>,
    %c0_122 = arith.constant 0 : index
    %c36 = arith.constant 36 : index
    %92 = vector.load %arg10[%c0_122, %c36] : memref<2x272xf32, #tpu.memory_space<vmem>>, vector<1x192xf32>
    %c14_123 = arith.constant 14 : index
    %c0_124 = arith.constant 0 : index
    %93 = vector.load %arg11[%c14_123, %c0_124] : memref<25x192xf32, #tpu.memory_space<vmem>>, vector<1x192xf32>
    tpu.vector_store %arg11[%c14_123, %c0_124], %92 {strides = array<i32>} : memref<25x192xf32, #tpu.memory_space<vmem>>, vector<1x192xf32>,
    %c0_125 = arith.constant 0 : index
    %c48_126 = arith.constant 48 : index
    %94 = vector.load %arg10[%c0_125, %c48_126] : memref<2x272xf32, #tpu.memory_space<vmem>>, vector<1x192xf32>
    %c15_127 = arith.constant 15 : index
    %c0_128 = arith.constant 0 : index
    %95 = vector.load %arg11[%c15_127, %c0_128] : memref<25x192xf32, #tpu.memory_space<vmem>>, vector<1x192xf32>
    tpu.vector_store %arg11[%c15_127, %c0_128], %94 {strides = array<i32>} : memref<25x192xf32, #tpu.memory_space<vmem>>, vector<1x192xf32>,
    %c0_129 = arith.constant 0 : index
    %c49 = arith.constant 49 : index
    %96 = vector.load %arg10[%c0_129, %c49] : memref<2x272xf32, #tpu.memory_space<vmem>>, vector<1x192xf32>
    %c16_130 = arith.constant 16 : index
    %c0_131 = arith.constant 0 : index
    %97 = vector.load %arg11[%c16_130, %c0_131] : memref<25x192xf32, #tpu.memory_space<vmem>>, vector<1x192xf32>
    tpu.vector_store %arg11[%c16_130, %c0_131], %96 {strides = array<i32>} : memref<25x192xf32, #tpu.memory_space<vmem>>, vector<1x192xf32>,
    %c0_132 = arith.constant 0 : index
    %c50 = arith.constant 50 : index
    %98 = vector.load %arg10[%c0_132, %c50] : memref<2x272xf32, #tpu.memory_space<vmem>>, vector<1x192xf32>
    %c17_133 = arith.constant 17 : index
    %c0_134 = arith.constant 0 : index
    %99 = vector.load %arg11[%c17_133, %c0_134] : memref<25x192xf32, #tpu.memory_space<vmem>>, vector<1x192xf32>
    tpu.vector_store %arg11[%c17_133, %c0_134], %98 {strides = array<i32>} : memref<25x192xf32, #tpu.memory_space<vmem>>, vector<1x192xf32>,
    %c0_135 = arith.constant 0 : index
    %c51 = arith.constant 51 : index
    %100 = vector.load %arg10[%c0_135, %c51] : memref<2x272xf32, #tpu.memory_space<vmem>>, vector<1x192xf32>
    %c18_136 = arith.constant 18 : index
    %c0_137 = arith.constant 0 : index
    %101 = vector.load %arg11[%c18_136, %c0_137] : memref<25x192xf32, #tpu.memory_space<vmem>>, vector<1x192xf32>
    tpu.vector_store %arg11[%c18_136, %c0_137], %100 {strides = array<i32>} : memref<25x192xf32, #tpu.memory_space<vmem>>, vector<1x192xf32>,
    %c0_138 = arith.constant 0 : index
    %c52 = arith.constant 52 : index
    %102 = vector.load %arg10[%c0_138, %c52] : memref<2x272xf32, #tpu.memory_space<vmem>>, vector<1x192xf32>
    %c19_139 = arith.constant 19 : index
    %c0_140 = arith.constant 0 : index
    %103 = vector.load %arg11[%c19_139, %c0_140] : memref<25x192xf32, #tpu.memory_space<vmem>>, vector<1x192xf32>
    tpu.vector_store %arg11[%c19_139, %c0_140], %102 {strides = array<i32>} : memref<25x192xf32, #tpu.memory_space<vmem>>, vector<1x192xf32>,
    %c0_141 = arith.constant 0 : index
    %c64_142 = arith.constant 64 : index
    %104 = vector.load %arg10[%c0_141, %c64_142] : memref<2x272xf32, #tpu.memory_space<vmem>>, vector<1x192xf32>
    %c20_143 = arith.constant 20 : index
    %c0_144 = arith.constant 0 : index
    %105 = vector.load %arg11[%c20_143, %c0_144] : memref<25x192xf32, #tpu.memory_space<vmem>>, vector<1x192xf32>
    tpu.vector_store %arg11[%c20_143, %c0_144], %104 {strides = array<i32>} : memref<25x192xf32, #tpu.memory_space<vmem>>, vector<1x192xf32>,
    %c0_145 = arith.constant 0 : index
    %c65 = arith.constant 65 : index
    %106 = vector.load %arg10[%c0_145, %c65] : memref<2x272xf32, #tpu.memory_space<vmem>>, vector<1x192xf32>
    %c21 = arith.constant 21 : index
    %c0_146 = arith.constant 0 : index
    %107 = vector.load %arg11[%c21, %c0_146] : memref<25x192xf32, #tpu.memory_space<vmem>>, vector<1x192xf32>
    tpu.vector_store %arg11[%c21, %c0_146], %106 {strides = array<i32>} : memref<25x192xf32, #tpu.memory_space<vmem>>, vector<1x192xf32>,
    %c0_147 = arith.constant 0 : index
    %c66 = arith.constant 66 : index
    %108 = vector.load %arg10[%c0_147, %c66] : memref<2x272xf32, #tpu.memory_space<vmem>>, vector<1x192xf32>
    %c22 = arith.constant 22 : index
    %c0_148 = arith.constant 0 : index
    %109 = vector.load %arg11[%c22, %c0_148] : memref<25x192xf32, #tpu.memory_space<vmem>>, vector<1x192xf32>
    tpu.vector_store %arg11[%c22, %c0_148], %108 {strides = array<i32>} : memref<25x192xf32, #tpu.memory_space<vmem>>, vector<1x192xf32>,
    %c0_149 = arith.constant 0 : index
    %c67 = arith.constant 67 : index
    %110 = vector.load %arg10[%c0_149, %c67] : memref<2x272xf32, #tpu.memory_space<vmem>>, vector<1x192xf32>
    %c23 = arith.constant 23 : index
    %c0_150 = arith.constant 0 : index
    %111 = vector.load %arg11[%c23, %c0_150] : memref<25x192xf32, #tpu.memory_space<vmem>>, vector<1x192xf32>
    tpu.vector_store %arg11[%c23, %c0_150], %110 {strides = array<i32>} : memref<25x192xf32, #tpu.memory_space<vmem>>, vector<1x192xf32>,
    %c0_151 = arith.constant 0 : index
    %c68 = arith.constant 68 : index
    %112 = vector.load %arg10[%c0_151, %c68] : memref<2x272xf32, #tpu.memory_space<vmem>>, vector<1x192xf32>
    %c24 = arith.constant 24 : index
    %c0_152 = arith.constant 0 : index
    %113 = vector.load %arg11[%c24, %c0_152] : memref<25x192xf32, #tpu.memory_space<vmem>>, vector<1x192xf32>
    tpu.vector_store %arg11[%c24, %c0_152], %112 {strides = array<i32>} : memref<25x192xf32, #tpu.memory_space<vmem>>, vector<1x192xf32>,
    %c0_153 = arith.constant 0 : index
    %c0_154 = arith.constant 0 : index
    %114 = vector.load %arg2[%c0_153, %c0_154] : memref<8x25xf32, #tpu.memory_space<vmem>>, vector<8x25xf32>
    %c0_155 = arith.constant 0 : index
    %c0_156 = arith.constant 0 : index
    %115 = vector.load %arg11[%c0_155, %c0_156] : memref<25x192xf32, #tpu.memory_space<vmem>>, vector<25x192xf32>
    %cst_157 = arith.constant dense<0.000000e+00> : vector<8x192xf32>
    %116 = tpu.matmul %114, %115, %cst_157 {dimension_numbers = #tpu.dot_dimension_numbers<[1], [0], [0], [1], [0, 0, 1, 1], [], []>} : vector<8x25xf32>, vector<25x192xf32>, vector<8x192xf32> -> vector<8x192xf32>
    %c0_158 = arith.constant 0 : index
    %c0_159 = arith.constant 0 : index
    %117 = vector.load %arg3[%c0_158, %c0_159] : memref<8x1xf32, #tpu.memory_space<vmem>>, vector<8x1xf32>
    %118 = vector.broadcast %117 : vector<8x1xf32> to vector<8x192xf32>
    %119 = arith.addf %116, %118 : vector<8x192xf32>
    %c0_160 = arith.constant 0 : index
    %c0_161 = arith.constant 0 : index
    %c0_162 = arith.constant 0 : index
    %120 = vector.load %arg4[%c0_160, %c0_161, %c0_162] : memref<4x192x36xf32, #tpu.memory_space<vmem>>, vector<1x192x36xf32>
    %121 = vector.shape_cast %120 : vector<1x192x36xf32> to vector<192x36xf32>
    %cst_163 = arith.constant dense<0.000000e+00> : vector<8x36xf32>
    %122 = tpu.matmul %119, %121, %cst_163 {dimension_numbers = #tpu.dot_dimension_numbers<[1], [0], [0], [1], [0, 0, 1, 1], [], []>} : vector<8x192xf32>, vector<192x36xf32>, vector<8x36xf32> -> vector<8x36xf32>
    %c1_164 = arith.constant 1 : index
    %c0_165 = arith.constant 0 : index
    %c0_166 = arith.constant 0 : index
    %123 = vector.load %arg4[%c1_164, %c0_165, %c0_166] : memref<4x192x36xf32, #tpu.memory_space<vmem>>, vector<1x192x36xf32>
    %124 = vector.shape_cast %123 : vector<1x192x36xf32> to vector<192x36xf32>
    %cst_167 = arith.constant dense<0.000000e+00> : vector<8x36xf32>
    %125 = tpu.matmul %119, %124, %cst_167 {dimension_numbers = #tpu.dot_dimension_numbers<[1], [0], [0], [1], [0, 0, 1, 1], [], []>} : vector<8x192xf32>, vector<192x36xf32>, vector<8x36xf32> -> vector<8x36xf32>
    %c2_168 = arith.constant 2 : index
    %c0_169 = arith.constant 0 : index
    %c0_170 = arith.constant 0 : index
    %126 = vector.load %arg4[%c2_168, %c0_169, %c0_170] : memref<4x192x36xf32, #tpu.memory_space<vmem>>, vector<1x192x36xf32>
    %127 = vector.shape_cast %126 : vector<1x192x36xf32> to vector<192x36xf32>
    %cst_171 = arith.constant dense<0.000000e+00> : vector<8x36xf32>
    %128 = tpu.matmul %119, %127, %cst_171 {dimension_numbers = #tpu.dot_dimension_numbers<[1], [0], [0], [1], [0, 0, 1, 1], [], []>} : vector<8x192xf32>, vector<192x36xf32>, vector<8x36xf32> -> vector<8x36xf32>
    %c3_172 = arith.constant 3 : index
    %c0_173 = arith.constant 0 : index
    %c0_174 = arith.constant 0 : index
    %129 = vector.load %arg4[%c3_172, %c0_173, %c0_174] : memref<4x192x36xf32, #tpu.memory_space<vmem>>, vector<1x192x36xf32>
    %130 = vector.shape_cast %129 : vector<1x192x36xf32> to vector<192x36xf32>
    %cst_175 = arith.constant dense<0.000000e+00> : vector<8x36xf32>
    %131 = tpu.matmul %119, %130, %cst_175 {dimension_numbers = #tpu.dot_dimension_numbers<[1], [0], [0], [1], [0, 0, 1, 1], [], []>} : vector<8x192xf32>, vector<192x36xf32>, vector<8x36xf32> -> vector<8x36xf32>
    %132 = arith.maximumf %122, %125 : vector<8x36xf32>
    %133 = arith.maximumf %128, %131 : vector<8x36xf32>
    %134 = arith.maximumf %132, %133 : vector<8x36xf32>
    %c0_176 = arith.constant 0 : index
    %c0_177 = arith.constant 0 : index
    %135 = vector.load %arg12[%c0_176, %c0_177] : memref<8x36xf32, #tpu.memory_space<vmem>>, vector<8x36xf32>
    tpu.vector_store %arg12[%c0_176, %c0_177], %134 {strides = array<i32>} : memref<8x36xf32, #tpu.memory_space<vmem>>, vector<8x36xf32>,
    %c0_178 = arith.constant 0 : index
    %c0_179 = arith.constant 0 : index
    %136 = vector.load %arg12[%c0_178, %c0_179] : memref<8x36xf32, #tpu.memory_space<vmem>>, vector<1x36xf32>
    %c0_180 = arith.constant 0 : index
    %c0_181 = arith.constant 0 : index
    %137 = vector.load %arg13[%c0_180, %c0_181] : memref<1x288xf32, #tpu.memory_space<vmem>>, vector<1x36xf32>
    tpu.vector_store %arg13[%c0_180, %c0_181], %136 {strides = array<i32>} : memref<1x288xf32, #tpu.memory_space<vmem>>, vector<1x36xf32>,
    %c1_182 = arith.constant 1 : index
    %c0_183 = arith.constant 0 : index
    %138 = vector.load %arg12[%c1_182, %c0_183] : memref<8x36xf32, #tpu.memory_space<vmem>>, vector<1x36xf32>
    %c0_184 = arith.constant 0 : index
    %c36_185 = arith.constant 36 : index
    %139 = vector.load %arg13[%c0_184, %c36_185] : memref<1x288xf32, #tpu.memory_space<vmem>>, vector<1x36xf32>
    tpu.vector_store %arg13[%c0_184, %c36_185], %138 {strides = array<i32>} : memref<1x288xf32, #tpu.memory_space<vmem>>, vector<1x36xf32>,
    %c2_186 = arith.constant 2 : index
    %c0_187 = arith.constant 0 : index
    %140 = vector.load %arg12[%c2_186, %c0_187] : memref<8x36xf32, #tpu.memory_space<vmem>>, vector<1x36xf32>
    %c0_188 = arith.constant 0 : index
    %c72 = arith.constant 72 : index
    %141 = vector.load %arg13[%c0_188, %c72] : memref<1x288xf32, #tpu.memory_space<vmem>>, vector<1x36xf32>
    tpu.vector_store %arg13[%c0_188, %c72], %140 {strides = array<i32>} : memref<1x288xf32, #tpu.memory_space<vmem>>, vector<1x36xf32>,
    %c3_189 = arith.constant 3 : index
    %c0_190 = arith.constant 0 : index
    %142 = vector.load %arg12[%c3_189, %c0_190] : memref<8x36xf32, #tpu.memory_space<vmem>>, vector<1x36xf32>
    %c0_191 = arith.constant 0 : index
    %c108 = arith.constant 108 : index
    %143 = vector.load %arg13[%c0_191, %c108] : memref<1x288xf32, #tpu.memory_space<vmem>>, vector<1x36xf32>
    tpu.vector_store %arg13[%c0_191, %c108], %142 {strides = array<i32>} : memref<1x288xf32, #tpu.memory_space<vmem>>, vector<1x36xf32>,
    %c4_192 = arith.constant 4 : index
    %c0_193 = arith.constant 0 : index
    %144 = vector.load %arg12[%c4_192, %c0_193] : memref<8x36xf32, #tpu.memory_space<vmem>>, vector<1x36xf32>
    %c0_194 = arith.constant 0 : index
    %c144_195 = arith.constant 144 : index
    %145 = vector.load %arg13[%c0_194, %c144_195] : memref<1x288xf32, #tpu.memory_space<vmem>>, vector<1x36xf32>
    tpu.vector_store %arg13[%c0_194, %c144_195], %144 {strides = array<i32>} : memref<1x288xf32, #tpu.memory_space<vmem>>, vector<1x36xf32>,
    %c5_196 = arith.constant 5 : index
    %c0_197 = arith.constant 0 : index
    %146 = vector.load %arg12[%c5_196, %c0_197] : memref<8x36xf32, #tpu.memory_space<vmem>>, vector<1x36xf32>
    %c0_198 = arith.constant 0 : index
    %c180 = arith.constant 180 : index
    %147 = vector.load %arg13[%c0_198, %c180] : memref<1x288xf32, #tpu.memory_space<vmem>>, vector<1x36xf32>
    tpu.vector_store %arg13[%c0_198, %c180], %146 {strides = array<i32>} : memref<1x288xf32, #tpu.memory_space<vmem>>, vector<1x36xf32>,
    %c6_199 = arith.constant 6 : index
    %c0_200 = arith.constant 0 : index
    %148 = vector.load %arg12[%c6_199, %c0_200] : memref<8x36xf32, #tpu.memory_space<vmem>>, vector<1x36xf32>
    %c0_201 = arith.constant 0 : index
    %c216 = arith.constant 216 : index
    %149 = vector.load %arg13[%c0_201, %c216] : memref<1x288xf32, #tpu.memory_space<vmem>>, vector<1x36xf32>
    tpu.vector_store %arg13[%c0_201, %c216], %148 {strides = array<i32>} : memref<1x288xf32, #tpu.memory_space<vmem>>, vector<1x36xf32>,
    %c7_202 = arith.constant 7 : index
    %c0_203 = arith.constant 0 : index
    %150 = vector.load %arg12[%c7_202, %c0_203] : memref<8x36xf32, #tpu.memory_space<vmem>>, vector<1x36xf32>
    %c0_204 = arith.constant 0 : index
    %c252 = arith.constant 252 : index
    %151 = vector.load %arg13[%c0_204, %c252] : memref<1x288xf32, #tpu.memory_space<vmem>>, vector<1x36xf32>
    tpu.vector_store %arg13[%c0_204, %c252], %150 {strides = array<i32>} : memref<1x288xf32, #tpu.memory_space<vmem>>, vector<1x36xf32>,
    %c0_205 = arith.constant 0 : index
    %c0_206 = arith.constant 0 : index
    %152 = vector.load %arg13[%c0_205, %c0_206] : memref<1x288xf32, #tpu.memory_space<vmem>>, vector<1x288xf32>
    %153 = vector.broadcast %152 : vector<1x288xf32> to vector<288x288xf32>
    %154 = arith.mulf %55, %153 : vector<288x288xf32>
    %cst_207 = arith.constant dense<0.000000e+00> : vector<288xf32>
    %155 = vector.multi_reduction <add>, %154, %cst_207 [1] : vector<288x288xf32> to vector<288xf32>
    %156 = vector.shape_cast %155 : vector<288xf32> to vector<288x1xf32>
    %157 = vector.broadcast %156 : vector<288x1xf32> to vector<288x288xf32>
    %158 = vector.broadcast %152 : vector<1x288xf32> to vector<288x288xf32>
    %159 = arith.cmpf ogt, %157, %158 : vector<288x288xf32>
    %cst_208 = arith.constant 1.000000e+00 : f32
    %cst_209 = arith.constant 0.000000e+00 : f32
    %160 = vector.broadcast %cst_208 : f32 to vector<288x288xf32>
    %161 = vector.broadcast %cst_209 : f32 to vector<288x288xf32>
    %162 = arith.select %159, %160, %161 : vector<288x288xi1>, vector<288x288xf32>
    %cst_210 = arith.constant dense<0.000000e+00> : vector<1x288xf32>
    %163 = tpu.matmul %62, %162, %cst_210 {dimension_numbers = #tpu.dot_dimension_numbers<[1], [0], [0], [1], [0, 0, 1, 1], [], []>} : vector<1x288xf32>, vector<288x288xf32>, vector<1x288xf32> -> vector<1x288xf32>
    %cst_211 = arith.constant 4.800000e+01 : f32
    %164 = vector.broadcast %cst_211 : f32 to vector<1x288xf32>
    %165 = arith.cmpf olt, %163, %164 : vector<1x288xf32>
    %cst_212 = arith.constant 0.000000e+00 : f32
    %166 = vector.broadcast %cst_212 : f32 to vector<1x288xf32>
    %167 = arith.select %165, %152, %166 : vector<1x288xi1>, vector<1x288xf32>
    %c0_213 = arith.constant 0 : index
    %c0_214 = arith.constant 0 : index
    %168 = vector.load %arg5[%c0_213, %c0_214] : memref<288x64xf32, #tpu.memory_space<vmem>>, vector<288x64xf32>
    %cst_215 = arith.constant dense<0.000000e+00> : vector<1x64xf32>
    %169 = tpu.matmul %167, %168, %cst_215 {dimension_numbers = #tpu.dot_dimension_numbers<[1], [0], [0], [1], [0, 0, 1, 1], [], []>} : vector<1x288xf32>, vector<288x64xf32>, vector<1x64xf32> -> vector<1x64xf32>
    %c0_216 = arith.constant 0 : index
    %c0_217 = arith.constant 0 : index
    %170 = vector.load %arg6[%c0_216, %c0_217] : memref<1x64xf32, #tpu.memory_space<vmem>>, vector<1x64xf32>
    %171 = arith.addf %169, %170 : vector<1x64xf32>
    %172 = vector.broadcast %171 : vector<1x64xf32> to vector<64x64xf32>
    %173 = arith.mulf %61, %172 : vector<64x64xf32>
    %cst_218 = arith.constant dense<0.000000e+00> : vector<64xf32>
    %174 = vector.multi_reduction <add>, %173, %cst_218 [1] : vector<64x64xf32> to vector<64xf32>
    %175 = vector.shape_cast %174 : vector<64xf32> to vector<64x1xf32>
    %176 = vector.broadcast %175 : vector<64x1xf32> to vector<64x64xf32>
    %177 = vector.broadcast %171 : vector<1x64xf32> to vector<64x64xf32>
    %178 = arith.cmpf ogt, %176, %177 : vector<64x64xf32>
    %cst_219 = arith.constant 1.000000e+00 : f32
    %cst_220 = arith.constant 0.000000e+00 : f32
    %179 = vector.broadcast %cst_219 : f32 to vector<64x64xf32>
    %180 = vector.broadcast %cst_220 : f32 to vector<64x64xf32>
    %181 = arith.select %178, %179, %180 : vector<64x64xi1>, vector<64x64xf32>
    %cst_221 = arith.constant dense<0.000000e+00> : vector<1x64xf32>
    %182 = tpu.matmul %63, %181, %cst_221 {dimension_numbers = #tpu.dot_dimension_numbers<[1], [0], [0], [1], [0, 0, 1, 1], [], []>} : vector<1x64xf32>, vector<64x64xf32>, vector<1x64xf32> -> vector<1x64xf32>
    %cst_222 = arith.constant 1.200000e+01 : f32
    %183 = vector.broadcast %cst_222 : f32 to vector<1x64xf32>
    %184 = arith.cmpf olt, %182, %183 : vector<1x64xf32>
    %cst_223 = arith.constant 0.000000e+00 : f32
    %185 = vector.broadcast %cst_223 : f32 to vector<1x64xf32>
    %186 = arith.select %184, %171, %185 : vector<1x64xi1>, vector<1x64xf32>
    %c0_224 = arith.constant 0 : index
    %c0_225 = arith.constant 0 : index
    %187 = vector.load %arg7[%c0_224, %c0_225] : memref<64x10xf32, #tpu.memory_space<vmem>>, vector<64x10xf32>
    %cst_226 = arith.constant dense<0.000000e+00> : vector<1x10xf32>
    %188 = tpu.matmul %186, %187, %cst_226 {dimension_numbers = #tpu.dot_dimension_numbers<[1], [0], [0], [1], [0, 0, 1, 1], [], []>} : vector<1x64xf32>, vector<64x10xf32>, vector<1x10xf32> -> vector<1x10xf32>
    %c0_227 = arith.constant 0 : index
    %c0_228 = arith.constant 0 : index
    %189 = vector.load %arg8[%c0_227, %c0_228] : memref<1x10xf32, #tpu.memory_space<vmem>>, vector<1x10xf32>
    %190 = arith.addf %188, %189 : vector<1x10xf32>
    %c0_229 = arith.constant 0 : index
    %c0_230 = arith.constant 0 : index
    %191 = vector.load %arg9[%c0_229, %c0_230] : memref<2x10xf32, #tpu.memory_space<vmem>>, vector<1x10xf32>
    tpu.vector_store %arg9[%c0_229, %c0_230], %190 {strides = array<i32>} : memref<2x10xf32, #tpu.memory_space<vmem>>, vector<1x10xf32>,
    %c1_231 = arith.constant 1 : index
    %c0_232 = arith.constant 0 : index
    %192 = vector.load %arg10[%c1_231, %c0_232] : memref<2x272xf32, #tpu.memory_space<vmem>>, vector<1x192xf32>
    %c0_233 = arith.constant 0 : index
    %c0_234 = arith.constant 0 : index
    %193 = vector.load %arg11[%c0_233, %c0_234] : memref<25x192xf32, #tpu.memory_space<vmem>>, vector<1x192xf32>
    tpu.vector_store %arg11[%c0_233, %c0_234], %192 {strides = array<i32>} : memref<25x192xf32, #tpu.memory_space<vmem>>, vector<1x192xf32>,
    %c1_235 = arith.constant 1 : index
    %c1_236 = arith.constant 1 : index
    %194 = vector.load %arg10[%c1_235, %c1_236] : memref<2x272xf32, #tpu.memory_space<vmem>>, vector<1x192xf32>
    %c1_237 = arith.constant 1 : index
    %c0_238 = arith.constant 0 : index
    %195 = vector.load %arg11[%c1_237, %c0_238] : memref<25x192xf32, #tpu.memory_space<vmem>>, vector<1x192xf32>
    tpu.vector_store %arg11[%c1_237, %c0_238], %194 {strides = array<i32>} : memref<25x192xf32, #tpu.memory_space<vmem>>, vector<1x192xf32>,
    %c1_239 = arith.constant 1 : index
    %c2_240 = arith.constant 2 : index
    %196 = vector.load %arg10[%c1_239, %c2_240] : memref<2x272xf32, #tpu.memory_space<vmem>>, vector<1x192xf32>
    %c2_241 = arith.constant 2 : index
    %c0_242 = arith.constant 0 : index
    %197 = vector.load %arg11[%c2_241, %c0_242] : memref<25x192xf32, #tpu.memory_space<vmem>>, vector<1x192xf32>
    tpu.vector_store %arg11[%c2_241, %c0_242], %196 {strides = array<i32>} : memref<25x192xf32, #tpu.memory_space<vmem>>, vector<1x192xf32>,
    %c1_243 = arith.constant 1 : index
    %c3_244 = arith.constant 3 : index
    %198 = vector.load %arg10[%c1_243, %c3_244] : memref<2x272xf32, #tpu.memory_space<vmem>>, vector<1x192xf32>
    %c3_245 = arith.constant 3 : index
    %c0_246 = arith.constant 0 : index
    %199 = vector.load %arg11[%c3_245, %c0_246] : memref<25x192xf32, #tpu.memory_space<vmem>>, vector<1x192xf32>
    tpu.vector_store %arg11[%c3_245, %c0_246], %198 {strides = array<i32>} : memref<25x192xf32, #tpu.memory_space<vmem>>, vector<1x192xf32>,
    %c1_247 = arith.constant 1 : index
    %c4_248 = arith.constant 4 : index
    %200 = vector.load %arg10[%c1_247, %c4_248] : memref<2x272xf32, #tpu.memory_space<vmem>>, vector<1x192xf32>
    %c4_249 = arith.constant 4 : index
    %c0_250 = arith.constant 0 : index
    %201 = vector.load %arg11[%c4_249, %c0_250] : memref<25x192xf32, #tpu.memory_space<vmem>>, vector<1x192xf32>
    tpu.vector_store %arg11[%c4_249, %c0_250], %200 {strides = array<i32>} : memref<25x192xf32, #tpu.memory_space<vmem>>, vector<1x192xf32>,
    %c1_251 = arith.constant 1 : index
    %c16_252 = arith.constant 16 : index
    %202 = vector.load %arg10[%c1_251, %c16_252] : memref<2x272xf32, #tpu.memory_space<vmem>>, vector<1x192xf32>
    %c5_253 = arith.constant 5 : index
    %c0_254 = arith.constant 0 : index
    %203 = vector.load %arg11[%c5_253, %c0_254] : memref<25x192xf32, #tpu.memory_space<vmem>>, vector<1x192xf32>
    tpu.vector_store %arg11[%c5_253, %c0_254], %202 {strides = array<i32>} : memref<25x192xf32, #tpu.memory_space<vmem>>, vector<1x192xf32>,
    %c1_255 = arith.constant 1 : index
    %c17_256 = arith.constant 17 : index
    %204 = vector.load %arg10[%c1_255, %c17_256] : memref<2x272xf32, #tpu.memory_space<vmem>>, vector<1x192xf32>
    %c6_257 = arith.constant 6 : index
    %c0_258 = arith.constant 0 : index
    %205 = vector.load %arg11[%c6_257, %c0_258] : memref<25x192xf32, #tpu.memory_space<vmem>>, vector<1x192xf32>
    tpu.vector_store %arg11[%c6_257, %c0_258], %204 {strides = array<i32>} : memref<25x192xf32, #tpu.memory_space<vmem>>, vector<1x192xf32>,
    %c1_259 = arith.constant 1 : index
    %c18_260 = arith.constant 18 : index
    %206 = vector.load %arg10[%c1_259, %c18_260] : memref<2x272xf32, #tpu.memory_space<vmem>>, vector<1x192xf32>
    %c7_261 = arith.constant 7 : index
    %c0_262 = arith.constant 0 : index
    %207 = vector.load %arg11[%c7_261, %c0_262] : memref<25x192xf32, #tpu.memory_space<vmem>>, vector<1x192xf32>
    tpu.vector_store %arg11[%c7_261, %c0_262], %206 {strides = array<i32>} : memref<25x192xf32, #tpu.memory_space<vmem>>, vector<1x192xf32>,
    %c1_263 = arith.constant 1 : index
    %c19_264 = arith.constant 19 : index
    %208 = vector.load %arg10[%c1_263, %c19_264] : memref<2x272xf32, #tpu.memory_space<vmem>>, vector<1x192xf32>
    %c8_265 = arith.constant 8 : index
    %c0_266 = arith.constant 0 : index
    %209 = vector.load %arg11[%c8_265, %c0_266] : memref<25x192xf32, #tpu.memory_space<vmem>>, vector<1x192xf32>
    tpu.vector_store %arg11[%c8_265, %c0_266], %208 {strides = array<i32>} : memref<25x192xf32, #tpu.memory_space<vmem>>, vector<1x192xf32>,
    %c1_267 = arith.constant 1 : index
    %c20_268 = arith.constant 20 : index
    %210 = vector.load %arg10[%c1_267, %c20_268] : memref<2x272xf32, #tpu.memory_space<vmem>>, vector<1x192xf32>
    %c9_269 = arith.constant 9 : index
    %c0_270 = arith.constant 0 : index
    %211 = vector.load %arg11[%c9_269, %c0_270] : memref<25x192xf32, #tpu.memory_space<vmem>>, vector<1x192xf32>
    tpu.vector_store %arg11[%c9_269, %c0_270], %210 {strides = array<i32>} : memref<25x192xf32, #tpu.memory_space<vmem>>, vector<1x192xf32>,
    %c1_271 = arith.constant 1 : index
    %c32_272 = arith.constant 32 : index
    %212 = vector.load %arg10[%c1_271, %c32_272] : memref<2x272xf32, #tpu.memory_space<vmem>>, vector<1x192xf32>
    %c10_273 = arith.constant 10 : index
    %c0_274 = arith.constant 0 : index
    %213 = vector.load %arg11[%c10_273, %c0_274] : memref<25x192xf32, #tpu.memory_space<vmem>>, vector<1x192xf32>
    tpu.vector_store %arg11[%c10_273, %c0_274], %212 {strides = array<i32>} : memref<25x192xf32, #tpu.memory_space<vmem>>, vector<1x192xf32>,
    %c1_275 = arith.constant 1 : index
    %c33_276 = arith.constant 33 : index
    %214 = vector.load %arg10[%c1_275, %c33_276] : memref<2x272xf32, #tpu.memory_space<vmem>>, vector<1x192xf32>
    %c11_277 = arith.constant 11 : index
    %c0_278 = arith.constant 0 : index
    %215 = vector.load %arg11[%c11_277, %c0_278] : memref<25x192xf32, #tpu.memory_space<vmem>>, vector<1x192xf32>
    tpu.vector_store %arg11[%c11_277, %c0_278], %214 {strides = array<i32>} : memref<25x192xf32, #tpu.memory_space<vmem>>, vector<1x192xf32>,
    %c1_279 = arith.constant 1 : index
    %c34_280 = arith.constant 34 : index
    %216 = vector.load %arg10[%c1_279, %c34_280] : memref<2x272xf32, #tpu.memory_space<vmem>>, vector<1x192xf32>
    %c12_281 = arith.constant 12 : index
    %c0_282 = arith.constant 0 : index
    %217 = vector.load %arg11[%c12_281, %c0_282] : memref<25x192xf32, #tpu.memory_space<vmem>>, vector<1x192xf32>
    tpu.vector_store %arg11[%c12_281, %c0_282], %216 {strides = array<i32>} : memref<25x192xf32, #tpu.memory_space<vmem>>, vector<1x192xf32>,
    %c1_283 = arith.constant 1 : index
    %c35_284 = arith.constant 35 : index
    %218 = vector.load %arg10[%c1_283, %c35_284] : memref<2x272xf32, #tpu.memory_space<vmem>>, vector<1x192xf32>
    %c13_285 = arith.constant 13 : index
    %c0_286 = arith.constant 0 : index
    %219 = vector.load %arg11[%c13_285, %c0_286] : memref<25x192xf32, #tpu.memory_space<vmem>>, vector<1x192xf32>
    tpu.vector_store %arg11[%c13_285, %c0_286], %218 {strides = array<i32>} : memref<25x192xf32, #tpu.memory_space<vmem>>, vector<1x192xf32>,
    %c1_287 = arith.constant 1 : index
    %c36_288 = arith.constant 36 : index
    %220 = vector.load %arg10[%c1_287, %c36_288] : memref<2x272xf32, #tpu.memory_space<vmem>>, vector<1x192xf32>
    %c14_289 = arith.constant 14 : index
    %c0_290 = arith.constant 0 : index
    %221 = vector.load %arg11[%c14_289, %c0_290] : memref<25x192xf32, #tpu.memory_space<vmem>>, vector<1x192xf32>
    tpu.vector_store %arg11[%c14_289, %c0_290], %220 {strides = array<i32>} : memref<25x192xf32, #tpu.memory_space<vmem>>, vector<1x192xf32>,
    %c1_291 = arith.constant 1 : index
    %c48_292 = arith.constant 48 : index
    %222 = vector.load %arg10[%c1_291, %c48_292] : memref<2x272xf32, #tpu.memory_space<vmem>>, vector<1x192xf32>
    %c15_293 = arith.constant 15 : index
    %c0_294 = arith.constant 0 : index
    %223 = vector.load %arg11[%c15_293, %c0_294] : memref<25x192xf32, #tpu.memory_space<vmem>>, vector<1x192xf32>
    tpu.vector_store %arg11[%c15_293, %c0_294], %222 {strides = array<i32>} : memref<25x192xf32, #tpu.memory_space<vmem>>, vector<1x192xf32>,
    %c1_295 = arith.constant 1 : index
    %c49_296 = arith.constant 49 : index
    %224 = vector.load %arg10[%c1_295, %c49_296] : memref<2x272xf32, #tpu.memory_space<vmem>>, vector<1x192xf32>
    %c16_297 = arith.constant 16 : index
    %c0_298 = arith.constant 0 : index
    %225 = vector.load %arg11[%c16_297, %c0_298] : memref<25x192xf32, #tpu.memory_space<vmem>>, vector<1x192xf32>
    tpu.vector_store %arg11[%c16_297, %c0_298], %224 {strides = array<i32>} : memref<25x192xf32, #tpu.memory_space<vmem>>, vector<1x192xf32>,
    %c1_299 = arith.constant 1 : index
    %c50_300 = arith.constant 50 : index
    %226 = vector.load %arg10[%c1_299, %c50_300] : memref<2x272xf32, #tpu.memory_space<vmem>>, vector<1x192xf32>
    %c17_301 = arith.constant 17 : index
    %c0_302 = arith.constant 0 : index
    %227 = vector.load %arg11[%c17_301, %c0_302] : memref<25x192xf32, #tpu.memory_space<vmem>>, vector<1x192xf32>
    tpu.vector_store %arg11[%c17_301, %c0_302], %226 {strides = array<i32>} : memref<25x192xf32, #tpu.memory_space<vmem>>, vector<1x192xf32>,
    %c1_303 = arith.constant 1 : index
    %c51_304 = arith.constant 51 : index
    %228 = vector.load %arg10[%c1_303, %c51_304] : memref<2x272xf32, #tpu.memory_space<vmem>>, vector<1x192xf32>
    %c18_305 = arith.constant 18 : index
    %c0_306 = arith.constant 0 : index
    %229 = vector.load %arg11[%c18_305, %c0_306] : memref<25x192xf32, #tpu.memory_space<vmem>>, vector<1x192xf32>
    tpu.vector_store %arg11[%c18_305, %c0_306], %228 {strides = array<i32>} : memref<25x192xf32, #tpu.memory_space<vmem>>, vector<1x192xf32>,
    %c1_307 = arith.constant 1 : index
    %c52_308 = arith.constant 52 : index
    %230 = vector.load %arg10[%c1_307, %c52_308] : memref<2x272xf32, #tpu.memory_space<vmem>>, vector<1x192xf32>
    %c19_309 = arith.constant 19 : index
    %c0_310 = arith.constant 0 : index
    %231 = vector.load %arg11[%c19_309, %c0_310] : memref<25x192xf32, #tpu.memory_space<vmem>>, vector<1x192xf32>
    tpu.vector_store %arg11[%c19_309, %c0_310], %230 {strides = array<i32>} : memref<25x192xf32, #tpu.memory_space<vmem>>, vector<1x192xf32>,
    %c1_311 = arith.constant 1 : index
    %c64_312 = arith.constant 64 : index
    %232 = vector.load %arg10[%c1_311, %c64_312] : memref<2x272xf32, #tpu.memory_space<vmem>>, vector<1x192xf32>
    %c20_313 = arith.constant 20 : index
    %c0_314 = arith.constant 0 : index
    %233 = vector.load %arg11[%c20_313, %c0_314] : memref<25x192xf32, #tpu.memory_space<vmem>>, vector<1x192xf32>
    tpu.vector_store %arg11[%c20_313, %c0_314], %232 {strides = array<i32>} : memref<25x192xf32, #tpu.memory_space<vmem>>, vector<1x192xf32>,
    %c1_315 = arith.constant 1 : index
    %c65_316 = arith.constant 65 : index
    %234 = vector.load %arg10[%c1_315, %c65_316] : memref<2x272xf32, #tpu.memory_space<vmem>>, vector<1x192xf32>
    %c21_317 = arith.constant 21 : index
    %c0_318 = arith.constant 0 : index
    %235 = vector.load %arg11[%c21_317, %c0_318] : memref<25x192xf32, #tpu.memory_space<vmem>>, vector<1x192xf32>
    tpu.vector_store %arg11[%c21_317, %c0_318], %234 {strides = array<i32>} : memref<25x192xf32, #tpu.memory_space<vmem>>, vector<1x192xf32>,
    %c1_319 = arith.constant 1 : index
    %c66_320 = arith.constant 66 : index
    %236 = vector.load %arg10[%c1_319, %c66_320] : memref<2x272xf32, #tpu.memory_space<vmem>>, vector<1x192xf32>
    %c22_321 = arith.constant 22 : index
    %c0_322 = arith.constant 0 : index
    %237 = vector.load %arg11[%c22_321, %c0_322] : memref<25x192xf32, #tpu.memory_space<vmem>>, vector<1x192xf32>
    tpu.vector_store %arg11[%c22_321, %c0_322], %236 {strides = array<i32>} : memref<25x192xf32, #tpu.memory_space<vmem>>, vector<1x192xf32>,
    %c1_323 = arith.constant 1 : index
    %c67_324 = arith.constant 67 : index
    %238 = vector.load %arg10[%c1_323, %c67_324] : memref<2x272xf32, #tpu.memory_space<vmem>>, vector<1x192xf32>
    %c23_325 = arith.constant 23 : index
    %c0_326 = arith.constant 0 : index
    %239 = vector.load %arg11[%c23_325, %c0_326] : memref<25x192xf32, #tpu.memory_space<vmem>>, vector<1x192xf32>
    tpu.vector_store %arg11[%c23_325, %c0_326], %238 {strides = array<i32>} : memref<25x192xf32, #tpu.memory_space<vmem>>, vector<1x192xf32>,
    %c1_327 = arith.constant 1 : index
    %c68_328 = arith.constant 68 : index
    %240 = vector.load %arg10[%c1_327, %c68_328] : memref<2x272xf32, #tpu.memory_space<vmem>>, vector<1x192xf32>
    %c24_329 = arith.constant 24 : index
    %c0_330 = arith.constant 0 : index
    %241 = vector.load %arg11[%c24_329, %c0_330] : memref<25x192xf32, #tpu.memory_space<vmem>>, vector<1x192xf32>
    tpu.vector_store %arg11[%c24_329, %c0_330], %240 {strides = array<i32>} : memref<25x192xf32, #tpu.memory_space<vmem>>, vector<1x192xf32>,
    %c0_331 = arith.constant 0 : index
    %c0_332 = arith.constant 0 : index
    %242 = vector.load %arg2[%c0_331, %c0_332] : memref<8x25xf32, #tpu.memory_space<vmem>>, vector<8x25xf32>
    %c0_333 = arith.constant 0 : index
    %c0_334 = arith.constant 0 : index
    %243 = vector.load %arg11[%c0_333, %c0_334] : memref<25x192xf32, #tpu.memory_space<vmem>>, vector<25x192xf32>
    %cst_335 = arith.constant dense<0.000000e+00> : vector<8x192xf32>
    %244 = tpu.matmul %242, %243, %cst_335 {dimension_numbers = #tpu.dot_dimension_numbers<[1], [0], [0], [1], [0, 0, 1, 1], [], []>} : vector<8x25xf32>, vector<25x192xf32>, vector<8x192xf32> -> vector<8x192xf32>
    %c0_336 = arith.constant 0 : index
    %c0_337 = arith.constant 0 : index
    %245 = vector.load %arg3[%c0_336, %c0_337] : memref<8x1xf32, #tpu.memory_space<vmem>>, vector<8x1xf32>
    %246 = vector.broadcast %245 : vector<8x1xf32> to vector<8x192xf32>
    %247 = arith.addf %244, %246 : vector<8x192xf32>
    %c0_338 = arith.constant 0 : index
    %c0_339 = arith.constant 0 : index
    %c0_340 = arith.constant 0 : index
    %248 = vector.load %arg4[%c0_338, %c0_339, %c0_340] : memref<4x192x36xf32, #tpu.memory_space<vmem>>, vector<1x192x36xf32>
    %249 = vector.shape_cast %248 : vector<1x192x36xf32> to vector<192x36xf32>
    %cst_341 = arith.constant dense<0.000000e+00> : vector<8x36xf32>
    %250 = tpu.matmul %247, %249, %cst_341 {dimension_numbers = #tpu.dot_dimension_numbers<[1], [0], [0], [1], [0, 0, 1, 1], [], []>} : vector<8x192xf32>, vector<192x36xf32>, vector<8x36xf32> -> vector<8x36xf32>
    %c1_342 = arith.constant 1 : index
    %c0_343 = arith.constant 0 : index
    %c0_344 = arith.constant 0 : index
    %251 = vector.load %arg4[%c1_342, %c0_343, %c0_344] : memref<4x192x36xf32, #tpu.memory_space<vmem>>, vector<1x192x36xf32>
    %252 = vector.shape_cast %251 : vector<1x192x36xf32> to vector<192x36xf32>
    %cst_345 = arith.constant dense<0.000000e+00> : vector<8x36xf32>
    %253 = tpu.matmul %247, %252, %cst_345 {dimension_numbers = #tpu.dot_dimension_numbers<[1], [0], [0], [1], [0, 0, 1, 1], [], []>} : vector<8x192xf32>, vector<192x36xf32>, vector<8x36xf32> -> vector<8x36xf32>
    %c2_346 = arith.constant 2 : index
    %c0_347 = arith.constant 0 : index
    %c0_348 = arith.constant 0 : index
    %254 = vector.load %arg4[%c2_346, %c0_347, %c0_348] : memref<4x192x36xf32, #tpu.memory_space<vmem>>, vector<1x192x36xf32>
    %255 = vector.shape_cast %254 : vector<1x192x36xf32> to vector<192x36xf32>
    %cst_349 = arith.constant dense<0.000000e+00> : vector<8x36xf32>
    %256 = tpu.matmul %247, %255, %cst_349 {dimension_numbers = #tpu.dot_dimension_numbers<[1], [0], [0], [1], [0, 0, 1, 1], [], []>} : vector<8x192xf32>, vector<192x36xf32>, vector<8x36xf32> -> vector<8x36xf32>
    %c3_350 = arith.constant 3 : index
    %c0_351 = arith.constant 0 : index
    %c0_352 = arith.constant 0 : index
    %257 = vector.load %arg4[%c3_350, %c0_351, %c0_352] : memref<4x192x36xf32, #tpu.memory_space<vmem>>, vector<1x192x36xf32>
    %258 = vector.shape_cast %257 : vector<1x192x36xf32> to vector<192x36xf32>
    %cst_353 = arith.constant dense<0.000000e+00> : vector<8x36xf32>
    %259 = tpu.matmul %247, %258, %cst_353 {dimension_numbers = #tpu.dot_dimension_numbers<[1], [0], [0], [1], [0, 0, 1, 1], [], []>} : vector<8x192xf32>, vector<192x36xf32>, vector<8x36xf32> -> vector<8x36xf32>
    %260 = arith.maximumf %250, %253 : vector<8x36xf32>
    %261 = arith.maximumf %256, %259 : vector<8x36xf32>
    %262 = arith.maximumf %260, %261 : vector<8x36xf32>
    %c0_354 = arith.constant 0 : index
    %c0_355 = arith.constant 0 : index
    %263 = vector.load %arg12[%c0_354, %c0_355] : memref<8x36xf32, #tpu.memory_space<vmem>>, vector<8x36xf32>
    tpu.vector_store %arg12[%c0_354, %c0_355], %262 {strides = array<i32>} : memref<8x36xf32, #tpu.memory_space<vmem>>, vector<8x36xf32>,
    %c0_356 = arith.constant 0 : index
    %c0_357 = arith.constant 0 : index
    %264 = vector.load %arg12[%c0_356, %c0_357] : memref<8x36xf32, #tpu.memory_space<vmem>>, vector<1x36xf32>
    %c0_358 = arith.constant 0 : index
    %c0_359 = arith.constant 0 : index
    %265 = vector.load %arg13[%c0_358, %c0_359] : memref<1x288xf32, #tpu.memory_space<vmem>>, vector<1x36xf32>
    tpu.vector_store %arg13[%c0_358, %c0_359], %264 {strides = array<i32>} : memref<1x288xf32, #tpu.memory_space<vmem>>, vector<1x36xf32>,
    %c1_360 = arith.constant 1 : index
    %c0_361 = arith.constant 0 : index
    %266 = vector.load %arg12[%c1_360, %c0_361] : memref<8x36xf32, #tpu.memory_space<vmem>>, vector<1x36xf32>
    %c0_362 = arith.constant 0 : index
    %c36_363 = arith.constant 36 : index
    %267 = vector.load %arg13[%c0_362, %c36_363] : memref<1x288xf32, #tpu.memory_space<vmem>>, vector<1x36xf32>
    tpu.vector_store %arg13[%c0_362, %c36_363], %266 {strides = array<i32>} : memref<1x288xf32, #tpu.memory_space<vmem>>, vector<1x36xf32>,
    %c2_364 = arith.constant 2 : index
    %c0_365 = arith.constant 0 : index
    %268 = vector.load %arg12[%c2_364, %c0_365] : memref<8x36xf32, #tpu.memory_space<vmem>>, vector<1x36xf32>
    %c0_366 = arith.constant 0 : index
    %c72_367 = arith.constant 72 : index
    %269 = vector.load %arg13[%c0_366, %c72_367] : memref<1x288xf32, #tpu.memory_space<vmem>>, vector<1x36xf32>
    tpu.vector_store %arg13[%c0_366, %c72_367], %268 {strides = array<i32>} : memref<1x288xf32, #tpu.memory_space<vmem>>, vector<1x36xf32>,
    %c3_368 = arith.constant 3 : index
    %c0_369 = arith.constant 0 : index
    %270 = vector.load %arg12[%c3_368, %c0_369] : memref<8x36xf32, #tpu.memory_space<vmem>>, vector<1x36xf32>
    %c0_370 = arith.constant 0 : index
    %c108_371 = arith.constant 108 : index
    %271 = vector.load %arg13[%c0_370, %c108_371] : memref<1x288xf32, #tpu.memory_space<vmem>>, vector<1x36xf32>
    tpu.vector_store %arg13[%c0_370, %c108_371], %270 {strides = array<i32>} : memref<1x288xf32, #tpu.memory_space<vmem>>, vector<1x36xf32>,
    %c4_372 = arith.constant 4 : index
    %c0_373 = arith.constant 0 : index
    %272 = vector.load %arg12[%c4_372, %c0_373] : memref<8x36xf32, #tpu.memory_space<vmem>>, vector<1x36xf32>
    %c0_374 = arith.constant 0 : index
    %c144_375 = arith.constant 144 : index
    %273 = vector.load %arg13[%c0_374, %c144_375] : memref<1x288xf32, #tpu.memory_space<vmem>>, vector<1x36xf32>
    tpu.vector_store %arg13[%c0_374, %c144_375], %272 {strides = array<i32>} : memref<1x288xf32, #tpu.memory_space<vmem>>, vector<1x36xf32>,
    %c5_376 = arith.constant 5 : index
    %c0_377 = arith.constant 0 : index
    %274 = vector.load %arg12[%c5_376, %c0_377] : memref<8x36xf32, #tpu.memory_space<vmem>>, vector<1x36xf32>
    %c0_378 = arith.constant 0 : index
    %c180_379 = arith.constant 180 : index
    %275 = vector.load %arg13[%c0_378, %c180_379] : memref<1x288xf32, #tpu.memory_space<vmem>>, vector<1x36xf32>
    tpu.vector_store %arg13[%c0_378, %c180_379], %274 {strides = array<i32>} : memref<1x288xf32, #tpu.memory_space<vmem>>, vector<1x36xf32>,
    %c6_380 = arith.constant 6 : index
    %c0_381 = arith.constant 0 : index
    %276 = vector.load %arg12[%c6_380, %c0_381] : memref<8x36xf32, #tpu.memory_space<vmem>>, vector<1x36xf32>
    %c0_382 = arith.constant 0 : index
    %c216_383 = arith.constant 216 : index
    %277 = vector.load %arg13[%c0_382, %c216_383] : memref<1x288xf32, #tpu.memory_space<vmem>>, vector<1x36xf32>
    tpu.vector_store %arg13[%c0_382, %c216_383], %276 {strides = array<i32>} : memref<1x288xf32, #tpu.memory_space<vmem>>, vector<1x36xf32>,
    %c7_384 = arith.constant 7 : index
    %c0_385 = arith.constant 0 : index
    %278 = vector.load %arg12[%c7_384, %c0_385] : memref<8x36xf32, #tpu.memory_space<vmem>>, vector<1x36xf32>
    %c0_386 = arith.constant 0 : index
    %c252_387 = arith.constant 252 : index
    %279 = vector.load %arg13[%c0_386, %c252_387] : memref<1x288xf32, #tpu.memory_space<vmem>>, vector<1x36xf32>
    tpu.vector_store %arg13[%c0_386, %c252_387], %278 {strides = array<i32>} : memref<1x288xf32, #tpu.memory_space<vmem>>, vector<1x36xf32>,
    %c0_388 = arith.constant 0 : index
    %c0_389 = arith.constant 0 : index
    %280 = vector.load %arg13[%c0_388, %c0_389] : memref<1x288xf32, #tpu.memory_space<vmem>>, vector<1x288xf32>
    %281 = vector.broadcast %280 : vector<1x288xf32> to vector<288x288xf32>
    %282 = arith.mulf %55, %281 : vector<288x288xf32>
    %cst_390 = arith.constant dense<0.000000e+00> : vector<288xf32>
    %283 = vector.multi_reduction <add>, %282, %cst_390 [1] : vector<288x288xf32> to vector<288xf32>
    %284 = vector.shape_cast %283 : vector<288xf32> to vector<288x1xf32>
    %285 = vector.broadcast %284 : vector<288x1xf32> to vector<288x288xf32>
    %286 = vector.broadcast %280 : vector<1x288xf32> to vector<288x288xf32>
    %287 = arith.cmpf ogt, %285, %286 : vector<288x288xf32>
    %cst_391 = arith.constant 1.000000e+00 : f32
    %cst_392 = arith.constant 0.000000e+00 : f32
    %288 = vector.broadcast %cst_391 : f32 to vector<288x288xf32>
    %289 = vector.broadcast %cst_392 : f32 to vector<288x288xf32>
    %290 = arith.select %287, %288, %289 : vector<288x288xi1>, vector<288x288xf32>
    %cst_393 = arith.constant dense<0.000000e+00> : vector<1x288xf32>
    %291 = tpu.matmul %62, %290, %cst_393 {dimension_numbers = #tpu.dot_dimension_numbers<[1], [0], [0], [1], [0, 0, 1, 1], [], []>} : vector<1x288xf32>, vector<288x288xf32>, vector<1x288xf32> -> vector<1x288xf32>
    %cst_394 = arith.constant 4.800000e+01 : f32
    %292 = vector.broadcast %cst_394 : f32 to vector<1x288xf32>
    %293 = arith.cmpf olt, %291, %292 : vector<1x288xf32>
    %cst_395 = arith.constant 0.000000e+00 : f32
    %294 = vector.broadcast %cst_395 : f32 to vector<1x288xf32>
    %295 = arith.select %293, %280, %294 : vector<1x288xi1>, vector<1x288xf32>
    %c0_396 = arith.constant 0 : index
    %c0_397 = arith.constant 0 : index
    %296 = vector.load %arg5[%c0_396, %c0_397] : memref<288x64xf32, #tpu.memory_space<vmem>>, vector<288x64xf32>
    %cst_398 = arith.constant dense<0.000000e+00> : vector<1x64xf32>
    %297 = tpu.matmul %295, %296, %cst_398 {dimension_numbers = #tpu.dot_dimension_numbers<[1], [0], [0], [1], [0, 0, 1, 1], [], []>} : vector<1x288xf32>, vector<288x64xf32>, vector<1x64xf32> -> vector<1x64xf32>
    %c0_399 = arith.constant 0 : index
    %c0_400 = arith.constant 0 : index
    %298 = vector.load %arg6[%c0_399, %c0_400] : memref<1x64xf32, #tpu.memory_space<vmem>>, vector<1x64xf32>
    %299 = arith.addf %297, %298 : vector<1x64xf32>
    %300 = vector.broadcast %299 : vector<1x64xf32> to vector<64x64xf32>
    %301 = arith.mulf %61, %300 : vector<64x64xf32>
    %cst_401 = arith.constant dense<0.000000e+00> : vector<64xf32>
    %302 = vector.multi_reduction <add>, %301, %cst_401 [1] : vector<64x64xf32> to vector<64xf32>
    %303 = vector.shape_cast %302 : vector<64xf32> to vector<64x1xf32>
    %304 = vector.broadcast %303 : vector<64x1xf32> to vector<64x64xf32>
    %305 = vector.broadcast %299 : vector<1x64xf32> to vector<64x64xf32>
    %306 = arith.cmpf ogt, %304, %305 : vector<64x64xf32>
    %cst_402 = arith.constant 1.000000e+00 : f32
    %cst_403 = arith.constant 0.000000e+00 : f32
    %307 = vector.broadcast %cst_402 : f32 to vector<64x64xf32>
    %308 = vector.broadcast %cst_403 : f32 to vector<64x64xf32>
    %309 = arith.select %306, %307, %308 : vector<64x64xi1>, vector<64x64xf32>
    %cst_404 = arith.constant dense<0.000000e+00> : vector<1x64xf32>
    %310 = tpu.matmul %63, %309, %cst_404 {dimension_numbers = #tpu.dot_dimension_numbers<[1], [0], [0], [1], [0, 0, 1, 1], [], []>} : vector<1x64xf32>, vector<64x64xf32>, vector<1x64xf32> -> vector<1x64xf32>
    %cst_405 = arith.constant 1.200000e+01 : f32
    %311 = vector.broadcast %cst_405 : f32 to vector<1x64xf32>
    %312 = arith.cmpf olt, %310, %311 : vector<1x64xf32>
    %cst_406 = arith.constant 0.000000e+00 : f32
    %313 = vector.broadcast %cst_406 : f32 to vector<1x64xf32>
    %314 = arith.select %312, %299, %313 : vector<1x64xi1>, vector<1x64xf32>
    %c0_407 = arith.constant 0 : index
    %c0_408 = arith.constant 0 : index
    %315 = vector.load %arg7[%c0_407, %c0_408] : memref<64x10xf32, #tpu.memory_space<vmem>>, vector<64x10xf32>
    %cst_409 = arith.constant dense<0.000000e+00> : vector<1x10xf32>
    %316 = tpu.matmul %314, %315, %cst_409 {dimension_numbers = #tpu.dot_dimension_numbers<[1], [0], [0], [1], [0, 0, 1, 1], [], []>} : vector<1x64xf32>, vector<64x10xf32>, vector<1x10xf32> -> vector<1x10xf32>
    %c0_410 = arith.constant 0 : index
    %c0_411 = arith.constant 0 : index
    %317 = vector.load %arg8[%c0_410, %c0_411] : memref<1x10xf32, #tpu.memory_space<vmem>>, vector<1x10xf32>
    %318 = arith.addf %316, %317 : vector<1x10xf32>
    %c1_412 = arith.constant 1 : index
    %c0_413 = arith.constant 0 : index
    %319 = vector.load %arg9[%c1_412, %c0_413] : memref<2x10xf32, #tpu.memory_space<vmem>>, vector<1x10xf32>
    tpu.vector_store %arg9[%c1_412, %c0_413], %318 {strides = array<i32>} : memref<2x10xf32, #tpu.memory_space<vmem>>, vector<1x10xf32>,
    return
  }
  func.func @transform_0(%arg0: i32) -> (i32, i32, i32, i32) {
    %c0_i32 = arith.constant 0 : i32
    %c0_i32_0 = arith.constant 0 : i32
    %c0_i32_1 = arith.constant 0 : i32
    %c0_i32_2 = arith.constant 0 : i32
    %c0_i32_3 = arith.constant 0 : i32
    return %c0_i32, %c0_i32_0, %c0_i32_1, %c0_i32_2 : i32, i32, i32, i32
  }
  func.func @transform_1(%arg0: i32) -> (i32, i32) {
    %c0_i32 = arith.constant 0 : i32
    %c0_i32_0 = arith.constant 0 : i32
    %c0_i32_1 = arith.constant 0 : i32
    return %c0_i32, %c0_i32_0 : i32, i32
  }
  func.func @transform_2(%arg0: i32) -> (i32, i32) {
    %c0_i32 = arith.constant 0 : i32
    %c0_i32_0 = arith.constant 0 : i32
    %c0_i32_1 = arith.constant 0 : i32
    return %c0_i32, %c0_i32_0 : i32, i32
  }
  func.func @transform_3(%arg0: i32) -> (i32, i32, i32) {
    %c0_i32 = arith.constant 0 : i32
    %c0_i32_0 = arith.constant 0 : i32
    %c0_i32_1 = arith.constant 0 : i32
    %c0_i32_2 = arith.constant 0 : i32
    return %c0_i32, %c0_i32_0, %c0_i32_1 : i32, i32, i32
  }
  func.func @transform_4(%arg0: i32) -> (i32, i32) {
    %c0_i32 = arith.constant 0 : i32
    %c0_i32_0 = arith.constant 0 : i32
    %c0_i32_1 = arith.constant 0 : i32
    return %c0_i32, %c0_i32_0 : i32, i32
  }
  func.func @transform_5(%arg0: i32) -> (i32, i32) {
    %c0_i32 = arith.constant 0 : i32
    %c0_i32_0 = arith.constant 0 : i32
    %c0_i32_1 = arith.constant 0 : i32
    return %c0_i32, %c0_i32_0 : i32, i32
  }
  func.func @transform_6(%arg0: i32) -> (i32, i32) {
    %c0_i32 = arith.constant 0 : i32
    %c0_i32_0 = arith.constant 0 : i32
    %c0_i32_1 = arith.constant 0 : i32
    return %c0_i32, %c0_i32_0 : i32, i32
  }
  func.func @transform_7(%arg0: i32) -> (i32, i32) {
    %c0_i32 = arith.constant 0 : i32
    %c0_i32_0 = arith.constant 0 : i32
    %c0_i32_1 = arith.constant 0 : i32
    return %c0_i32, %c0_i32_0 : i32, i32
  }
  func.func @transform_8(%arg0: i32) -> (i32, i32) {
    %c0_i32 = arith.constant 0 : i32
    %c0_i32_0 = arith.constant 0 : i32
    %c0_i32_1 = arith.constant 0 : i32
    return %c0_i32, %c0_i32_0 : i32, i32
  }
}

</mosaic_0001>

<bundles_post_ra>
// kernel: sparse_net_forward.1
= control target key start
LH: loop header
LB: loop body
LE: loop exit
PB: predicated region body
PF: predicated region fallthrough
CT: control target
= control target key end

     0   :  { %13 = vsyncpa [#allocation7], 0  ;;  %s8709_s0 = inlined_call_operand.vmem [shape: f32[2,1,16,16], index: 0, kind: input, shape index: {}]   ;;  %s8710_s1 = inlined_call_operand.vmem [shape: f32[8,25], index: 1, kind: input, shape index: {}]   ;;  %s8711_s2 = inlined_call_operand.vmem [shape: f32[8,1], index: 2, kind: input, shape index: {}]   ;;  %s8712_s3 = inlined_call_operand.hbm [shape: f32[4,192,36], index: 3, kind: input, shape index: {}]   ;;  %s8713_s4 = inlined_call_operand.vmem [shape: f32[288,64], index: 4, kind: input, shape index: {}]   ;;  %s8714_s5 = inlined_call_operand.vmem [shape: f32[1,64], index: 5, kind: input, shape index: {}]   ;;  %s8715_s6 = inlined_call_operand.vmem [shape: f32[64,10], index: 6, kind: input, shape index: {}]   ;;  %s8716_s7 = inlined_call_operand.vmem [shape: f32[1,10], index: 7, kind: input, shape index: {}]   ;;  %s8717_s8 = inlined_call_operand.hbm [shape: f32[2,10], index: 8, kind: output, shape index: {}]  }
   0x1   :  { %14 = vsyncpa [#allocation8], 0  ;;  %s6334_s27 = smov [#allocation6]   ;;  %s6286_s9 = scalar_lea.hbm %s8712_s3, 12288 }
   0x2   :  { %s26_s28 = sshll.u32 %s6334_s27, 4  ;;  %p6287_p0 = scmp.ne.s32.totalorder %s8712_s3, %s6286_s9  ;;  %s27_s28 = int_to_ptr.vmem [resolvable:$true] %s26_s28 }
   0x3   :  { %p6290_p1 = scmp.lt.u32.totalorder %s6286_s9, %s8712_s3 }
   0x5   :  { %p6292_p2 = pnand %p6290_p1, %p6287_p0 }
   0x7   :  { %6295 = shalt.err (!%p6292_p2)
}
   0x8   :  { %s6296_s14 = scalar_lea.vmem %s27_s28, 12288  ;;  %p6301_p4 = scmp.lt.s32.totalorder %s27_s28, %s27_s28 }
   0x9   :  { %p6297_p3 = scmp.ne.s32.totalorder %s27_s28, %s6296_s14  ;;  %p6302_p5 = scmp.lt.s32.totalorder %s6296_s14, %s6296_s14 }
   0xb   :  { %p6303_p6 = por %p6302_p5, %p6301_p4 }
   0xd   :  { %p6304_p7 = pnand %p6303_p6, %p6297_p3 }
   0xf   :  { %6307 = shalt.err (!%p6304_p7)
}
  0x10   :  { %s6335_s15 = smov 128   ;;  %s6336_s16 = smov 8  }
  0x11   :  { %32 = dma.hbm_to_vmem [thread:$0]  %s8712_s3, 12288, %s27_s28, [#allocation7], %s6335_s15, %s6335_s15, %s6336_s16  }
  0x12   :  { %6330 = dma.done.wait [#allocation7], 12288  }
  0x13   :  { %6331 = vsyncadd [#allocation7], 4294955008  ;;  %vm44_vm0 = vcmask 1041408   ;;  %vm45_vm1 = vcmask 1043458   ;;  %vm47_vm2 = vcmask 128004   ;;  %v8766_v0 = vmov 0.0  }
  0x14   :  { %vm46_vm3 = vmor %vm45_vm1, %vm44_vm0  ;;  %1142 = vmatprep.mubr.f32.mxu0 %v8766_v0  ;;  %v4967_v1 = vld.sshfl [vmem:[%s8709_s0 + $0x2] sm:$0x1 pattern:$0x76325410]  ;;  %vm73_vm5 = vcmask 1041409   ;;  %vm75_vm6 = vcmask 1043459  }
  0x15   :  { %vm48_vm4 = vmor %vm47_vm2, %vm46_vm3  ;;  %v4968_v2 = vld.sshfl [vmem:[%s8709_s0 + $0x12] sm:$0x1 pattern:$0x76325410]  ;;  %vm77_vm7 = vcmask 1045509   ;;  %vm79_vm8 = vcmask 1047559  }
  0x16   :  { %49 = vst.msk [vmem:[#allocation2] sm:$0x3f] %vm48_vm4, %v8766_v0  ;;  %v134_v3 = vrot.slane %v4968_v2, 7  ;;  %s6338_s12 = smov 32   ;;  %s6339_s17 = smov 16   ;;  %vm82_vm9 = vcmask 123904  }
  0x17   :  { %v4965_v4 = vld.sshfl [vmem:[%s8709_s0 + $0x1] sm:$0x1 pattern:$0x76325410]  ;;  %s6340_s29 = smov 48   ;;  %s8719_s16 = smov 64  }
  0x18   :  { %v4966_v5 = vld.sshfl [vmem:[%s8709_s0 + $0x11] sm:$0x1 pattern:$0x76325410]  ;;  %v135_v6 = vsel %vm73_vm5, %v134_v3, %v4967_v1  ;;  %s6342_s25 = smov 80   ;;  %s6344_s3 = smov 112  }
  0x19   :  { %v104_v7 = vrot.slane %v4966_v5, 7  ;;  %v4983_v8 = vld.sshfl [vmem:[%s8709_s0 + $0xa] sm:$0x1 pattern:$0x76325410]  ;;  %v136_v9 = vsel %vm75_vm6, %v134_v3, %v135_v6  ;;  %vm112_vm10 = vcmask 255104  }
  0x1a   :  { %v4984_v10 = vld.sshfl [vmem:[%s8709_s0 + $0x1a] sm:$0x1 pattern:$0x76325410]  ;;  %v137_v11 = vsel %vm77_vm7, %v134_v3, %v136_v9  ;;  %vm142_vm11 = vcmask 386304   ;;  %vm172_vm12 = vcmask 517504  }
  0x1b   :  { %v105_v12 = vsel %vm73_vm5, %v104_v7, %v4965_v4  ;;  %v370_v13 = vrot.slane %v4984_v10, 7  ;;  %v4981_v14 = vld.sshfl [vmem:[%s8709_s0 + $0x9] sm:$0x1 pattern:$0x76325410]  ;;  %v138_v15 = vsel %vm79_vm8, %v134_v3, %v137_v11  ;;  %vm202_vm13 = vcmask 648704  }
  0x1c   :  { %v106_v16 = vsel %vm75_vm6, %v104_v7, %v105_v12  ;;  %v4982_v17 = vld.sshfl [vmem:[%s8709_s0 + $0x19] sm:$0x1 pattern:$0x76325410]  ;;  %139 = vrot.lane.b32.xlu1 %v138_v15, %s6338_s12  ;;  %vm232_vm14 = vcmask 779904   ;;  %vm262_vm15 = vcmask 911104  }
  0x1d   :  { %v107_v18 = vsel %vm77_vm7, %v104_v7, %v106_v16  ;;  %v371_v19 = vsel %vm73_vm5, %v370_v13, %v4983_v8  ;;  %v341_v20 = vrot.slane %v4982_v17, 7  ;;  %v4985_v21 = vld.sshfl [vmem:[%s8709_s0 + $0xb] sm:$0x1 pattern:$0x76325410]  ;;  %vm292_vm0 = vcmask 1042304  }
  0x1e   :  { %v108_v22 = vsel %vm79_vm8, %v104_v7, %v107_v18  ;;  %v372_v23 = vsel %vm75_vm6, %v370_v13, %v371_v19  ;;  %v4986_v24 = vld.sshfl [vmem:[%s8709_s0 + $0x1b] sm:$0x1 pattern:$0x76325410]  ;;  %s6346_s23 = smov 127   ;;  %s6347_s24 = smov 124  }
  0x1f   :  { %109 = vrot.lane.b32.xlu0 %v108_v22, %s6339_s17  ;;  %v373_v25 = vsel %vm77_vm7, %v370_v13, %v372_v23  ;;  %v342_v26 = vsel %vm73_vm5, %v341_v20, %v4981_v14  ;;  %v399_v27 = vrot.slane %v4986_v24, 7  ;;  %v4969_v28 = vld.sshfl [vmem:[%s8709_s0 + $0x3] sm:$0x1 pattern:$0x76325410]  ;;  %s6348_s26 = smov 125  }
  0x20   :  { %v374_v29 = vsel %vm79_vm8, %v370_v13, %v373_v25  ;;  %v343_v30 = vsel %vm75_vm6, %v341_v20, %v342_v26  ;;  %v4970_v31 = vld.sshfl [vmem:[%s8709_s0 + $0x13] sm:$0x1 pattern:$0x76325410]  ;;  %s6349_s27 = smov 111   ;;  %s6350_s28 = smov 109  }
  0x21   :  { %375 = vrot.lane.b32.xlu1 %v374_v29, %s6338_s12  ;;  %v344_v32 = vsel %vm77_vm7, %v341_v20, %v343_v30  ;;  %v400_v33 = vsel %vm73_vm5, %v399_v27, %v4985_v21  ;;  %v164_v34 = vrot.slane %v4970_v31, 7  ;;  %v4987_v35 = vld.sshfl [vmem:[%s8709_s0 + $0xc] sm:$0x1 pattern:$0x76325410]  ;;  %s6343_s12 = smov 96  }
  0x22   :  { %v345_v36 = vsel %vm79_vm8, %v341_v20, %v344_v32  ;;  %v401_v37 = vsel %vm75_vm6, %v399_v27, %v400_v33  ;;  %v4988_v38 = vld.sshfl [vmem:[%s8709_s0 + $0x1c] sm:$0x1 pattern:$0x76325410]  ;;  %s6352_s30 = smov 108   ;;  %s6353_s9 = smov 94  }
  0x23   :  { %346 = vrot.lane.b32.xlu0 %v345_v36, %s6339_s17  ;;  %v402_v39 = vsel %vm77_vm7, %v399_v27, %v401_v37  ;;  %v165_v40 = vsel %vm73_vm5, %v164_v34, %v4969_v28  ;;  %v428_v41 = vrot.slane %v4988_v38, 7  ;;  %v4971_v42 = vld.sshfl [vmem:[%s8709_s0 + $0x4] sm:$0x1 pattern:$0x76325410]  ;;  %s6354_s10 = smov 95  }
  0x24   :  { %v403_v43 = vsel %vm79_vm8, %v399_v27, %v402_v39  ;;  %v166_v44 = vsel %vm75_vm6, %v164_v34, %v165_v40  ;;  %v4972_v45 = vld.sshfl [vmem:[%s8709_s0 + $0x14] sm:$0x1 pattern:$0x76325410]  ;;  %s6355_s11 = smov 92   ;;  %s6356_s13 = smov 93  }
  0x25   :  { %404 = vrot.lane.b32.xlu1 %v403_v43, %s6340_s29  ;;  %v167_v46 = vsel %vm77_vm7, %v164_v34, %v166_v44  ;;  %v429_v47 = vsel %vm73_vm5, %v428_v41, %v4987_v35  ;;  %v194_v48 = vrot.slane %v4972_v45, 7  ;;  %v4989_v49 = vld.sshfl [vmem:[%s8709_s0 + $0xd] sm:$0x1 pattern:$0x76325410]  ;;  %s6357_s14 = smov 79  }
  0x26   :  { %v168_v50 = vsel %vm79_vm8, %v164_v34, %v167_v46  ;;  %v430_v51 = vsel %vm75_vm6, %v428_v41, %v429_v47  ;;  %v4990_v52 = vld.sshfl [vmem:[%s8709_s0 + $0x1d] sm:$0x1 pattern:$0x76325410]  ;;  %s8720_s15 = smov 77   ;;  %s8718_s18 = smov 78  }
  0x27   :  { %169 = vrot.lane.b32.xlu0 %v168_v50, %s6340_s29  ;;  %v431_v53 = vsel %vm77_vm7, %v428_v41, %v430_v51  ;;  %v195_v54 = vsel %vm73_vm5, %v194_v48, %v4971_v42  ;;  %v457_v55 = vrot.slane %v4990_v52, 7  ;;  %v4973_v56 = vld.sshfl [vmem:[%s8709_s0 + $0x5] sm:$0x1 pattern:$0x76325410]  ;;  %s6351_s29 = smov 110  }
  0x28   :  { %v432_v57 = vsel %vm79_vm8, %v428_v41, %v431_v53  ;;  %v196_v58 = vsel %vm75_vm6, %v194_v48, %v195_v54  ;;  %v4974_v59 = vld.sshfl [vmem:[%s8709_s0 + $0x15] sm:$0x1 pattern:$0x76325410]  ;;  %s6360_s19 = smov 76   ;;  %s6361_s20 = smov 62  }
  0x29   :  { %433 = vrot.lane.b32.xlu1 %v432_v57, %s8719_s16  ;;  %v197_v60 = vsel %vm77_vm7, %v194_v48, %v196_v58  ;;  %v458_v61 = vsel %vm73_vm5, %v457_v55, %v4989_v49  ;;  %v224_v62 = vrot.slane %v4974_v59, 7  ;;  %v4991_v63 = vld.sshfl [vmem:[%s8709_s0 + $0xe] sm:$0x1 pattern:$0x76325410]  ;;  %s6362_s21 = smov 63  }
  0x2a   :  { %v198_v1 = vsel %vm79_vm8, %v194_v48, %v197_v60  ;;  %v459_v2 = vsel %vm75_vm6, %v457_v55, %v458_v61  ;;  %v4992_v3 = vld.sshfl [vmem:[%s8709_s0 + $0x1e] sm:$0x1 pattern:$0x76325410]  ;;  %s6363_s22 = smov 60   ;;  %vm8745_vm2 = vcmask 1031168  }
  0x2b   :  { %199 = vrot.lane.b32.xlu0 %v198_v1, %s8719_s16  ;;  %v460_v4 = vsel %vm77_vm7, %v457_v55, %v459_v2  ;;  %v225_v5 = vsel %vm73_vm5, %v224_v62, %v4973_v56  ;;  %v486_v6 = vrot.slane %v4992_v3, 7  ;;  %v4975_v7 = vld.sshfl [vmem:[%s8709_s0 + $0x6] sm:$0x1 pattern:$0x76325410]  ;;  %vm8746_vm3 = vcmask 1039360  }
  0x2c   :  { %v461_v8 = vsel %vm79_vm8, %v457_v55, %v460_v4  ;;  %v226_v9 = vsel %vm75_vm6, %v224_v62, %v225_v5  ;;  %v4976_v10 = vld.sshfl [vmem:[%s8709_s0 + $0x16] sm:$0x1 pattern:$0x76325410]  ;;  %v524_v5 = vlaneseq  ;;  %vm8747_vm4 = vcmask 1014784  }
  0x2d   :  { %462 = vrot.lane.b32.xlu1 %v461_v8, %s6342_s25  ;;  %v227_v11 = vsel %vm77_vm7, %v224_v62, %v226_v9  ;;  %v487_v12 = vsel %vm73_vm5, %v486_v6, %v4991_v63  ;;  %v254_v13 = vrot.slane %v4976_v10, 7  ;;  %v4993_v14 = vld.sshfl [vmem:[%s8709_s0 + $0xf] sm:$0x1 pattern:$0x76325410]  ;;  %v8803_v8 = vmov 0 }
  0x2e   :  { %v228_v15 = vsel %vm79_vm8, %v224_v62, %v227_v11  ;;  %v488_v16 = vsel %vm75_vm6, %v486_v6, %v487_v12  ;;  %v4994_v17 = vld.sshfl [vmem:[%s8709_s0 + $0x1f] sm:$0x1 pattern:$0x76325410]  ;;  %vm6613_vm1 = vcmp.lt.s32.totalorder %v524_v5, 192 }
  0x2f   :  { %229 = vrot.lane.b32.xlu0 %v228_v15, %s6342_s25  ;;  %v489_v18 = vsel %vm77_vm7, %v486_v6, %v488_v16  ;;  %v255_v19 = vsel %vm73_vm5, %v254_v13, %v4975_v7  ;;  %v515_v20 = vrot.slane %v4994_v17, 7  ;;  %v4977_v21 = vld.sshfl [vmem:[%s8709_s0 + $0x7] sm:$0x1 pattern:$0x76325410]  ;;  %v8804_v8 = vsel %vm6613_vm1, 4294967295, %v8803_v8 }
  0x30   :  { %v490_v22 = vsel %vm79_vm8, %v486_v6, %v489_v18  ;;  %v256_v23 = vsel %vm75_vm6, %v254_v13, %v255_v19  ;;  %v4978_v24 = vld.sshfl [vmem:[%s8709_s0 + $0x17] sm:$0x1 pattern:$0x76325410] }
  0x31   :  { %491 = vrot.lane.b32.xlu1 %v490_v22, %s6343_s12  ;;  %v257_v25 = vsel %vm77_vm7, %v254_v13, %v256_v23  ;;  %v516_v26 = vsel %vm73_vm5, %v515_v20, %v4993_v14  ;;  %v284_v27 = vrot.slane %v4978_v24, 7  ;;  %v4963_v28 = vld.sshfl [vmem:[%s8709_s0] sm:$0x1 pattern:$0x76325410] }
  0x32   :  { %v258_v29 = vsel %vm79_vm8, %v254_v13, %v257_v25  ;;  %v517_v30 = vsel %vm75_vm6, %v515_v20, %v516_v26  ;;  %v4964_v31 = vld.sshfl [vmem:[%s8709_s0 + $0x10] sm:$0x1 pattern:$0x76325410] }
  0x33   :  { %259 = vrot.lane.b32.xlu0 %v258_v29, %s6343_s12  ;;  %v518_v32 = vsel %vm77_vm7, %v515_v20, %v517_v30  ;;  %v285_v33 = vsel %vm73_vm5, %v284_v27, %v4977_v21  ;;  %v72_v34 = vrot.slane %v4964_v31, 7  ;;  %v4979_v35 = vld.sshfl [vmem:[%s8709_s0 + $0x8] sm:$0x1 pattern:$0x76325410]  ;;  %v1149_v29 = vld [vmem:[#allocation6] sm:$0xff] }
  0x34   :  { %v519_v36 = vsel %vm79_vm8, %v515_v20, %v518_v32  ;;  %v286_v37 = vsel %vm75_vm6, %v284_v27, %v285_v33  ;;  %v4980_v38 = vld.sshfl [vmem:[%s8709_s0 + $0x18] sm:$0x1 pattern:$0x76325410]  ;;  %s6345_s0 = smov 126   ;;  %v1150_v30 = vld [vmem:[#allocation6 + $0x8] sm:$0xff] }
  0x35   :  { %520 = vrot.lane.b32.xlu1 %v519_v36, %s6344_s3  ;;  %v287_v39 = vsel %vm77_vm7, %v284_v27, %v286_v37  ;;  %v74_v40 = vsel %vm73_vm5, %v72_v34, %v4963_v28  ;;  %v314_v41 = vrot.slane %v4980_v38, 7  ;;  %v1061_v28 = vld [vmem:[%s8711_s2] sm:$0xff]  ;;  %v6365_v31 = vmov 0   ;;  %v1153_v37 = vld [vmem:[#allocation6 + $0x20] sm:$0xff] }
  0x36   :  { %v288_v42 = vsel %vm79_vm8, %v284_v27, %v287_v39  ;;  %v76_v43 = vsel %vm75_vm6, %v72_v34, %v74_v40  ;;  %6284 = vset.pattern.permute.xlu0 %v6365_v31  ;;  %v8764_v32 = vmov 0.0|0.0   ;;  %v5596_v33 = vpack.c.bf16 %v1150_v30, %v1149_v29  ;;  %6285 = vset.pattern.permute.xlu1 %v6365_v31  ;;  %v1154_v38 = vld [vmem:[#allocation6 + $0x28] sm:$0xff]  ;;  %v1155_v40 = vld [vmem:[#allocation6 + $0x30] sm:$0xff] }
  0x37   :  { %289 = vrot.lane.b32.xlu0 %v288_v42, %s6344_s3  ;;  %v78_v44 = vsel %vm77_vm7, %v72_v34, %v76_v43  ;;  %v315_v45 = vsel %vm73_vm5, %v314_v41, %v4979_v35  ;;  %5595 = vmatprep.subr.bf16.mxu1 %v8764_v32  ;;  %v1152_v35 = vld [vmem:[#allocation6 + $0x18] sm:$0xff]  ;;  %v5602_v39 = vpack.c.bf16 %v1154_v38, %v1153_v37  ;;  %v1157_v43 = vld [vmem:[#allocation6 + $0x40] sm:$0xff]  ;;  %vm8744_vm5 = vcmask 1022976  }
  0x38   :  { %v80_v46 = vsel %vm79_vm8, %v72_v34, %v78_v44  ;;  %v316_v47 = vsel %vm75_vm6, %v314_v41, %v315_v45  ;;  %v1151_v34 = vld [vmem:[#allocation6 + $0x10] sm:$0xff]  ;;  %5597 = vmatpush1.bf16.msra.mxu1 %v5596_v33  ;;  %v1158_v44 = vld [vmem:[#allocation6 + $0x48] sm:$0xff]  ;;  %vm8743_vm6 = vcmask 908288  }
  0x39   :  { %83 = vst.msk [vmem:[#allocation2] sm:$0x3] %vm82_vm9, %v80_v46  ;;  %v317_v48 = vsel %vm77_vm7, %v314_v41, %v316_v47  ;;  %v5599_v36 = vpack.c.bf16 %v1152_v35, %v1151_v34  ;;  %5598 = vmatprep.subr.bf16.mxu1 %v8764_v32  ;;  %v5608_v45 = vpack.c.bf16 %v1158_v44, %v1157_v43  ;;  %v1159_v46 = vld [vmem:[#allocation6 + $0x50] sm:$0xff]  ;;  %v1160_v47 = vld [vmem:[#allocation6 + $0x58] sm:$0xff]  ;;  %vm8742_vm7 = vcmask 916480  }
  0x3a   :  { %v318_v49 = vsel %vm79_vm8, %v314_v41, %v317_v48  ;;  %v1156_v41 = vld [vmem:[#allocation6 + $0x38] sm:$0xff]  ;;  %v5611_v48 = vpack.c.bf16 %v1160_v47, %v1159_v46  ;;  %vm8741_vm8 = vcmask 891904  }
  0x3b   :  { %320 = vst.msk [vmem:[#allocation2 + $0x2] sm:$0x3] %vm82_vm9, %v318_v49  ;;  %v5605_v42 = vpack.c.bf16 %v1156_v41, %v1155_v40  ;;  %v1161_v49 = vld [vmem:[#allocation6 + $0x60] sm:$0xff]  ;;  %vm8740_vm9 = vcmask 900096  }
  0x3c   :  { %5600 = vmatpush1.bf16.msra.mxu1 %v5599_v36 }
  0x3d   :  { %5601 = vmatprep.subr.bf16.mxu1 %v8764_v32 }
  0x40   :  { %5603 = vmatpush1.bf16.msra.mxu1 %v5602_v39 }
  0x41   :  { %5604 = vmatprep.subr.bf16.mxu1 %v8764_v32 }
  0x44   :  { %5606 = vmatpush1.bf16.msra.mxu1 %v5605_v42 }
  0x45   :  { %5607 = vmatprep.subr.bf16.mxu1 %v8764_v32 }
  0x48   :  { %5609 = vmatpush1.bf16.msra.mxu1 %v5608_v45 }
  0x49   :  { %5610 = vmatprep.subr.bf16.mxu1 %v8764_v32 }
  0x4c   :  { %5612 = vmatpush1.bf16.msra.mxu1 %v5611_v48 }
  0x4d   :  { %5613 = vmatprep.subr.bf16.mxu1 %v8764_v32 }
  0x8e   :  { %v140_v50 = vpop.permute.xlu1 %139 }
  0x91   :  { %v110_v51 = vpop.permute.xlu0 %109 }
  0x92   :  { %113 = vst.msk [vmem:[#allocation2] sm:$0x3] %vm112_vm10, %v110_v51 }
  0x93   :  { %v376_v52 = vpop.permute.xlu1 %375  ;;  %143 = vst.msk [vmem:[#allocation2] sm:$0x3] %vm142_vm11, %v140_v50  ;;  %v1162_v50 = vld [vmem:[#allocation6 + $0x68] sm:$0xff] }
  0x94   :  { %v5614_v51 = vpack.c.bf16 %v1162_v50, %v1161_v49 }
  0x95   :  { %v347_v53 = vpop.permute.xlu0 %346 }
  0x96   :  { %349 = vst.msk [vmem:[#allocation2 + $0x2] sm:$0x3] %vm112_vm10, %v347_v53  ;;  %v1164_v53 = vld [vmem:[#allocation6 + $0x78] sm:$0xff]  ;;  %5615 = vmatpush1.bf16.msra.mxu1 %v5614_v51  ;;  %vm8732_vm10 = vcmask 785408  }
  0x97   :  { %v405_v54 = vpop.permute.xlu1 %404  ;;  %378 = vst.msk [vmem:[#allocation2 + $0x2] sm:$0x3] %vm142_vm11, %v376_v52  ;;  %v1163_v52 = vld [vmem:[#allocation6 + $0x70] sm:$0xff]  ;;  %5616 = vmatprep.subr.bf16.mxu1 %v8764_v32  ;;  %vm8749_vm11 = vcmask 883712  }
  0x98   :  { %407 = vst.msk [vmem:[#allocation2 + $0x2] sm:$0x3] %vm172_vm12, %v405_v54  ;;  %v5617_v54 = vpack.c.bf16 %v1164_v53, %v1163_v52 }
  0x99   :  { %v170_v55 = vpop.permute.xlu0 %169 }
  0x9a   :  { %173 = vst.msk [vmem:[#allocation2] sm:$0x3] %vm172_vm12, %v170_v55  ;;  %v1165_v55 = vld [vmem:[#allocation6 + $0x80] sm:$0xff]  ;;  %5618 = vmatpush1.bf16.msra.mxu1 %v5617_v54  ;;  %vm8729_vm12 = vcmask 769024  }
  0x9b   :  { %v434_v56 = vpop.permute.xlu1 %433  ;;  %5619 = vmatprep.subr.bf16.mxu1 %v8764_v32 }
  0x9c   :  { %436 = vst.msk [vmem:[#allocation2 + $0x2] sm:$0x3] %vm202_vm13, %v434_v56  ;;  %v1166_v56 = vld [vmem:[#allocation6 + $0x88] sm:$0xff] }
  0x9d   :  { %v200_v57 = vpop.permute.xlu0 %199 }
  0x9e   :  { %203 = vst.msk [vmem:[#allocation2] sm:$0x3] %vm202_vm13, %v200_v57  ;;  %v5620_v57 = vpack.c.bf16 %v1166_v56, %v1165_v55  ;;  %vm8721_vm13 = vcmask 777216  }
  0x9f   :  { %v463_v58 = vpop.permute.xlu1 %462 }
  0xa0   :  { %465 = vst.msk [vmem:[#allocation2 + $0x2] sm:$0x3] %vm232_vm14, %v463_v58  ;;  %v1167_v58 = vld [vmem:[#allocation6 + $0x90] sm:$0xff]  ;;  %5621 = vmatpush1.bf16.msra.mxu1 %v5620_v57 }
  0xa1   :  { %v230_v59 = vpop.permute.xlu0 %229  ;;  %5622 = vmatprep.subr.bf16.mxu1 %v8764_v32 }
  0xa2   :  { %233 = vst.msk [vmem:[#allocation2] sm:$0x3] %vm232_vm14, %v230_v59  ;;  %v1168_v59 = vld [vmem:[#allocation6 + $0x98] sm:$0xff]  ;;  %vm8722_vm14 = vcmask 752640  }
  0xa3   :  { %v492_v60 = vpop.permute.xlu1 %491 }
  0xa4   :  { %494 = vst.msk [vmem:[#allocation2 + $0x2] sm:$0x3] %vm262_vm15, %v492_v60  ;;  %v5623_v60 = vpack.c.bf16 %v1168_v59, %v1167_v58 }
  0xa5   :  { %v260_v61 = vpop.permute.xlu0 %259 }
  0xa6   :  { %263 = vst.msk [vmem:[#allocation2] sm:$0x3] %vm262_vm15, %v260_v61  ;;  %v1169_v61 = vld [vmem:[#allocation6 + $0xa0] sm:$0xff]  ;;  %5624 = vmatpush1.bf16.msra.mxu1 %v5623_v60  ;;  %vm8723_vm15 = vcmask 760832  }
  0xa7   :  { %v521_v62 = vpop.permute.xlu1 %520  ;;  %5625 = vmatprep.subr.bf16.mxu1 %v8764_v32 }
  0xa8   :  { %523 = vst.msk [vmem:[#allocation2 + $0x2] sm:$0x3] %vm292_vm0, %v521_v62  ;;  %v1170_v62 = vld [vmem:[#allocation6 + $0xa8] sm:$0xff] }
  0xa9   :  { %v290_v63 = vpop.permute.xlu0 %289 }
  0xaa   :  { %293 = vst.msk [vmem:[#allocation2] sm:$0x3] %vm292_vm0, %v290_v63  ;;  %v5626_v63 = vpack.c.bf16 %v1170_v62, %v1169_v61  ;;  %vm8724_vm0 = vcmask 646144  }
  0xac   :  { %5627 = vmatpush1.bf16.msra.mxu1 %v5626_v63 }
  0xad   :  { %5628 = vmatprep.subr.bf16.mxu1 %v8764_v32 }
  0xb1   :  { %v799_v1 = vld [vmem:[#allocation2] ss:$2 sm:$0x3]  ;;  %v2909_v42 = vld [vmem:[#allocation2 + $0x1] ss:$2 sm:$0x3] }
  0xb2   :  { %v788_v2 = vld [vmem:[#allocation2] ss:$2 sm:$0x3]  ;;  %801 = vrot.lane.b32.xlu1 %v799_v1, %s6345_s0 }
  0xb3   :  { %790 = vrot.lane.b32.xlu0 %v788_v2, %s6346_s23  ;;  %v821_v3 = vld [vmem:[#allocation2] ss:$2 sm:$0x3] }
  0xb4   :  { %v810_v4 = vld [vmem:[#allocation2] ss:$2 sm:$0x3] }
  0xb5   :  { %v843_v6 = vld [vmem:[#allocation2] ss:$2 sm:$0x3] }
  0xb6   :  { %823 = vrot.lane.b32.xlu1 %v821_v3, %s6347_s24  ;;  %v832_v7 = vld [vmem:[#allocation2] ss:$2 sm:$0x3] }
  0xb7   :  { %812 = vrot.lane.b32.xlu0 %v810_v4, %s6348_s26  ;;  %v865_v9 = vld [vmem:[#allocation2] ss:$2 sm:$0x3] }
  0xb8   :  { %v854_v10 = vld [vmem:[#allocation2] ss:$2 sm:$0x3] }
  0xb9   :  { %v781_v11 = vld [vmem:[#allocation2] ss:$2 sm:$0x3] }
  0xba   :  { %845 = vrot.lane.b32.xlu1 %v843_v6, %s6349_s27  ;;  %786 = vst.msk [vmem:[#allocation3] ss:$8 sm:$0x3] %vm6613_vm1, %v781_v11  ;;  %v887_v12 = vld [vmem:[#allocation2] ss:$2 sm:$0x3] }
  0xbb   :  { %834 = vrot.lane.b32.xlu0 %v832_v7, %s6344_s3  ;;  %v876_v13 = vld [vmem:[#allocation2] ss:$2 sm:$0x3] }
  0xbc   :  { %v909_v14 = vld [vmem:[#allocation2] ss:$2 sm:$0x3] }
  0xbd   :  { %v898_v15 = vld [vmem:[#allocation2] ss:$2 sm:$0x3] }
  0xbe   :  { %867 = vrot.lane.b32.xlu1 %v865_v9, %s6350_s28  ;;  %v931_v16 = vld [vmem:[#allocation2] ss:$2 sm:$0x3] }
  0xbf   :  { %856 = vrot.lane.b32.xlu0 %v854_v10, %s6351_s29  ;;  %v920_v17 = vld [vmem:[#allocation2] ss:$2 sm:$0x3] }
  0xc0   :  { %v953_v18 = vld [vmem:[#allocation2] ss:$2 sm:$0x3] }
  0xc1   :  { %v942_v19 = vld [vmem:[#allocation2] ss:$2 sm:$0x3] }
  0xc2   :  { %889 = vrot.lane.b32.xlu1 %v887_v12, %s6343_s12  ;;  %v975_v20 = vld [vmem:[#allocation2] ss:$2 sm:$0x3] }
  0xc3   :  { %878 = vrot.lane.b32.xlu0 %v876_v13, %s6352_s30  ;;  %v964_v21 = vld [vmem:[#allocation2] ss:$2 sm:$0x3] }
  0xc4   :  { %v997_v22 = vld [vmem:[#allocation2] ss:$2 sm:$0x3] }
  0xc5   :  { %v986_v23 = vld [vmem:[#allocation2] ss:$2 sm:$0x3] }
  0xc6   :  { %911 = vrot.lane.b32.xlu1 %v909_v14, %s6353_s9  ;;  %v1019_v24 = vld [vmem:[#allocation2] ss:$2 sm:$0x7] }
  0xc7   :  { %900 = vrot.lane.b32.xlu0 %v898_v15, %s6354_s10  ;;  %v1008_v25 = vld [vmem:[#allocation2] ss:$2 sm:$0x7] }
  0xc8   :  { %v1041_v26 = vld [vmem:[#allocation2] ss:$2 sm:$0x7] }
  0xc9   :  { %v1030_v27 = vld [vmem:[#allocation2] ss:$2 sm:$0x7] }
  0xca   :  { %933 = vrot.lane.b32.xlu1 %v931_v16, %s6355_s11 }
  0xcb   :  { %922 = vrot.lane.b32.xlu0 %v920_v17, %s6356_s13 }
  0xce   :  { %955 = vrot.lane.b32.xlu1 %v953_v18, %s6357_s14 }
  0xcf   :  { %944 = vrot.lane.b32.xlu0 %v942_v19, %s6342_s25 }
  0xd2   :  { %977 = vrot.lane.b32.xlu1 %v975_v20, %s8720_s15  ;;  %s6370_s15 = smov 36  }
  0xd3   :  { %966 = vrot.lane.b32.xlu0 %v964_v21, %s8718_s18  ;;  %s8734_s18 = smov 61  }
  0xd6   :  { %999 = vrot.lane.b32.xlu1 %v997_v22, %s8719_s16  ;;  %s8735_s16 = smov 72  }
  0xd7   :  { %988 = vrot.lane.b32.xlu0 %v986_v23, %s6360_s19 }
  0xda   :  { %1021 = vrot.lane.b32.xlu1 %v1019_v24, %s6361_s20 }
  0xdb   :  { %1010 = vrot.lane.b32.xlu0 %v1008_v25, %s6362_s21 }
  0xde   :  { %1043 = vrot.lane.b32.xlu1 %v1041_v26, %s6363_s22 }
  0xdf   :  { %1032 = vrot.lane.b32.xlu0 %v1030_v27, %s8734_s18  ;;  %s6371_s18 = smov 88  }
  0xe3   :  { %1064 = vperm.xlu0 %6284, %v1061_v28  }
 0x124   :  { %v802_v1 = vpop.permute.xlu1 %801 }
 0x125   :  { %v791_v2 = vpop.permute.xlu0 %790  ;;  %v803_v3 = vrot.slane %v802_v1, 1 }
 0x126   :  { %v792_v4 = vrot.slane %v791_v2, 1 }
 0x127   :  { %v805_v6 = vsel %vm8745_vm2, %v802_v1, %v803_v3  ;;  %vm6856_vm2 = vcmp.lt.s32.totalorder %v524_v5, 52 }
 0x128   :  { %v794_v7 = vsel %vm8746_vm3, %v791_v2, %v792_v4  ;;  %808 = vst.msk [vmem:[#allocation3 + $0x2] ss:$8 sm:$0x3] %vm6613_vm1, %v805_v6  ;;  %v824_v9 = vpop.permute.xlu1 %823 }
 0x129   :  { %797 = vst.msk [vmem:[#allocation3 + $0x1] ss:$8 sm:$0x3] %vm6613_vm1, %v794_v7  ;;  %v813_v10 = vpop.permute.xlu0 %812  ;;  %v825_v11 = vrot.slane %v824_v9, 1 }
 0x12a   :  { %v814_v12 = vrot.slane %v813_v10, 1 }
 0x12b   :  { %v827_v13 = vsel %vm8747_vm4, %v824_v9, %v825_v11  ;;  %vm6900_vm4 = vcmp.lt.s32.totalorder %v524_v5, 124 }
 0x12c   :  { %v816_v14 = vsel %vm8744_vm5, %v813_v10, %v814_v12  ;;  %830 = vst.msk [vmem:[#allocation3 + $0x4] ss:$8 sm:$0x3] %vm6613_vm1, %v827_v13  ;;  %v846_v15 = vpop.permute.xlu1 %845  ;;  %vm6851_vm5 = vcmp.ge.s32.totalorder %v524_v5, 16 }
 0x12d   :  { %819 = vst.msk [vmem:[#allocation3 + $0x3] ss:$8 sm:$0x3] %vm6613_vm1, %v816_v14  ;;  %v835_v16 = vpop.permute.xlu0 %834  ;;  %v847_v17 = vrot.slane %v846_v15, 1 }
 0x12e   :  { %v836_v18 = vrot.slane %v835_v16, 1 }
 0x12f   :  { %v849_v19 = vsel %vm8743_vm6, %v846_v15, %v847_v17 }
 0x130   :  { %v838_v20 = vsel %vm8742_vm7, %v835_v16, %v836_v18  ;;  %852 = vst.msk [vmem:[#allocation3 + $0x6] ss:$8 sm:$0x3] %vm6613_vm1, %v849_v19  ;;  %v868_v21 = vpop.permute.xlu1 %867 }
 0x131   :  { %841 = vst.msk [vmem:[#allocation3 + $0x5] ss:$8 sm:$0x3] %vm6613_vm1, %v838_v20  ;;  %v857_v22 = vpop.permute.xlu0 %856  ;;  %v869_v23 = vrot.slane %v868_v21, 1 }
 0x132   :  { %v858_v24 = vrot.slane %v857_v22, 1 }
 0x133   :  { %v871_v25 = vsel %vm8741_vm8, %v868_v21, %v869_v23  ;;  %vm6838_vm8 = vcmp.lt.s32.totalorder %v524_v5, 144 }
 0x134   :  { %v860_v26 = vsel %vm8740_vm9, %v857_v22, %v858_v24  ;;  %874 = vst.msk [vmem:[#allocation3 + $0x10] ss:$8 sm:$0x3] %vm6613_vm1, %v871_v25  ;;  %v890_v27 = vpop.permute.xlu1 %889  ;;  %v8805_v22 = vmov 0  ;;  %vm6833_vm9 = vcmp.ge.s32.totalorder %v524_v5, 108 }
 0x135   :  { %863 = vst.msk [vmem:[#allocation3 + $0x7] ss:$8 sm:$0x3] %vm6613_vm1, %v860_v26  ;;  %v879_v28 = vpop.permute.xlu0 %878  ;;  %v891_v29 = vrot.slane %v890_v27, 1  ;;  %vm8751_vm3 = vmand %vm6833_vm9, %vm6838_vm8 }
 0x136   :  { %v880_v30 = vrot.slane %v879_v28, 1 }
 0x137   :  { %v893_v31 = vsel %vm8732_vm10, %v890_v27, %v891_v29  ;;  %v1248_v29 = vld [vmem:[#allocation6 + $0xc8] sm:$0xff] }
 0x138   :  { %v882_v33 = vsel %vm8749_vm11, %v879_v28, %v880_v30  ;;  %896 = vst.msk [vmem:[#allocation3 + $0x12] ss:$8 sm:$0x3] %vm6613_vm1, %v893_v31  ;;  %v912_v34 = vpop.permute.xlu1 %911  ;;  %v1247_v28 = vld [vmem:[#allocation6 + $0xc0] sm:$0xff]  ;;  %v1052_v31 = vld [vmem:[%s8710_s1] sm:$0xff] }
 0x139   :  { %885 = vst.msk [vmem:[#allocation3 + $0x11] ss:$8 sm:$0x3] %vm6613_vm1, %v882_v33  ;;  %v901_v35 = vpop.permute.xlu0 %900  ;;  %v913_v36 = vrot.slane %v912_v34, 1  ;;  %v5632_v33 = vpack.c.bf16 %v1248_v29, %v1247_v28  ;;  %v1347_v28 = vld [vmem:[#allocation6 + $0x1a8] sm:$0xff]  ;;  %v1441_v29 = vld [vmem:[#allocation6 + $0x260] sm:$0xff] }
 0x13a   :  { %v902_v37 = vrot.slane %v901_v35, 1 }
 0x13b   :  { %v915_v38 = vsel %vm8729_vm12, %v912_v34, %v913_v36  ;;  %vm8737_vm12 = vcmask 498688   ;;  %v1249_v34 = vld [vmem:[#allocation6 + $0xd0] sm:$0xff] }
 0x13c   :  { %v904_v39 = vsel %vm8721_vm13, %v901_v35, %v902_v37  ;;  %v1054_v40 = vld [vmem:[#allocation3 + $0x8] sm:$0xff]  ;;  %v1053_v41 = vld [vmem:[#allocation3] sm:$0xff]  ;;  %918 = vst.msk [vmem:[#allocation3 + $0x14] ss:$8 sm:$0x3] %vm6613_vm1, %v915_v38  ;;  %v934_v43 = vpop.permute.xlu1 %933  ;;  %vm8725_vm13 = vcmask 654336  }
 0x13d   :  { %907 = vst.msk [vmem:[#allocation3 + $0x13] ss:$8 sm:$0x3] %vm6613_vm1, %v904_v39  ;;  %v923_v44 = vpop.permute.xlu0 %922  ;;  %2910 = vst.msk [vmem:[#allocation3] ss:$8 sm:$0x3] %vm6613_vm1, %v2909_v42 }
 0x13e   :  { %v935_v45 = vrot.slane %v934_v43, 1  ;;  %v924_v46 = vrot.slane %v923_v44, 1  ;;  %v1250_v35 = vld [vmem:[#allocation6 + $0xd8] sm:$0xff]  ;;  %v1251_v37 = vld [vmem:[#allocation6 + $0xe0] sm:$0xff]  ;;  %v1252_v38 = vld [vmem:[#allocation6 + $0xe8] sm:$0xff] }
 0x13f   :  { %v5635_v36 = vpack.c.bf16 %v1250_v35, %v1249_v34  ;;  %v5638_v39 = vpack.c.bf16 %v1252_v38, %v1251_v37  ;;  %v1348_v34 = vld [vmem:[#allocation6 + $0x1b0] sm:$0xff]  ;;  %v1349_v35 = vld [vmem:[#allocation6 + $0x1b8] sm:$0xff] }
 0x140   :  { %v937_v47 = vsel %vm8722_vm14, %v934_v43, %v935_v45  ;;  %v926_v48 = vsel %vm8723_vm15, %v923_v44, %v924_v46  ;;  %v956_v49 = vpop.permute.xlu1 %955  ;;  %vm8727_vm14 = vcmask 629760   ;;  %vm8726_vm15 = vcmask 637952   ;;  %v1255_v43 = vld [vmem:[#allocation6 + $0x100] sm:$0xff]  ;;  %v1256_v44 = vld [vmem:[#allocation6 + $0x108] sm:$0xff]  ;;  %v1257_v46 = vld [vmem:[#allocation6 + $0x110] sm:$0xff] }
 0x141   :  { %940 = vst.msk [vmem:[#allocation3 + $0x16] ss:$8 sm:$0x3] %vm6613_vm1, %v937_v47  ;;  %929 = vst.msk [vmem:[#allocation3 + $0x15] ss:$8 sm:$0x3] %vm6613_vm1, %v926_v48  ;;  %v945_v50 = vpop.permute.xlu0 %944  ;;  %v5644_v45 = vpack.c.bf16 %v1256_v44, %v1255_v43  ;;  %v5677_v38 = vpack.c.bf16 %v1349_v35, %v1348_v34 }
 0x142   :  { %v957_v51 = vrot.slane %v956_v49, 1  ;;  %v946_v52 = vrot.slane %v945_v50, 1  ;;  %v1258_v47 = vld [vmem:[#allocation6 + $0x118] sm:$0xff]  ;;  %v1446_v43 = vld [vmem:[#allocation6 + $0x288] sm:$0xff] }
 0x143   :  { %v5647_v48 = vpack.c.bf16 %v1258_v47, %v1257_v46  ;;  %v1444_v37 = vld [vmem:[#allocation6 + $0x278] sm:$0xff]  ;;  %v1352_v46 = vld [vmem:[#allocation6 + $0x1d0] sm:$0xff] }
 0x144   :  { %v959_v53 = vsel %vm8724_vm0, %v956_v49, %v957_v51  ;;  %v948_v54 = vsel %vm8725_vm13, %v945_v50, %v946_v52  ;;  %v978_v55 = vpop.permute.xlu1 %977  ;;  %vm8739_vm0 = vcmask 523264   ;;  %vm8728_vm13 = vcmask 621568   ;;  %v1259_v49 = vld [vmem:[#allocation6 + $0x120] sm:$0xff]  ;;  %v1260_v50 = vld [vmem:[#allocation6 + $0x128] sm:$0xff]  ;;  %v1261_v52 = vld [vmem:[#allocation6 + $0x130] sm:$0xff] }
 0x145   :  { %962 = vst.msk [vmem:[#allocation3 + $0x20] ss:$8 sm:$0x3] %vm6613_vm1, %v959_v53  ;;  %951 = vst.msk [vmem:[#allocation3 + $0x17] ss:$8 sm:$0x3] %vm6613_vm1, %v948_v54  ;;  %v967_v56 = vpop.permute.xlu0 %966  ;;  %v5650_v51 = vpack.c.bf16 %v1260_v50, %v1259_v49 }
 0x146   :  { %v979_v57 = vrot.slane %v978_v55, 1  ;;  %v968_v58 = vrot.slane %v967_v56, 1  ;;  %v1262_v53 = vld [vmem:[#allocation6 + $0x138] sm:$0xff] }
 0x147   :  { %v5653_v54 = vpack.c.bf16 %v1262_v53, %v1261_v52  ;;  %v1353_v47 = vld [vmem:[#allocation6 + $0x1d8] sm:$0xff]  ;;  %v1354_v52 = vld [vmem:[#allocation6 + $0x1e0] sm:$0xff]  ;;  %v1355_v53 = vld [vmem:[#allocation6 + $0x1e8] sm:$0xff] }
 0x148   :  { %v981_v59 = vsel %vm8727_vm14, %v978_v55, %v979_v57  ;;  %v970_v60 = vsel %vm8726_vm15, %v967_v56, %v968_v58  ;;  %v1000_v61 = vpop.permute.xlu1 %999  ;;  %vm8731_vm15 = vcmask 506880   ;;  %vm8730_vm14 = vcmask 515072   ;;  %v1263_v55 = vld [vmem:[#allocation6 + $0x140] sm:$0xff]  ;;  %v1264_v56 = vld [vmem:[#allocation6 + $0x148] sm:$0xff]  ;;  %v1265_v58 = vld [vmem:[#allocation6 + $0x150] sm:$0xff] }
 0x149   :  { %984 = vst.msk [vmem:[#allocation3 + $0x22] ss:$8 sm:$0x3] %vm6613_vm1, %v981_v59  ;;  %973 = vst.msk [vmem:[#allocation3 + $0x21] ss:$8 sm:$0x3] %vm6613_vm1, %v970_v60  ;;  %v989_v62 = vpop.permute.xlu0 %988  ;;  %v5656_v57 = vpack.c.bf16 %v1264_v56, %v1263_v55  ;;  %v5683_v50 = vpack.c.bf16 %v1353_v47, %v1352_v46  ;;  %v5686_v56 = vpack.c.bf16 %v1355_v53, %v1354_v52 }
 0x14a   :  { %v1001_v63 = vrot.slane %v1000_v61, 1  ;;  %v990_v1 = vrot.slane %v989_v62, 1  ;;  %v1266_v59 = vld [vmem:[#allocation6 + $0x158] sm:$0xff]  ;;  %v1450_v55 = vld [vmem:[#allocation6 + $0x2a8] sm:$0xff] }
 0x14b   :  { %v5659_v60 = vpack.c.bf16 %v1266_v59, %v1265_v58  ;;  %v1448_v49 = vld [vmem:[#allocation6 + $0x298] sm:$0xff]  ;;  %v1356_v58 = vld [vmem:[#allocation6 + $0x1f0] sm:$0xff] }
 0x14c   :  { %v1003_v2 = vsel %vm8739_vm0, %v1000_v61, %v1001_v63  ;;  %v992_v3 = vsel %vm8728_vm13, %v989_v62, %v990_v1  ;;  %v1056_v4 = vld [vmem:[#allocation3 + $0x18] sm:$0xff]  ;;  %v1055_v6 = vld [vmem:[#allocation3 + $0x10] sm:$0xff]  ;;  %v1022_v7 = vpop.permute.xlu1 %1021  ;;  %vm8738_vm13 = vcmask 490496   ;;  %v1357_v59 = vld [vmem:[#allocation6 + $0x1f8] sm:$0xff] }
 0x14d   :  { %1006 = vst.msk [vmem:[#allocation3 + $0x24] ss:$8 sm:$0x3] %vm6613_vm1, %v1003_v2  ;;  %995 = vst.msk [vmem:[#allocation3 + $0x23] ss:$8 sm:$0x3] %vm6613_vm1, %v992_v3  ;;  %v1011_v9 = vpop.permute.xlu0 %1010  ;;  %v5585_v10 = vpack.c.bf16 %v1056_v4, %v1054_v40  ;;  %v5587_v11 = vpack.c.bf16 %v1055_v6, %v1053_v41 }
 0x14e   :  { %v1023_v12 = vrot.slane %v1022_v7, 1  ;;  %v1012_v13 = vrot.slane %v1011_v9, 1  ;;  %v1253_v40 = vld [vmem:[#allocation6 + $0xf0] sm:$0xff]  ;;  %v1254_v41 = vld [vmem:[#allocation6 + $0xf8] sm:$0xff]  ;;  %v1267_v61 = vld [vmem:[#allocation6 + $0x160] sm:$0xff] }
 0x14f   :  { %5586 = vmatprep.subr.bf16.mxu0 %v5585_v10  ;;  %v5641_v42 = vpack.c.bf16 %v1254_v41, %v1253_v40  ;;  %v1268_v62 = vld [vmem:[#allocation6 + $0x168] sm:$0xff]  ;;  %v1171_v1 = vld [vmem:[#allocation6 + $0xb0] sm:$0xff]  ;;  %v1172_v2 = vld [vmem:[#allocation6 + $0xb8] sm:$0xff] }
 0x150   :  { %v1025_v14 = vsel %vm8731_vm15, %v1022_v7, %v1023_v12  ;;  %v1014_v15 = vsel %vm8730_vm14, %v1011_v9, %v1012_v13  ;;  %5588 = vmatpush1.bf16.msra.mxu0 %v5587_v11  ;;  %v1044_v16 = vpop.permute.xlu1 %1043  ;;  %vm1071_vm14 = vcmask 1040384   ;;  %vm6367_vm15 = vmmov 1   ;;  %v1269_v3 = vld [vmem:[#allocation6 + $0x170] sm:$0xff]  ;;  %v1270_v6 = vld [vmem:[#allocation6 + $0x178] sm:$0xff]  ;;  %v1342_v9 = vld [vmem:[#allocation6 + $0x180] sm:$0xff] }
 0x151   :  { %1028 = vst.msk [vmem:[#allocation3 + $0x26] ss:$8 sm:$0x3] %vm6613_vm1, %v1025_v14  ;;  %1017 = vst.msk [vmem:[#allocation3 + $0x25] ss:$8 sm:$0x3] %vm6613_vm1, %v1014_v15  ;;  %v1033_v17 = vpop.permute.xlu0 %1032  ;;  %v5662_v63 = vpack.c.bf16 %v1268_v62, %v1267_v61  ;;  %v5629_v4 = vpack.c.bf16 %v1172_v2, %v1171_v1  ;;  %v5665_v7 = vpack.c.bf16 %v1270_v6, %v1269_v3 }
 0x152   :  { %v1045_v18 = vrot.slane %v1044_v16, 1  ;;  %v1034_v19 = vrot.slane %v1033_v17, 1  ;;  %vm6726_vm10 = vmpackc.low %vm1071_vm14, %vm6367_vm15  ;;  %vm8733_vm14 = vcmask 203776   ;;  %v1343_v11 = vld [vmem:[#allocation6 + $0x188] sm:$0xff]  ;;  %v1437_v12 = vld [vmem:[#allocation6 + $0x240] sm:$0xff]  ;;  %v5689_v62 = vpack.c.bf16 %v1357_v59, %v1356_v58 }
 0x153   :  { %v8806_v22 = vsel %vm6726_vm10, 4294967295, %v8805_v22  ;;  %5630 = vmatpush1.bf16.msra.mxu1 %v5629_v4  ;;  %v1438_v13 = vld [vmem:[#allocation6 + $0x248] sm:$0xff]  ;;  %v1350_v40 = vld [vmem:[#allocation6 + $0x1c0] sm:$0xff]  ;;  %v1452_v61 = vld [vmem:[#allocation6 + $0x2b8] sm:$0xff]  ;;  %vm8736_vm15 = vcmask 293888  }
 0x154   :  { %v1047_v20 = vsel %vm8738_vm13, %v1044_v16, %v1045_v18  ;;  %v1036_v21 = vsel %vm8737_vm12, %v1033_v17, %v1034_v19  ;;  %5667 = vmatprep.subr.bf16.mxu1 %v8764_v32  ;;  %v5668_v17 = vpack.c.bf16 %v1343_v11, %v1342_v9  ;;  %v5704_v18 = vpack.c.bf16 %v1438_v13, %v1437_v12  ;;  %v1344_v19 = vld [vmem:[#allocation6 + $0x190] sm:$0xff]  ;;  %v1351_v41 = vld [vmem:[#allocation6 + $0x1c8] sm:$0xff]  ;;  %v1358_v1 = vld [vmem:[#allocation6 + $0x200] sm:$0xff] }
 0x155   :  { %1050 = vst.msk [vmem:[#allocation3 + $0x30] ss:$8 sm:$0x3] %vm6613_vm1, %v1047_v20  ;;  %1039 = vst.msk [vmem:[#allocation3 + $0x27] ss:$8 sm:$0x3] %vm6613_vm1, %v1036_v21  ;;  %v5680_v44 = vpack.c.bf16 %v1351_v41, %v1350_v40 }
 0x156   :  { %v1345_v21 = vld [vmem:[#allocation6 + $0x198] sm:$0xff]  ;;  %v1359_v2 = vld [vmem:[#allocation6 + $0x208] sm:$0xff]  ;;  %v1453_v3 = vld [vmem:[#allocation6 + $0x2c0] sm:$0xff]  ;;  %v6368_v40 = vmov 1966171168   ;;  %vm6818_vm12 = vcmp.lt.s32.totalorder %v524_v5, 72 }
 0x157   :  { %v1454_v4 = vld [vmem:[#allocation6 + $0x2c8] sm:$0xff]  ;;  %v5692_v6 = vpack.c.bf16 %v1359_v2, %v1358_v1  ;;  %v1360_v9 = vld [vmem:[#allocation6 + $0x210] sm:$0xff]  ;;  %v1456_v12 = vld [vmem:[#allocation6 + $0x2d8] sm:$0xff]  ;;  %v1550_v41 = vunpack.c.l.s4 %v6368_v40  ;;  %vm6823_vm13 = vcmp.ge.s32.totalorder %v524_v5, 72  ;;  %v8813_v1 = vmov 0 }
 0x158   :  { %v1455_v11 = vld [vmem:[#allocation6 + $0x2d0] sm:$0xff]  ;;  %v8814_v1 = vsel %vm6823_vm13, 4294967295, %v8813_v1  ;;  %v8815_v2 = vmov 0 }
 0x15c   :  { %v1058_v23 = vld [vmem:[#allocation3 + $0x28] sm:$0xff]  ;;  %v1060_v24 = vld [vmem:[#allocation3 + $0x38] sm:$0x1]  ;;  %v1057_v25 = vld [vmem:[#allocation3 + $0x20] sm:$0xff] }
 0x15d   :  { %v5589_v26 = vpack.c.bf16 %v1060_v24, %v1058_v23  ;;  %v1059_v27 = vld [vmem:[#allocation3 + $0x30] sm:$0x1]  ;;  %v1439_v23 = vld [vmem:[#allocation6 + $0x250] sm:$0xff]  ;;  %v1440_v24 = vld [vmem:[#allocation6 + $0x258] sm:$0xff] }
 0x15e   :  { %v5592_v30 = vpack.c.bf16 %v1059_v27, %v1057_v25  ;;  %v5671_v25 = vpack.c.bf16 %v1345_v21, %v1344_v19  ;;  %v1346_v27 = vld [vmem:[#allocation6 + $0x1a0] sm:$0xff] }
 0x15f   :  { %5591 = vmatprep.subr.msk.bf16.mxu0 %vm6726_vm10, %v5589_v26  ;;  %v5707_v26 = vpack.c.bf16 %v1440_v24, %v1439_v23  ;;  %v1364_v23 = vld [vmem:[#allocation6 + $0x230] sm:$0xff]  ;;  %v1365_v24 = vld [vmem:[#allocation6 + $0x238] sm:$0xff] }
 0x160   :  { %5594 = vmatpush1.bf16.msk.msra.mxu0 %vm6726_vm10, %v5592_v30  ;;  %v1442_v30 = vld [vmem:[#allocation6 + $0x268] sm:$0xff] }
 0x161   :  { %5631 = vmatprep.subr.bf16.mxu0 %v8764_v32 }
 0x162   :  { %v1065_v10 = vpop.permute.xlu0 %1064 }
 0x163   :  { %4997 = vmatmul.mubr.msk.f32.vlgmr.msra.gmra.mrb[0].mxu0 %vm8733_vm14, %v1052_v31  ;;  %v5674_v31 = vpack.c.bf16 %v1347_v28, %v1346_v27  ;;  %v5701_v27 = vpack.c.bf16 %v1365_v24, %v1364_v23  ;;  %vm6792_vm14 = vcmp.lt.s32.totalorder %v524_v5, 36 }
 0x164   :  { %5633 = vmatpush1.bf16.msra.mxu0 %v5632_v33  ;;  %v5710_v33 = vpack.c.bf16 %v1442_v30, %v1441_v29 }
 0x165   :  { %5634 = vmatprep.subr.bf16.mxu0 %v8764_v32 }
 0x168   :  { %5636 = vmatpush1.bf16.msra.mxu0 %v5635_v36  ;;  %v1443_v36 = vld [vmem:[#allocation6 + $0x270] sm:$0xff] }
 0x169   :  { %5637 = vmatprep.subr.bf16.mxu0 %v8764_v32 }
 0x16c   :  { %5639 = vmatpush1.bf16.msra.mxu0 %v5638_v39  ;;  %v5713_v39 = vpack.c.bf16 %v1444_v37, %v1443_v36 }
 0x16d   :  { %5640 = vmatprep.subr.bf16.mxu0 %v8764_v32 }
 0x170   :  { %5642 = vmatpush1.bf16.msra.mxu0 %v5641_v42  ;;  %v1445_v42 = vld [vmem:[#allocation6 + $0x280] sm:$0xff] }
 0x171   :  { %5643 = vmatprep.subr.bf16.mxu0 %v8764_v32 }
 0x174   :  { %5645 = vmatpush1.bf16.msra.mxu0 %v5644_v45  ;;  %v5716_v45 = vpack.c.bf16 %v1446_v43, %v1445_v42  ;;  %v6786_v43 = vshrl.u32 %v524_v5, 7 }
 0x175   :  { %5646 = vmatprep.subr.bf16.mxu0 %v8764_v32 }
 0x178   :  { %5648 = vmatpush1.bf16.msra.mxu0 %v5647_v48  ;;  %v1447_v48 = vld [vmem:[#allocation6 + $0x290] sm:$0xff] }
 0x179   :  { %5649 = vmatprep.subr.bf16.mxu0 %v8764_v32 }
 0x17c   :  { %5651 = vmatpush1.bf16.msra.mxu0 %v5650_v51  ;;  %v5719_v51 = vpack.c.bf16 %v1448_v49, %v1447_v48 }
 0x17d   :  { %5652 = vmatprep.subr.bf16.mxu0 %v8764_v32 }
 0x180   :  { %5654 = vmatpush1.bf16.msra.mxu0 %v5653_v54  ;;  %v1449_v54 = vld [vmem:[#allocation6 + $0x2a0] sm:$0xff] }
 0x181   :  { %5655 = vmatprep.subr.bf16.mxu0 %v8764_v32 }
 0x184   :  { %5657 = vmatpush1.bf16.msra.mxu0 %v5656_v57  ;;  %v5722_v57 = vpack.c.bf16 %v1450_v55, %v1449_v54 }
 0x185   :  { %5658 = vmatprep.subr.bf16.mxu0 %v8764_v32 }
 0x188   :  { %5660 = vmatpush1.bf16.msra.mxu0 %v5659_v60  ;;  %v1451_v60 = vld [vmem:[#allocation6 + $0x2b0] sm:$0xff] }
 0x189   :  { %5661 = vmatprep.subr.bf16.mxu0 %v8764_v32 }
 0x18c   :  { %5663 = vmatpush1.bf16.msra.mxu0 %v5662_v63  ;;  %v5725_v63 = vpack.c.bf16 %v1452_v61, %v1451_v60  ;;  %v8809_v61 = vmov 0 }
 0x18d   :  { %5664 = vmatprep.subr.bf16.mxu0 %v8764_v32 }
 0x190   :  { %5666 = vmatpush1.bf16.msra.mxu0 %v5665_v7  ;;  %v5728_v7 = vpack.c.bf16 %v1454_v4, %v1453_v3  ;;  %v8817_v4 = vmov 0 }
 0x191   :  { %5703 = vmatprep.subr.bf16.mxu0 %v8764_v32  ;;  %v8818_v4 = vsel %vm6833_vm9, 4294967295, %v8817_v4  ;;  %vm6915_vm9 = vcmp.lt.s32.totalorder %v524_v5, 160 }
 0x236   :  { %v1144_v14 = vpop.f32.mrb[0].mxu0 }
 0x237   :  { %v1146_v15 = vpop.f32.mrb[1].mxu0  ;;  %v6752_v20 = vadd.f32 %v1144_v14, %v1065_v10  ;;  %v5731_v14 = vpack.c.bf16 %v1456_v12, %v1455_v11 }
 0x238   :  { %v1147_v16 = vadd.f32 %v1146_v15, %v1065_v10  ;;  %v1361_v10 = vld [vmem:[#allocation6 + $0x218] sm:$0xff]  ;;  %v1362_v15 = vld [vmem:[#allocation6 + $0x220] sm:$0xff] }
 0x239   :  { %v5695_v13 = vpack.c.bf16 %v1361_v10, %v1360_v9  ;;  %v8821_v9 = vmov 0  ;;  %v8823_v10 = vmov 0 }
 0x23a   :  { %4998 = vmatprep.mubr.msk.f32.mxu1 %vm8739_vm0, %v1147_v16  ;;  %4999 = vmatprep.mubr.msk.f32.mxu0 %vm8739_vm0, %v1147_v16  ;;  %v8822_v9 = vsel %vm6851_vm5, 4294967295, %v8821_v9  ;;  %v8824_v10 = vsel %vm6856_vm2, 4294967295, %v8823_v10 }
 0x23b   :  { %1241 = vmatmul.mubr.f32.vlgmr.msra.gmra.mrb[0].mxu1 %v6752_v20  ;;  %1336 = vmatmul.mubr.f32.vlgmr.msra.gmra.mrb[2].mxu0 %v6752_v20 }
 0x23c   :  { %5669 = vmatpush1.bf16.msra.mxu1 %v5668_v17  ;;  %5705 = vmatpush1.bf16.msra.mxu0 %v5704_v18  ;;  %v1457_v17 = vld [vmem:[#allocation6 + $0x2e0] sm:$0xff]  ;;  %v1458_v18 = vld [vmem:[#allocation6 + $0x2e8] sm:$0xff] }
 0x23d   :  { %5000 = vmatprep.mubr.msk.f32.mxu1 %vm8739_vm0, %v1147_v16  ;;  %5001 = vmatprep.mubr.msk.f32.mxu0 %vm8739_vm0, %v1147_v16  ;;  %v1363_v16 = vld [vmem:[#allocation6 + $0x228] sm:$0xff]  ;;  %v5734_v21 = vpack.c.bf16 %v1458_v18, %v1457_v17  ;;  %vm6828_vm0 = vcmp.lt.s32.totalorder %v524_v5, 108  ;;  %v8829_v17 = vmov 0  ;;  %v8831_v18 = vmov 0 }
 0x23e   :  { %5670 = vmatprep.subr.bf16.mxu1 %v8764_v32  ;;  %5706 = vmatprep.subr.bf16.mxu0 %v8764_v32  ;;  %v5698_v19 = vpack.c.bf16 %v1363_v16, %v1362_v15  ;;  %v8816_v2 = vsel %vm6828_vm0, 4294967295, %v8815_v2  ;;  %vm8750_vm6 = vmand %vm6823_vm13, %vm6828_vm0  ;;  %v8827_v15 = vmov 0  ;;  %v8832_v18 = vsel %vm6900_vm4, 4294967295, %v8831_v18 }
 0x240   :  { %5672 = vmatpush1.bf16.msra.mxu1 %v5671_v25  ;;  %5708 = vmatpush1.bf16.msra.mxu0 %v5707_v26  ;;  %v1459_v25 = vld [vmem:[#allocation6 + $0x2f0] sm:$0xff]  ;;  %v1460_v26 = vld [vmem:[#allocation6 + $0x2f8] sm:$0xff] }
 0x241   :  { %5673 = vmatprep.subr.bf16.mxu1 %v8764_v32  ;;  %5709 = vmatprep.subr.bf16.mxu0 %v8764_v32  ;;  %v5737_v28 = vpack.c.bf16 %v1460_v26, %v1459_v25 }
 0x244   :  { %5675 = vmatpush1.bf16.msra.mxu1 %v5674_v31  ;;  %5711 = vmatpush1.bf16.msra.mxu0 %v5710_v33 }
 0x245   :  { %5676 = vmatprep.subr.bf16.mxu1 %v8764_v32  ;;  %5712 = vmatprep.subr.bf16.mxu0 %v8764_v32 }
 0x248   :  { %5678 = vmatpush1.bf16.msra.mxu1 %v5677_v38  ;;  %5714 = vmatpush1.bf16.msra.mxu0 %v5713_v39 }
 0x249   :  { %5679 = vmatprep.subr.bf16.mxu1 %v8764_v32  ;;  %5715 = vmatprep.subr.bf16.mxu0 %v8764_v32 }
 0x24c   :  { %5681 = vmatpush1.bf16.msra.mxu1 %v5680_v44  ;;  %5717 = vmatpush1.bf16.msra.mxu0 %v5716_v45  ;;  %v8807_v45 = vmov 0 }
 0x24d   :  { %5682 = vmatprep.subr.bf16.mxu1 %v8764_v32  ;;  %5718 = vmatprep.subr.bf16.mxu0 %v8764_v32  ;;  %v8808_v45 = vsel %vm6792_vm14, 4294967295, %v8807_v45 }
 0x250   :  { %5684 = vmatpush1.bf16.msra.mxu1 %v5683_v50  ;;  %5720 = vmatpush1.bf16.msra.mxu0 %v5719_v51 }
 0x251   :  { %5685 = vmatprep.subr.bf16.mxu1 %v8764_v32  ;;  %5721 = vmatprep.subr.bf16.mxu0 %v8764_v32 }
 0x254   :  { %5687 = vmatpush1.bf16.msra.mxu1 %v5686_v56  ;;  %5723 = vmatpush1.bf16.msra.mxu0 %v5722_v57 }
 0x255   :  { %5688 = vmatprep.subr.bf16.mxu1 %v8764_v32  ;;  %5724 = vmatprep.subr.bf16.mxu0 %v8764_v32 }
 0x258   :  { %5690 = vmatpush1.bf16.msra.mxu1 %v5689_v62  ;;  %5726 = vmatpush1.bf16.msra.mxu0 %v5725_v63  ;;  %v8811_v62 = vmov 0 }
 0x259   :  { %5691 = vmatprep.subr.bf16.mxu1 %v8764_v32  ;;  %5727 = vmatprep.subr.bf16.mxu0 %v8764_v32  ;;  %v8812_v62 = vsel %vm6818_vm12, 4294967295, %v8811_v62 }
 0x25c   :  { %5693 = vmatpush1.bf16.msra.mxu1 %v5692_v6  ;;  %5729 = vmatpush1.bf16.msra.mxu0 %v5728_v7  ;;  %v8819_v6 = vmov 0 }
 0x25d   :  { %5694 = vmatprep.subr.bf16.mxu1 %v8764_v32  ;;  %5730 = vmatprep.subr.bf16.mxu0 %v8764_v32  ;;  %v8820_v6 = vsel %vm6838_vm8, 4294967295, %v8819_v6  ;;  %vm6910_vm8 = vcmp.ge.s32.totalorder %v524_v5, 124 }
 0x260   :  { %5696 = vmatpush1.bf16.msra.mxu1 %v5695_v13  ;;  %5732 = vmatpush1.bf16.msra.mxu0 %v5731_v14  ;;  %v8825_v14 = vmov 0 }
 0x261   :  { %5697 = vmatprep.subr.bf16.mxu1 %v8764_v32  ;;  %5733 = vmatprep.subr.bf16.mxu0 %v8764_v32 }
 0x264   :  { %5699 = vmatpush1.bf16.msra.mxu1 %v5698_v19  ;;  %5735 = vmatpush1.bf16.msra.mxu0 %v5734_v21  ;;  %v8834_v19 = vmov 0  ;;  %v8836_v21 = vmov 0 }
 0x265   :  { %5700 = vmatprep.subr.bf16.mxu1 %v8764_v32  ;;  %5736 = vmatprep.subr.bf16.mxu0 %v8764_v32  ;;  %v8835_v19 = vsel %vm6910_vm8, 4294967295, %v8834_v19  ;;  %v8837_v21 = vsel %vm6915_vm9, 4294967295, %v8836_v21  ;;  %v550_v32 = vadd.s32 200, %v6786_v43 }
 0x268   :  { %5702 = vmatpush1.bf16.msra.mxu1 %v5701_v27  ;;  %5738 = vmatpush1.bf16.msra.mxu0 %v5737_v28  ;;  %v526_v27 = vadd.s32 8, %v6786_v43  ;;  %v527_v28 = vadd.s32 16, %v6786_v43 }
 0x26b   :  { %1431 = vmatmul.mubr.f32.vlgmr.msra.gmra.mrb[2].mxu1 %v6752_v20  ;;  %1526 = vmatmul.mubr.f32.vlgmr.msra.gmra.mrb[4].mxu0 %v6752_v20  ;;  %v1551_v20 = vunpack.c.0.s8 %v1550_v41  ;;  %v532_v41 = vadd.s32 56, %v6786_v43 }
 0x26d   :  { %v6789_v44 = vsub.s32 %v1551_v20, %v6786_v43 }
 0x30e   :  { %v1242_v29 = vpop.f32.mrb[0].mxu1  ;;  %v1337_v30 = vpop.f32.mrb[2].mxu0 }
 0x30f   :  { %v1531_v31 = vmax.f32 %v1242_v29, %v1337_v30  ;;  %v1244_v33 = vpop.f32.mrb[1].mxu1  ;;  %v1339_v34 = vpop.f32.mrb[3].mxu0  ;;  %v528_v29 = vadd.s32 24, %v6786_v43  ;;  %v6951_v30 = vand.u32 127, %v524_v5 }
 0x310   :  { %v530_v33 = vadd.s32 40, %v6786_v43  ;;  %v6956_v34 = vsub.s32 0, %v6786_v43 }
 0x33e   :  { %v1432_v35 = vpop.f32.mrb[2].mxu1  ;;  %v1527_v36 = vpop.f32.mrb[4].mxu0 }
 0x33f   :  { %v1532_v37 = vmax.f32 %v1432_v35, %v1527_v36  ;;  %v1434_v38 = vpop.f32.mrb[3].mxu1  ;;  %v1529_v39 = vpop.f32.mrb[5].mxu0  ;;  %v8763_v35 = vsub.s32 1, %v6786_v43  ;;  %v8762_v36 = vsub.s32 2, %v6786_v43 }
 0x341   :  { %v1533_v42 = vmax.f32 %v1531_v31, %v1532_v37  ;;  %v529_v31 = vadd.s32 32, %v6786_v43 }
 0x343   :  { %1535 = vst.msk [vmem:[#allocation4] sm:$0xff] %vm8736_vm15, %v1533_v42  ;;  %vm6813_vm15 = vcmp.ge.s32.totalorder %v524_v5, 36 }
 0x344   :  { %v8810_v61 = vsel %vm6813_vm15, 4294967295, %v8809_v61  ;;  %vm8748_vm7 = vmand %vm6813_vm15, %vm6818_vm12 }
 0x34a   :  { %v5004_v46 = vld.sshfl [vmem:[#allocation4 + $0x3] sm:$0x1 pattern:$0x75316420]  ;;  %v1536_v47 = vld [vmem:[#allocation4] sm:$0x1] }
 0x34b   :  { %v1601_v48 = vrot.slane %v5004_v46, %v6789_v44  ;;  %v5003_v49 = vld.sshfl [vmem:[#allocation4 + $0x2] sm:$0x1 pattern:$0x75316420]  ;;  %1539 = vst.msk [vmem:[#allocation5] sm:$0x1] %vm6792_vm14, %v1536_v47 }
 0x34c   :  { %v1578_v50 = vrot.slane %v5003_v49, %v6789_v44  ;;  %v5008_v51 = vld.sshfl [vmem:[#allocation4 + $0x7] sm:$0x1 pattern:$0x75316420] }
 0x34d   :  { %1602 = vrot.lane.b32.xlu1 %v1601_v48, %s6352_s30  ;;  %v5002_v52 = vld.sshfl [vmem:[#allocation4 + $0x1] sm:$0x1 pattern:$0x75316420]  ;;  %v1695_v54 = vrot.slane %v5008_v51, %v6789_v44 }
 0x34e   :  { %1579 = vrot.lane.b32.xlu0 %v1578_v50, %s8735_s16  ;;  %v1555_v53 = vrot.slane %v5002_v52, %v6789_v44  ;;  %v5005_v55 = vld.sshfl [vmem:[#allocation4 + $0x4] sm:$0x1 pattern:$0x75316420]  ;;  %s6372_s16 = smov 52  }
 0x34f   :  { %v5007_v56 = vld.sshfl [vmem:[#allocation4 + $0x6] sm:$0x1 pattern:$0x75316420]  ;;  %v1626_v57 = vrot.slane %v5005_v55, %v6789_v44 }
 0x350   :  { %v1672_v58 = vrot.slane %v5007_v56, %v6789_v44  ;;  %v5006_v59 = vld.sshfl [vmem:[#allocation4 + $0x5] sm:$0x1 pattern:$0x75316420]  ;;  %v533_v56 = vadd.s32 64, %v6786_v43 }
 0x351   :  { %1556 = vrot.lane.b32.xlu1 %v1555_v53, %s6370_s15  ;;  %v1649_v60 = vrot.slane %v5006_v59, %v6789_v44 }
 0x352   :  { %1696 = vrot.lane.b32.xlu0 %v1695_v54, %s6347_s24 }
 0x355   :  { %1627 = vrot.lane.b32.xlu1 %v1626_v57, %s6339_s17  ;;  %v534_v57 = vadd.s32 72, %v6786_v43 }
 0x356   :  { %1673 = vrot.lane.b32.xlu0 %v1672_v58, %s6371_s18 }
 0x359   :  { %1650 = vrot.lane.b32.xlu1 %v1649_v60, %s6372_s16 }
 0x3bf   :  { %v1603_v63 = vpop.permute.xlu1 %1602 }
 0x3c0   :  { %v1580_v3 = vpop.permute.xlu0 %1579  ;;  %v1604_v7 = vrot.slane %v1603_v63, 7 }
 0x3c2   :  { %v1605_v12 = vsel %vm8749_vm11, %v1604_v7, %v1603_v63  ;;  %vm6890_vm11 = vcmp.lt.s32.totalorder %v524_v5, 88 }
 0x3c3   :  { %v1557_v11 = vpop.permute.xlu1 %1556  ;;  %v8828_v15 = vsel %vm6890_vm11, 4294967295, %v8827_v15 }
 0x3c4   :  { %1562 = vst.msk [vmem:[#allocation5] sm:$0x1] %vm8748_vm7, %v1557_v11  ;;  %v1697_v13 = vpop.permute.xlu0 %1696  ;;  %vm6885_vm7 = vcmp.ge.s32.totalorder %v524_v5, 52  ;;  %v535_v11 = vadd.s32 80, %v6786_v43 }
 0x3c5   :  { %1585 = vst.msk [vmem:[#allocation5] sm:$0x1] %vm8750_vm6, %v1580_v3  ;;  %v8826_v14 = vsel %vm6885_vm7, 4294967295, %v8825_v14  ;;  %vm6895_vm6 = vcmp.ge.s32.totalorder %v524_v5, 88  ;;  %v1698_v23 = vrot.slane %v1697_v13, 7  ;;  %vm8759_vm0 = vmand %vm6885_vm7, %vm6890_vm11  ;;  %v531_v5 = vadd.s32 48, %v6786_v43 }
 0x3c6   :  { %1610 = vst.msk [vmem:[#allocation5] sm:$0x3] %vm8751_vm3, %v1605_v12  ;;  %v8830_v17 = vsel %vm6895_vm6, 4294967295, %v8829_v17  ;;  %vm8833_vm3 = vmand %vm6851_vm5, %vm6856_vm2  ;;  %vm8838_vm5 = vcmask 1014784  }
 0x3c7   :  { %v1628_v16 = vpop.permute.xlu1 %1627  ;;  %vm8757_vm2 = vmand %vm6910_vm8, %vm6915_vm9  ;;  %v1699_v26 = vsel %vm8838_vm5, %v1698_v23, %v1697_v13  ;;  %vm568_vm5 = vcmp.eq.s32.totalorder %v526_v27, %v6951_v30  ;;  %vm577_vm9 = vcmp.eq.s32.totalorder %v529_v31, %v6951_v30  ;;  %vm580_vm8 = vcmp.eq.s32.totalorder %v530_v33, %v6951_v30 }
 0x3c8   :  { %1633 = vst.msk [vmem:[#allocation5 + $0x1] sm:$0x1] %vm8833_vm3, %v1628_v16  ;;  %vm8758_vm3 = vmand %vm6895_vm6, %vm6900_vm4  ;;  %v1674_v25 = vpop.permute.xlu0 %1673  ;;  %v6969_v38 = vsel %vm568_vm5, 1.0, %v8766_v0  ;;  %v6993_v48 = vsel %vm577_vm9, 1.0, %v8766_v0  ;;  %v6996_v49 = vsel %vm580_vm8, 1.0, %v8766_v0  ;;  %vm586_vm8 = vcmp.eq.s32.totalorder %v532_v41, %v6951_v30 }
 0x3c9   :  { %vm589_vm9 = vcmp.eq.s32.totalorder %v533_v56, %v6951_v30  ;;  %vm595_vm5 = vcmp.eq.s32.totalorder %v535_v11, %v6951_v30  ;;  %v540_v11 = vadd.s32 120, %v6786_v43 }
 0x3ca   :  { %v7049_v41 = vsel %vm589_vm9, 1.0, %v8766_v0 }
 0x3cb   :  { %v1651_v24 = vpop.permute.xlu1 %1650 }
 0x3cc   :  { %1656 = vst.msk [vmem:[#allocation5 + $0x1] sm:$0x1] %vm8759_vm0, %v1651_v24  ;;  %vm574_vm0 = vcmp.eq.s32.totalorder %v528_v29, %v6951_v30  ;;  %v7032_v24 = vsel %vm586_vm8, 1.0, %v8766_v0  ;;  %v538_v29 = vadd.s32 104, %v6786_v43 }
 0x3cd   :  { %1679 = vst.msk [vmem:[#allocation5 + $0x1] sm:$0x1] %vm8758_vm3, %v1674_v25  ;;  %vm571_vm3 = vcmp.eq.s32.totalorder %v527_v28, %v6951_v30  ;;  %v6990_v47 = vsel %vm574_vm0, 1.0, %v8766_v0  ;;  %vm592_vm0 = vcmp.eq.s32.totalorder %v534_v57, %v6951_v30  ;;  %v536_v25 = vadd.s32 88, %v6786_v43 }
 0x3ce   :  { %1704 = vst.msk [vmem:[#allocation5 + $0x1] sm:$0x3] %vm8757_vm2, %v1699_v26  ;;  %vm565_vm2 = vcmp.eq.s32.totalorder %v6786_v43, %v6951_v30  ;;  %v6975_v40 = vsel %vm571_vm3, 1.0, %v8766_v0  ;;  %vm583_vm3 = vcmp.eq.s32.totalorder %v531_v5, %v6951_v30  ;;  %v537_v26 = vadd.s32 96, %v6786_v43 }
 0x3cf   :  { %v6972_v39 = vsel %vm565_vm2, 1.0, %v8766_v0  ;;  %vm8780_vm2 = vcmask 261120   ;;  %v7024_v7 = vsel %vm583_vm3, 1.0, %v8766_v0  ;;  %vm598_vm3 = vcmp.eq.s32.totalorder %v536_v25, %v6951_v30 }
 0x3d0   :  { %vm601_vm8 = vcmp.eq.s32.totalorder %v537_v26, %v6951_v30  ;;  %vm604_vm9 = vcmp.eq.s32.totalorder %v538_v29, %v6951_v30  ;;  %v7091_v29 = vadd.s32 128, %v6951_v30 }
 0x3d5   :  { %v1705_v37 = vld [vmem:[#allocation5] sm:$0x7] }
 0x3d6   :  { %v6979_v42 = vrot.slane %v1705_v37, %v6956_v34  ;;  %v6983_v20 = vrot.slane %v1705_v37, %v8763_v35  ;;  %v6987_v46 = vrot.slane %v1705_v37, %v8762_v36 }
 0x3d8   :  { %v7000_v50 = vmul.f32 0.0, %v6983_v20  ;;  %v1724_v51 = vmul.f32 0.0, %v6987_v46  ;;  %v1725_v52 = vmul.f32 %v6979_v42, %v6969_v38  ;;  %v1722_v53 = vmul.f32 %v6979_v42, %v6972_v39 }
 0x3d9   :  { %v1728_v54 = vmul.f32 %v6979_v42, %v6975_v40  ;;  %v1731_v55 = vmul.f32 %v6979_v42, %v6990_v47  ;;  %v1734_v63 = vmul.f32 %v6979_v42, %v6993_v48  ;;  %v1737_v3 = vmul.f32 %v6979_v42, %v6996_v49 }
 0x3da   :  { %v7014_v58 = vsel %vm8780_vm2, %v1724_v51, 0.0  ;;  %v1836_v59 = vadd.f32 %v1725_v52, %v7000_v50  ;;  %v1830_v60 = vadd.f32 %v7000_v50, %v1722_v53  ;;  %v1740_v28 = vmul.f32 %v6979_v42, %v7024_v7 }
 0x3db   :  { %v1841_v16 = vadd.f32 %v1728_v54, %v7000_v50  ;;  %v1846_v23 = vadd.f32 %v1731_v55, %v7000_v50  ;;  %v1851_v27 = vadd.f32 %v1734_v63, %v7000_v50  ;;  %v1856_v5 = vadd.f32 %v1737_v3, %v7000_v50 }
 0x3dc   :  { %v1838_v12 = vadd.f32 %v1836_v59, %v7014_v58  ;;  %v1833_v13 = vadd.f32 %v7014_v58, %v1830_v60  ;;  %v1743_v37 = vmul.f32 %v6979_v42, %v7032_v24  ;;  %v7052_v51 = vsel %vm592_vm0, 1.0, %v8766_v0 }
 0x3dd   :  { %v1843_v31 = vadd.f32 %v1841_v16, %v7014_v58  ;;  %v1848_v33 = vadd.f32 %v1846_v23, %v7014_v58  ;;  %v7055_v52 = vsel %vm595_vm5, 1.0, %v8766_v0  ;;  %v539_v53 = vadd.s32 112, %v6786_v43 }
 0x3de   :  { %1839 = vadd.xlane.f32.xlu0 %v1838_v12  ;;  %1834 = vadd.xlane.f32.xlu1 %v1833_v13  ;;  %v1853_v54 = vadd.f32 %v1851_v27, %v7014_v58  ;;  %v1861_v55 = vadd.f32 %v1740_v28, %v7000_v50  ;;  %v1858_v56 = vadd.f32 %v1856_v5, %v7014_v58  ;;  %v7070_v63 = vsel %vm598_vm3, 1.0, %v8766_v0 }
 0x3df   :  { %v1866_v57 = vadd.f32 %v1743_v37, %v7000_v50  ;;  %v1746_v59 = vmul.f32 %v6979_v42, %v7049_v41  ;;  %v1749_v60 = vmul.f32 %v6979_v42, %v7052_v51  ;;  %v7073_v3 = vsel %vm601_vm8, 1.0, %v8766_v0 }
 0x3e0   :  { %v1863_v12 = vadd.f32 %v1861_v55, %v7014_v58  ;;  %v1752_v13 = vmul.f32 %v6979_v42, %v7055_v52  ;;  %v7080_v16 = vsel %vm604_vm9, 1.0, %v8766_v0  ;;  %vm607_vm0 = vcmp.eq.s32.totalorder %v539_v53, %v6951_v30 }
 0x3e1   :  { %v1868_v23 = vadd.f32 %v1866_v57, %v7014_v58  ;;  %v1871_v25 = vadd.f32 %v1746_v59, %v7000_v50  ;;  %v1876_v26 = vadd.f32 %v1749_v60, %v7000_v50  ;;  %v1755_v27 = vmul.f32 %v6979_v42, %v7070_v63 }
 0x3e2   :  { %1844 = vadd.xlane.f32.xlu0 %v1843_v31  ;;  %1849 = vadd.xlane.f32.xlu1 %v1848_v33  ;;  %vm610_vm5 = vcmp.eq.s32.totalorder %v540_v11, %v6951_v30  ;;  %v541_v28 = vadd.s32 128, %v6786_v43  ;;  %v542_v31 = vadd.s32 136, %v6786_v43  ;;  %v1758_v33 = vmul.f32 %v6979_v42, %v7073_v3 }
 0x3e3   :  { %v1761_v5 = vmul.f32 %v6979_v42, %v7080_v16  ;;  %v7099_v37 = vsel %vm607_vm0, 1.0, %v8766_v0  ;;  %v543_v53 = vadd.s32 144, %v6786_v43  ;;  %v1878_v55 = vadd.f32 %v1876_v26, %v7014_v58 }
 0x3e4   :  { %v1886_v57 = vadd.f32 %v1755_v27, %v7000_v50  ;;  %v7107_v59 = vsel %vm610_vm5, 1.0, %v8766_v0  ;;  %vm614_vm3 = vcmp.eq.s32.totalorder %v541_v28, %v7091_v29  ;;  %vm617_vm8 = vcmp.eq.s32.totalorder %v542_v31, %v7091_v29 }
 0x3e5   :  { %v544_v60 = vadd.s32 152, %v6786_v43  ;;  %v545_v11 = vadd.s32 160, %v6786_v43  ;;  %vm620_vm9 = vcmp.eq.s32.totalorder %v543_v53, %v7091_v29  ;;  %v1896_v27 = vadd.f32 %v1761_v5, %v7000_v50 }
 0x3e6   :  { %1854 = vadd.xlane.f32.xlu0 %v1853_v54  ;;  %1859 = vadd.xlane.f32.xlu1 %v1858_v56  ;;  %v1873_v54 = vadd.f32 %v1871_v25, %v7014_v58  ;;  %v1881_v56 = vadd.f32 %v1752_v13, %v7000_v50  ;;  %v1764_v13 = vmul.f32 %v6979_v42, %v7099_v37  ;;  %v7124_v31 = vsel %vm614_vm3, 1.0, %v8766_v0 }
 0x3e7   :  { %v1888_v26 = vadd.f32 %v1886_v57, %v7014_v58  ;;  %v1767_v28 = vmul.f32 %v6979_v42, %v7107_v59  ;;  %v7130_v53 = vsel %vm620_vm9, 1.0, %v8766_v0  ;;  %vm623_vm0 = vcmp.eq.s32.totalorder %v544_v60, %v7091_v29 }
 0x3e8   :  { %v1883_v25 = vadd.f32 %v1881_v56, %v7014_v58  ;;  %8839 = vst [vmem:[#allocation12_spill] sm:$0xff] %v7130_v53  ;;  %vm626_vm5 = vcmp.eq.s32.totalorder %v545_v11, %v7091_v29  ;;  %v1898_v56 = vadd.f32 %v1896_v27, %v7014_v58  ;;  %v1777_v27 = vmul.f32 %v6983_v20, %v7130_v53 }
 0x3e9   :  { %v1906_v57 = vadd.f32 %v1767_v28, %v7000_v50  ;;  %v7157_v28 = vsel %vm626_vm5, 1.0, %v8766_v0  ;;  %v549_v11 = vadd.s32 192, %v6786_v43  ;;  %vm641_vm5 = vcmp.eq.s32.totalorder %v550_v32, %v7091_v29 }
 0x3ea   :  { %1864 = vadd.xlane.f32.xlu0 %v1863_v12  ;;  %1869 = vadd.xlane.f32.xlu1 %v1868_v23  ;;  %v1891_v12 = vadd.f32 %v1758_v33, %v7000_v50  ;;  %v546_v23 = vadd.s32 168, %v6786_v43  ;;  %v7127_v33 = vsel %vm617_vm8, 1.0, %v8766_v0  ;;  %8841 = vst [vmem:[#allocation14_spill] sm:$0xff] %v7157_v28 }
 0x3eb   :  { %v1774_v60 = vmul.f32 %v6983_v20, %v7127_v33 }
 0x3ec   :  { %v1893_v5 = vadd.f32 %v1891_v12, %v7014_v58  ;;  %vm629_vm3 = vcmp.eq.s32.totalorder %v546_v23, %v7091_v29  ;;  %v547_v12 = vadd.s32 176, %v6786_v43 }
 0x3ed   :  { %v7160_v36 = vsel %vm629_vm3, 1.0, %v8766_v0 }
 0x3ee   :  { %1874 = vadd.xlane.f32.xlu0 %v1873_v54  ;;  %1879 = vadd.xlane.f32.xlu1 %v1878_v55  ;;  %v1901_v54 = vadd.f32 %v1764_v13, %v7000_v50  ;;  %v7137_v55 = vmul.f32 0.0, %v6979_v42  ;;  %v548_v13 = vadd.s32 184, %v6786_v43  ;;  %8842 = vst [vmem:[#allocation15_spill] sm:$0xff] %v7160_v36  ;;  %vm632_vm8 = vcmp.eq.s32.totalorder %v547_v12, %v7091_v29 }
 0x3f0   :  { %v1903_v23 = vadd.f32 %v1901_v54, %v7014_v58  ;;  %v1916_v35 = vadd.f32 %v1774_v60, %v7137_v55  ;;  %vm635_vm9 = vcmp.eq.s32.totalorder %v548_v13, %v7091_v29  ;;  %v551_v60 = vadd.s32 208, %v6786_v43 }
 0x3f1   :  { %v1921_v13 = vadd.f32 %v1777_v27, %v7137_v55 }
 0x3f2   :  { %1884 = vadd.xlane.f32.xlu0 %v1883_v25  ;;  %1889 = vadd.xlane.f32.xlu1 %v1888_v26  ;;  %v1771_v25 = vmul.f32 %v6983_v20, %v7124_v31  ;;  %v7147_v26 = vsel %vm623_vm0, 1.0, %v8766_v0  ;;  %v552_v0 = vadd.s32 216, %v6786_v43  ;;  %v1918_v12 = vadd.f32 %v1916_v35, %v7014_v58 }
 0x3f3   :  { %8840 = vst [vmem:[#allocation13_spill] sm:$0xff] %v7147_v26  ;;  %v1780_v54 = vmul.f32 %v6983_v20, %v7147_v26  ;;  %v8843_v26 = vmov 0.0   ;;  %vm638_vm0 = vcmp.eq.s32.totalorder %v549_v11, %v7091_v29  ;;  %v554_v35 = vadd.s32 232, %v6786_v43 }
 0x3f4   :  { %v7182_v53 = vsel %vm632_vm8, 1.0, %v8843_v26  ;;  %vm644_vm3 = vcmp.eq.s32.totalorder %v551_v60, %v7091_v29  ;;  %vm647_vm8 = vcmp.eq.s32.totalorder %v552_v0, %v7091_v29 }
 0x3f5   :  { %v1789_v11 = vmul.f32 %v6983_v20, %v7182_v53  ;;  %v7208_v0 = vsel %vm644_vm3, 1.0, %v8843_v26 }
 0x3f6   :  { %1894 = vadd.xlane.f32.xlu0 %v1893_v5  ;;  %1899 = vadd.xlane.f32.xlu1 %v1898_v56  ;;  %v1908_v5 = vadd.f32 %v1906_v57, %v7014_v58  ;;  %v1911_v56 = vadd.f32 %v1771_v25, %v7137_v55  ;;  %v1783_v57 = vmul.f32 %v6983_v20, %v7157_v28  ;;  %v7185_v28 = vsel %vm635_vm9, 1.0, %v8843_v26 }
 0x3f7   :  { %v1786_v25 = vmul.f32 %v6983_v20, %v7160_v36  ;;  %8844 = vst [vmem:[#allocation16_spill] sm:$0xff] %v7185_v28  ;;  %v1923_v36 = vadd.f32 %v1921_v13, %v7014_v58  ;;  %v1792_v32 = vmul.f32 %v6983_v20, %v7185_v28  ;;  %8847 = vst [vmem:[#allocation19_spill] sm:$0xff] %v7208_v0 }
 0x3f8   :  { %v1931_v27 = vadd.f32 %v1783_v57, %v7137_v55  ;;  %v7205_v57 = vsel %vm641_vm5, 1.0, %v8843_v26 }
 0x3f9   :  { %8846 = vst [vmem:[#allocation18_spill] sm:$0xff] %v7205_v57  ;;  %v1946_v28 = vadd.f32 %v1792_v32, %v7137_v55 }
 0x3fa   :  { %1904 = vadd.xlane.f32.xlu0 %v1903_v23  ;;  %1909 = vadd.xlane.f32.xlu1 %v1908_v5  ;;  %v1913_v23 = vadd.f32 %v1911_v56, %v7014_v58  ;;  %v1926_v5 = vadd.f32 %v1780_v54, %v7137_v55  ;;  %v553_v56 = vadd.s32 224, %v6786_v43  ;;  %v1936_v54 = vadd.f32 %v1786_v25, %v7137_v55 }
 0x3fb   :  { %v7211_v25 = vsel %vm647_vm8, 1.0, %v8843_v26  ;;  %v1933_v60 = vadd.f32 %v1931_v27, %v7014_v58  ;;  %v555_v27 = vadd.s32 240, %v6786_v43 }
 0x3fc   :  { %8848 = vst [vmem:[#allocation20_spill] sm:$0xff] %v7211_v25  ;;  %v1938_v13 = vadd.f32 %v1936_v54, %v7014_v58  ;;  %vm650_vm9 = vcmp.eq.s32.totalorder %v553_v56, %v7091_v29  ;;  %v556_v54 = vadd.s32 248, %v6786_v43  ;;  %v1801_v56 = vmul.f32 %v6983_v20, %v7208_v0 }
 0x3fd   :  { %vm656_vm5 = vcmp.eq.s32.totalorder %v555_v27, %v7091_v29 }
 0x3fe   :  { %1914 = vadd.xlane.f32.xlu0 %v1913_v23  ;;  %1919 = vadd.xlane.f32.xlu1 %v1918_v12  ;;  %v1928_v23 = vadd.f32 %v1926_v5, %v7014_v58  ;;  %v7202_v12 = vsel %vm638_vm0, 1.0, %v8843_v26  ;;  %vm653_vm0 = vcmp.eq.s32.totalorder %v554_v35, %v7091_v29  ;;  %v1941_v5 = vadd.f32 %v1789_v11, %v7137_v55 }
 0x3ff   :  { %8845 = vst [vmem:[#allocation17_spill] sm:$0xff] %v7202_v12  ;;  %v1804_v35 = vmul.f32 %v6983_v20, %v7211_v25  ;;  %v7230_v11 = vsel %vm650_vm9, 1.0, %v8843_v26  ;;  %v7233_v32 = vsel %vm653_vm0, 1.0, %v8843_v26  ;;  %vm659_vm3 = vcmp.eq.s32.totalorder %v556_v54, %v7091_v29 }
 0x400   :  { %8849 = vst [vmem:[#allocation21_spill] sm:$0xff] %v7230_v11  ;;  %8850 = vst [vmem:[#allocation22_spill] sm:$0xff] %v7233_v32  ;;  %v557_v25 = vadd.s32 256, %v6786_v43  ;;  %v1807_v0 = vmul.f32 %v6983_v20, %v7230_v11  ;;  %v1961_v27 = vadd.f32 %v1801_v56, %v7137_v55  ;;  %v7253_v54 = vsel %vm656_vm5, 1.0, %v8843_v26 }
 0x401   :  { %v1966_v29 = vadd.f32 %v1804_v35, %v7137_v55  ;;  %v1813_v11 = vmul.f32 %v6983_v20, %v7253_v54 }
 0x402   :  { %1924 = vadd.xlane.f32.xlu0 %v1923_v36  ;;  %1929 = vadd.xlane.f32.xlu1 %v1928_v23  ;;  %v1795_v36 = vmul.f32 %v6983_v20, %v7202_v12  ;;  %v1798_v23 = vmul.f32 %v6983_v20, %v7205_v57  ;;  %v1943_v57 = vadd.f32 %v1941_v5, %v7014_v58 }
 0x403   :  { %v1810_v5 = vmul.f32 %v6983_v20, %v7233_v32  ;;  %v560_v32 = vadd.s32 280, %v6786_v43  ;;  %v1963_v56 = vadd.f32 %v1961_v27, %v7014_v58  ;;  %v1968_v35 = vadd.f32 %v1966_v29, %v7014_v58 }
 0x404   :  { %v1956_v12 = vadd.f32 %v1798_v23, %v7137_v55 }
 0x406   :  { %1934 = vadd.xlane.f32.xlu0 %v1933_v60  ;;  %1939 = vadd.xlane.f32.xlu1 %v1938_v13  ;;  %v1948_v60 = vadd.f32 %v1946_v28, %v7014_v58  ;;  %v1951_v13 = vadd.f32 %v1795_v36, %v7137_v55  ;;  %v564_v28 = vadd.s32 256, %v6951_v30  ;;  %v558_v36 = vadd.s32 264, %v6786_v43 }
 0x407   :  { %v559_v30 = vadd.s32 272, %v6786_v43 }
 0x408   :  { %v1953_v23 = vadd.f32 %v1951_v13, %v7014_v58  ;;  %v1971_v13 = vadd.f32 %v1807_v0, %v7137_v55  ;;  %vm663_vm8 = vcmp.eq.s32.totalorder %v557_v25, %v564_v28  ;;  %vm666_vm9 = vcmp.eq.s32.totalorder %v558_v36, %v564_v28 }
 0x409   :  { %v7272_v0 = vsel %vm666_vm9, 1.0, %v8843_v26  ;;  %vm669_vm0 = vcmp.eq.s32.totalorder %v559_v30, %v564_v28  ;;  %vm672_vm5 = vcmp.eq.s32.totalorder %v560_v32, %v564_v28  ;;  %v1981_v36 = vadd.f32 %v1813_v11, %v7137_v55 }
 0x40a   :  { %1944 = vadd.xlane.f32.xlu0 %v1943_v57  ;;  %1949 = vadd.xlane.f32.xlu1 %v1948_v60  ;;  %v1958_v57 = vadd.f32 %v1956_v12, %v7014_v58  ;;  %v7256_v60 = vsel %vm659_vm3, 1.0, %v8843_v26  ;;  %v1976_v12 = vadd.f32 %v1810_v5, %v7137_v55  ;;  %8852 = vst [vmem:[#allocation24_spill] sm:$0xff] %v7272_v0  ;;  %v7286_v32 = vsel %vm672_vm5, 1.0, %v8843_v26 }
 0x40b   :  { %v1973_v25 = vadd.f32 %v1971_v13, %v7014_v58  ;;  %8854 = vst [vmem:[#allocation26_spill] sm:$0xff] %v7286_v32  ;;  %v1983_v28 = vadd.f32 %v1981_v36, %v7014_v58  ;;  %v1991_v30 = vadd.f32 %v7137_v55, %v7000_v50 }
 0x40c   :  { %v1978_v5 = vadd.f32 %v1976_v12, %v7014_v58 }
 0x40e   :  { %1954 = vadd.xlane.f32.xlu0 %v1953_v23  ;;  %1959 = vadd.xlane.f32.xlu1 %v1958_v57  ;;  %v1816_v23 = vmul.f32 %v6983_v20, %v7256_v60  ;;  %v7269_v57 = vsel %vm663_vm8, 1.0, %v8843_v26 }
 0x40f   :  { %8851 = vst [vmem:[#allocation23_spill] sm:$0xff] %v7269_v57  ;;  %v1820_v29 = vmul.f32 %v6987_v46, %v7269_v57 }
 0x410   :  { %v1986_v27 = vadd.f32 %v1816_v23, %v7137_v55 }
 0x411   :  { %v1992_v13 = vsel %vm8780_vm2, %v1820_v29, 0.0  ;;  %v2921_v29 = vld [vmem:[#allocation2 + $0x1] ss:$2 sm:$0x3] }
 0x412   :  { %1964 = vadd.xlane.f32.xlu0 %v1963_v56  ;;  %1969 = vadd.xlane.f32.xlu1 %v1968_v35  ;;  %v1823_v56 = vmul.f32 %v6987_v46, %v7272_v0  ;;  %v7283_v35 = vsel %vm669_vm0, 1.0, %v8843_v26  ;;  %v1988_v11 = vadd.f32 %v1986_v27, %v7014_v58  ;;  %v8784_v27 = vmov 1.0  }
 0x413   :  { %8853 = vst [vmem:[#allocation25_spill] sm:$0xff] %v7283_v35  ;;  %v1826_v23 = vmul.f32 %v6987_v46, %v7283_v35  ;;  %2294 = vmatprep.mubr.f32.mxu1 %v8784_v27  ;;  %2436 = vmatprep.mubr.f32.mxu0 %v8784_v27 }
 0x414   :  { %v1997_v12 = vsel %vm8780_vm2, %v1823_v56, 0.0  ;;  %v2930_v56 = vld [vmem:[#allocation2 + $0x1] ss:$2 sm:$0x3] }
 0x415   :  { %v1998_v0 = vadd.f32 %v1997_v12, %v1991_v30  ;;  %v2002_v36 = vsel %vm8780_vm2, %v1826_v23, 0.0  ;;  %v2984_v12 = vld [vmem:[#allocation2 + $0x1] ss:$2 sm:$0x3] }
 0x416   :  { %1974 = vadd.xlane.f32.xlu0 %v1973_v25  ;;  %1979 = vadd.xlane.f32.xlu1 %v1978_v5  ;;  %v1829_v25 = vmul.f32 %v6987_v46, %v7286_v32  ;;  %v1993_v5 = vadd.f32 %v1992_v13, %v1991_v30  ;;  %v2003_v50 = vadd.f32 %v2002_v36, %v1991_v30  ;;  %v2957_v13 = vld [vmem:[#allocation2 + $0x1] ss:$2 sm:$0x3] }
 0x417   :  { %v2975_v23 = vld [vmem:[#allocation2 + $0x1] ss:$2 sm:$0x3] }
 0x418   :  { %v2007_v58 = vsel %vm8780_vm2, %v1829_v25, 0.0  ;;  %v3002_v25 = vld [vmem:[#allocation2 + $0x1] ss:$2 sm:$0x3] }
 0x419   :  { %v2008_v55 = vadd.f32 %v2007_v58, %v1991_v30  ;;  %v2966_v30 = vld [vmem:[#allocation2 + $0x1] ss:$2 sm:$0x3] }
 0x41a   :  { %1984 = vadd.xlane.f32.xlu0 %v1983_v28  ;;  %1989 = vadd.xlane.f32.xlu1 %v1988_v11  ;;  %v2912_v28 = vld [vmem:[#allocation2 + $0x1] ss:$2 sm:$0x3] }
 0x41b   :  { %v2948_v11 = vld [vmem:[#allocation2 + $0x1] ss:$2 sm:$0x3] }
 0x41c   :  { %v3020_v36 = vld [vmem:[#allocation2 + $0x1] ss:$2 sm:$0x3] }
 0x41d   :  { %v3011_v58 = vld [vmem:[#allocation2 + $0x1] ss:$2 sm:$0x3] }
 0x41e   :  { %1994 = vadd.xlane.f32.xlu0 %v1993_v5  ;;  %1999 = vadd.xlane.f32.xlu1 %v1998_v0  ;;  %v2939_v0 = vld [vmem:[#allocation2 + $0x1] ss:$2 sm:$0x3] }
 0x41f   :  { %v2993_v5 = vld [vmem:[#allocation2 + $0x1] ss:$2 sm:$0x3] }
 0x422   :  { %2004 = vadd.xlane.f32.xlu0 %v2003_v50  ;;  %2009 = vadd.xlane.f32.xlu1 %v2008_v55 }
 0x433   :  { %2923 = vrot.lane.b32.xlu1 %v2921_v29, %s6345_s0  ;;  %v8798_v29 = vmov 1.0|1.0  }
 0x437   :  { %2932 = vrot.lane.b32.xlu1 %v2930_v56, %s6348_s26 }
 0x438   :  { %2914 = vrot.lane.b32.xlu0 %v2912_v28, %s6346_s23  ;;  %s6376_s23 = smov [#allocation9]  }
 0x43b   :  { %2950 = vrot.lane.b32.xlu1 %v2948_v11, %s6344_s3 }
 0x43c   :  { %2941 = vrot.lane.b32.xlu0 %v2939_v0, %s6347_s24 }
 0x43f   :  { %2968 = vrot.lane.b32.xlu1 %v2966_v30, %s6351_s29 }
 0x440   :  { %2959 = vrot.lane.b32.xlu0 %v2957_v13, %s6349_s27 }
 0x443   :  { %2986 = vrot.lane.b32.xlu1 %v2984_v12, %s6352_s30 }
 0x444   :  { %2977 = vrot.lane.b32.xlu0 %v2975_v23, %s6350_s28 }
 0x447   :  { %3004 = vrot.lane.b32.xlu1 %v3002_v25, %s6354_s10  ;;  %s8890_s10 = smov 64  }
 0x448   :  { %2995 = vrot.lane.b32.xlu0 %v2993_v5, %s6343_s12 }
 0x44b   :  { %3022 = vrot.lane.b32.xlu1 %v3020_v36, %s6356_s13 }
 0x44c   :  { %3013 = vrot.lane.b32.xlu0 %v3011_v58, %s6353_s9  ;;  %s8889_s9 = smov 77  }
 0x46b   :  { %v7315_v50 = vpop.xlane.xlu0 %1839  ;;  %v7317_v55 = vpop.xlane.xlu1 %1834 }
 0x46c   :  { %vm2014_vm3 = vcmp.gt.f32.partialorder %v7315_v50, %v6979_v42  ;;  %vm2011_vm8 = vcmp.gt.f32.partialorder %v7317_v55, %v6979_v42  ;;  %vm2012_vm9 = vcmp.gt.f32.partialorder %v7317_v55, %v6983_v20  ;;  %vm2015_vm0 = vcmp.gt.f32.partialorder %v7315_v50, %v6983_v20 }
 0x46d   :  { %vm5741_vm5 = vmpackc.low %vm2014_vm3, %vm2011_vm8 }
 0x46e   :  { %vm5739_vm2 = vmpackc.low %vm2015_vm0, %vm2012_vm9 }
 0x46f   :  { %5740 = vmatprep.subr.msk.bf16.mxu1 %vm5739_vm2, %v8798_v29  ;;  %v7328_v56 = vpop.xlane.xlu0 %1844  ;;  %v7330_v28 = vpop.xlane.xlu1 %1849 }
 0x470   :  { %vm2017_vm4 = vcmp.gt.f32.partialorder %v7328_v56, %v6979_v42  ;;  %5742 = vmatpush1.bf16.msk.msra.mxu1 %vm5741_vm5, %v8798_v29  ;;  %vm2020_vm6 = vcmp.gt.f32.partialorder %v7330_v28, %v6979_v42  ;;  %vm2018_vm11 = vcmp.gt.f32.partialorder %v7328_v56, %v6983_v20  ;;  %vm2021_vm3 = vcmp.gt.f32.partialorder %v7330_v28, %v6983_v20 }
 0x471   :  { %vm5745_vm8 = vmpackc.low %vm2020_vm6, %vm2017_vm4 }
 0x472   :  { %vm5743_vm2 = vmpackc.low %vm2021_vm3, %vm2018_vm11 }
 0x473   :  { %5744 = vmatprep.subr.msk.bf16.mxu1 %vm5743_vm2, %v8798_v29  ;;  %v7342_v11 = vpop.xlane.xlu0 %1854  ;;  %v7344_v0 = vpop.xlane.xlu1 %1859 }
 0x474   :  { %vm2023_vm9 = vcmp.gt.f32.partialorder %v7342_v11, %v6979_v42  ;;  %5746 = vmatpush1.bf16.msk.msra.mxu1 %vm5745_vm8, %v8798_v29  ;;  %vm2026_vm0 = vcmp.gt.f32.partialorder %v7344_v0, %v6979_v42  ;;  %vm2024_vm5 = vcmp.gt.f32.partialorder %v7342_v11, %v6983_v20  ;;  %vm2027_vm4 = vcmp.gt.f32.partialorder %v7344_v0, %v6983_v20 }
 0x475   :  { %vm5749_vm6 = vmpackc.low %vm2026_vm0, %vm2023_vm9 }
 0x476   :  { %vm5747_vm11 = vmpackc.low %vm2027_vm4, %vm2024_vm5 }
 0x477   :  { %5748 = vmatprep.subr.msk.bf16.mxu1 %vm5747_vm11, %v8798_v29  ;;  %v7356_v30 = vpop.xlane.xlu0 %1864  ;;  %v7358_v13 = vpop.xlane.xlu1 %1869 }
 0x478   :  { %vm2029_vm3 = vcmp.gt.f32.partialorder %v7356_v30, %v6979_v42  ;;  %5750 = vmatpush1.bf16.msk.msra.mxu1 %vm5749_vm6, %v8798_v29  ;;  %vm2032_vm8 = vcmp.gt.f32.partialorder %v7358_v13, %v6979_v42  ;;  %vm2030_vm2 = vcmp.gt.f32.partialorder %v7356_v30, %v6983_v20  ;;  %vm2033_vm9 = vcmp.gt.f32.partialorder %v7358_v13, %v6983_v20 }
 0x479   :  { %vm5753_vm0 = vmpackc.low %vm2032_vm8, %vm2029_vm3 }
 0x47a   :  { %vm5751_vm5 = vmpackc.low %vm2033_vm9, %vm2030_vm2 }
 0x47b   :  { %5752 = vmatprep.subr.msk.bf16.mxu1 %vm5751_vm5, %v8798_v29  ;;  %v7370_v12 = vpop.xlane.xlu0 %1874  ;;  %v7372_v23 = vpop.xlane.xlu1 %1879 }
 0x47c   :  { %vm2035_vm4 = vcmp.gt.f32.partialorder %v7370_v12, %v6979_v42  ;;  %5754 = vmatpush1.bf16.msk.msra.mxu1 %vm5753_vm0, %v8798_v29  ;;  %vm2038_vm6 = vcmp.gt.f32.partialorder %v7372_v23, %v6979_v42  ;;  %vm2036_vm11 = vcmp.gt.f32.partialorder %v7370_v12, %v6983_v20  ;;  %vm2039_vm3 = vcmp.gt.f32.partialorder %v7372_v23, %v6983_v20 }
 0x47d   :  { %vm5757_vm8 = vmpackc.low %vm2038_vm6, %vm2035_vm4 }
 0x47e   :  { %vm5755_vm2 = vmpackc.low %vm2039_vm3, %vm2036_vm11 }
 0x47f   :  { %5756 = vmatprep.subr.msk.bf16.mxu1 %vm5755_vm2, %v8798_v29  ;;  %v7384_v25 = vpop.xlane.xlu0 %1884  ;;  %v7386_v5 = vpop.xlane.xlu1 %1889 }
 0x480   :  { %vm2041_vm9 = vcmp.gt.f32.partialorder %v7384_v25, %v6979_v42  ;;  %5758 = vmatpush1.bf16.msk.msra.mxu1 %vm5757_vm8, %v8798_v29  ;;  %vm2044_vm0 = vcmp.gt.f32.partialorder %v7386_v5, %v6979_v42  ;;  %vm2042_vm5 = vcmp.gt.f32.partialorder %v7384_v25, %v6983_v20  ;;  %vm2045_vm4 = vcmp.gt.f32.partialorder %v7386_v5, %v6983_v20 }
 0x481   :  { %vm5761_vm6 = vmpackc.low %vm2044_vm0, %vm2041_vm9 }
 0x482   :  { %vm5759_vm11 = vmpackc.low %vm2045_vm4, %vm2042_vm5 }
 0x483   :  { %5760 = vmatprep.subr.msk.bf16.mxu1 %vm5759_vm11, %v8798_v29  ;;  %v7398_v36 = vpop.xlane.xlu0 %1894  ;;  %v7400_v58 = vpop.xlane.xlu1 %1899  ;;  %vm2016_vm11 = vcmp.gt.f32.partialorder %v7315_v50, %v6987_v46 }
 0x484   :  { %vm2047_vm3 = vcmp.gt.f32.partialorder %v7398_v36, %v6979_v42  ;;  %5762 = vmatpush1.bf16.msk.msra.mxu1 %vm5761_vm6, %v8798_v29  ;;  %vm2050_vm8 = vcmp.gt.f32.partialorder %v7400_v58, %v6979_v42  ;;  %vm2048_vm2 = vcmp.gt.f32.partialorder %v7398_v36, %v6983_v20  ;;  %vm2051_vm9 = vcmp.gt.f32.partialorder %v7400_v58, %v6983_v20 }
 0x485   :  { %vm5765_vm0 = vmpackc.low %vm2050_vm8, %vm2047_vm3  ;;  %vm2013_vm3 = vcmp.gt.f32.partialorder %v7317_v55, %v6987_v46 }
 0x486   :  { %vm5763_vm5 = vmpackc.low %vm2051_vm9, %vm2048_vm2 }
 0x487   :  { %5764 = vmatprep.subr.msk.bf16.mxu1 %vm5763_vm5, %v8798_v29  ;;  %v7412_v27 = vpop.xlane.xlu0 %1904  ;;  %v7414_v32 = vpop.xlane.xlu1 %1909  ;;  %vm5813_vm15 = vmpackc.low %vm2016_vm11, %vm2013_vm3 }
 0x488   :  { %vm2053_vm4 = vcmp.gt.f32.partialorder %v7412_v27, %v6979_v42  ;;  %5766 = vmatpush1.bf16.msk.msra.mxu1 %vm5765_vm0, %v8798_v29  ;;  %vm2056_vm6 = vcmp.gt.f32.partialorder %v7414_v32, %v6979_v42  ;;  %vm2054_vm8 = vcmp.gt.f32.partialorder %v7412_v27, %v6983_v20  ;;  %vm2057_vm2 = vcmp.gt.f32.partialorder %v7414_v32, %v6983_v20 }
 0x489   :  { %vm5769_vm9 = vmpackc.low %vm2056_vm6, %vm2053_vm4 }
 0x48a   :  { %vm5767_vm5 = vmpackc.low %vm2057_vm2, %vm2054_vm8  ;;  %vm2019_vm8 = vcmp.gt.f32.partialorder %v7328_v56, %v6987_v46 }
 0x48b   :  { %5768 = vmatprep.subr.msk.bf16.mxu1 %vm5767_vm5, %v8798_v29  ;;  %v1915_v35 = vpop.xlane.xlu0 %1914  ;;  %v1920_v57 = vpop.xlane.xlu1 %1919 }
 0x48c   :  { %vm2059_vm0 = vcmp.gt.f32.partialorder %v1915_v35, %v6979_v42  ;;  %5770 = vmatpush1.bf16.msk.msra.mxu1 %vm5769_vm9, %v8798_v29  ;;  %vm2062_vm7 = vcmp.gt.f32.partialorder %v1920_v57, %v6979_v42  ;;  %vm2060_vm13 = vcmp.gt.f32.partialorder %v1915_v35, %v6983_v20  ;;  %vm2063_vm12 = vcmp.gt.f32.partialorder %v1920_v57, %v6983_v20 }
 0x48d   :  { %vm5771_vm14 = vmpackc.low %vm2063_vm12, %vm2060_vm13  ;;  %vm2061_vm10 = vcmp.gt.f32.partialorder %v1915_v35, %v6987_v46  ;;  %vm2064_vm4 = vcmp.gt.f32.partialorder %v1920_v57, %v6987_v46 }
 0x48e   :  { %5772 = vmatprep.subr.msk.bf16.mxu1 %vm5771_vm14, %v8798_v29  ;;  %vm5811_vm6 = vmpackc.low %vm2064_vm4, %vm2061_vm10  ;;  %vm2022_vm10 = vcmp.gt.f32.partialorder %v7330_v28, %v6987_v46 }
 0x48f   :  { %5812 = vmatprep.subr.msk.bf16.mxu0 %vm5811_vm6, %v8798_v29  ;;  %v1925_v50 = vpop.xlane.xlu0 %1924  ;;  %vm5773_vm2 = vmpackc.low %vm2062_vm7, %vm2059_vm0  ;;  %v1930_v55 = vpop.xlane.xlu1 %1929  ;;  %vm2025_vm0 = vcmp.gt.f32.partialorder %v7342_v11, %v6987_v46  ;;  %v2520_v11 = vld [vmem:[%s8713_s4 + $0x10] sm:$0xff] }
 0x490   :  { %vm2065_vm9 = vcmp.gt.f32.partialorder %v1925_v50, %v6979_v42  ;;  %5774 = vmatpush1.bf16.msk.msra.mxu1 %vm5773_vm2, %v8798_v29  ;;  %5814 = vmatpush3.bf16.msk.msra.mxu0 %vm5813_vm15, %v8798_v29  ;;  %vm2068_vm12 = vcmp.gt.f32.partialorder %v1930_v55, %v6979_v42  ;;  %vm2066_vm13 = vcmp.gt.f32.partialorder %v1925_v50, %v6983_v20  ;;  %vm5817_vm6 = vmpackc.low %vm2022_vm10, %vm2019_vm8 }
 0x491   :  { %vm2069_vm14 = vcmp.gt.f32.partialorder %v1930_v55, %v6983_v20  ;;  %vm2067_vm11 = vcmp.gt.f32.partialorder %v1925_v50, %v6987_v46  ;;  %vm2070_vm7 = vcmp.gt.f32.partialorder %v1930_v55, %v6987_v46  ;;  %vm5777_vm3 = vmpackc.low %vm2068_vm12, %vm2065_vm9  ;;  %vm2028_vm12 = vcmp.gt.f32.partialorder %v7344_v0, %v6987_v46 }
 0x492   :  { %vm5775_vm5 = vmpackc.low %vm2069_vm14, %vm2066_vm13  ;;  %vm2034_vm8 = vcmp.gt.f32.partialorder %v7358_v13, %v6987_v46 }
 0x493   :  { %5776 = vmatprep.subr.msk.bf16.mxu1 %vm5775_vm5, %v8798_v29  ;;  %vm5815_vm15 = vmpackc.low %vm2070_vm7, %vm2067_vm11  ;;  %v1935_v57 = vpop.xlane.xlu0 %1934  ;;  %v1940_v35 = vpop.xlane.xlu1 %1939 }
 0x494   :  { %5816 = vmatprep.subr.msk.bf16.mxu0 %vm5815_vm15, %v8798_v29  ;;  %vm2071_vm4 = vcmp.gt.f32.partialorder %v1935_v57, %v6979_v42  ;;  %5778 = vmatpush1.bf16.msk.msra.mxu1 %vm5777_vm3, %v8798_v29  ;;  %vm2074_vm2 = vcmp.gt.f32.partialorder %v1940_v35, %v6979_v42  ;;  %vm2072_vm9 = vcmp.gt.f32.partialorder %v1935_v57, %v6983_v20 }
 0x495   :  { %5818 = vmatpush3.bf16.msk.msra.mxu0 %vm5817_vm6, %v8798_v29  ;;  %vm2075_vm13 = vcmp.gt.f32.partialorder %v1940_v35, %v6983_v20  ;;  %vm2073_vm14 = vcmp.gt.f32.partialorder %v1935_v57, %v6987_v46  ;;  %vm2076_vm11 = vcmp.gt.f32.partialorder %v1940_v35, %v6987_v46  ;;  %vm5781_vm7 = vmpackc.low %vm2074_vm2, %vm2071_vm4  ;;  %vm2031_vm3 = vcmp.gt.f32.partialorder %v7356_v30, %v6987_v46 }
 0x496   :  { %vm5779_vm10 = vmpackc.low %vm2075_vm13, %vm2072_vm9  ;;  %v8860_v35 = vmov 1.0  }
 0x497   :  { %5780 = vmatprep.subr.msk.bf16.mxu1 %vm5779_vm10, %v8798_v29  ;;  %vm5819_vm5 = vmpackc.low %vm2076_vm11, %vm2073_vm14  ;;  %v1945_v56 = vpop.xlane.xlu0 %1944  ;;  %v1950_v28 = vpop.xlane.xlu1 %1949 }
 0x498   :  { %5820 = vmatprep.subr.msk.bf16.mxu0 %vm5819_vm5, %v8798_v29  ;;  %vm2077_vm15 = vcmp.gt.f32.partialorder %v1945_v56, %v6979_v42  ;;  %vm2078_vm6 = vcmp.gt.f32.partialorder %v1945_v56, %v6983_v20  ;;  %5782 = vmatpush1.bf16.msk.msra.mxu1 %vm5781_vm7, %v8798_v29  ;;  %vm5821_vm4 = vmpackc.low %vm2028_vm12, %vm2025_vm0  ;;  %vm2079_vm2 = vcmp.gt.f32.partialorder %v1945_v56, %v6987_v46  ;;  %v2534_v56 = vld [vmem:[%s8713_s4 + $0x80] sm:$0xff] }
 0x499   :  { %5822 = vmatpush3.bf16.msk.msra.mxu0 %vm5821_vm4, %v8798_v29  ;;  %vm2080_vm9 = vcmp.gt.f32.partialorder %v1950_v28, %v6979_v42  ;;  %vm2081_vm13 = vcmp.gt.f32.partialorder %v1950_v28, %v6983_v20  ;;  %vm2082_vm14 = vcmp.gt.f32.partialorder %v1950_v28, %v6987_v46  ;;  %vm7494_vm11 = vmpackc.low %vm2034_vm8, %vm2031_vm3  ;;  %vm2037_vm12 = vcmp.gt.f32.partialorder %v7370_v12, %v6987_v46  ;;  %v2535_v28 = vld [vmem:[%s8713_s4 + $0x88] sm:$0xff] }
 0x49a   :  { %vm5785_vm0 = vmpackc.low %vm2080_vm9, %vm2077_vm15  ;;  %vm2040_vm8 = vcmp.gt.f32.partialorder %v7372_v23, %v6987_v46 }
 0x49b   :  { %vm5783_vm7 = vmpackc.low %vm2081_vm13, %vm2078_vm6  ;;  %v1955_v0 = vpop.xlane.xlu0 %1954  ;;  %v1960_v50 = vpop.xlane.xlu1 %1959 }
 0x49c   :  { %5784 = vmatprep.subr.msk.bf16.mxu1 %vm5783_vm7, %v8798_v29  ;;  %vm5823_vm10 = vmpackc.low %vm2082_vm14, %vm2079_vm2  ;;  %vm2083_vm5 = vcmp.gt.f32.partialorder %v1955_v0, %v6979_v42  ;;  %vm2084_vm4 = vcmp.gt.f32.partialorder %v1955_v0, %v6983_v20  ;;  %vm2085_vm1 = vcmp.gt.f32.partialorder %v1955_v0, %v6987_v46  ;;  %vm2086_vm3 = vcmp.gt.f32.partialorder %v1960_v50, %v6979_v42  ;;  %v2521_v0 = vld [vmem:[%s8713_s4 + $0x18] sm:$0xff] }
 0x49d   :  { %5824 = vmatprep.subr.msk.bf16.mxu0 %vm5823_vm10, %v8798_v29  ;;  %5786 = vmatpush1.bf16.msk.msra.mxu1 %vm5785_vm0, %v8798_v29  ;;  %vm2087_vm15 = vcmp.gt.f32.partialorder %v1960_v50, %v6983_v20  ;;  %vm2088_vm6 = vcmp.gt.f32.partialorder %v1960_v50, %v6987_v46  ;;  %vm5789_vm2 = vmpackc.low %vm2086_vm3, %vm2083_vm5  ;;  %vm2046_vm5 = vcmp.gt.f32.partialorder %v7386_v5, %v6987_v46 }
 0x49e   :  { %5826 = vmatpush3.bf16.msk.msra.mxu0 %vm7494_vm11, %v8798_v29  ;;  %vm5787_vm9 = vmpackc.low %vm2087_vm15, %vm2084_vm4 }
 0x49f   :  { %5788 = vmatprep.subr.msk.bf16.mxu1 %vm5787_vm9, %v8798_v29  ;;  %vm5827_vm13 = vmpackc.low %vm2088_vm6, %vm2085_vm1  ;;  %v1965_v30 = vpop.xlane.xlu0 %1964  ;;  %v1970_v13 = vpop.xlane.xlu1 %1969  ;;  %vm2043_vm1 = vcmp.gt.f32.partialorder %v7384_v25, %v6987_v46 }
 0x4a0   :  { %5828 = vmatprep.subr.msk.bf16.mxu0 %vm5827_vm13, %v8798_v29  ;;  %vm2089_vm14 = vcmp.gt.f32.partialorder %v1965_v30, %v6979_v42  ;;  %vm2090_vm0 = vcmp.gt.f32.partialorder %v1965_v30, %v6983_v20  ;;  %vm2091_vm7 = vcmp.gt.f32.partialorder %v1965_v30, %v6987_v46  ;;  %vm5829_vm11 = vmpackc.low %vm2040_vm8, %vm2037_vm12  ;;  %vm2092_vm10 = vcmp.gt.f32.partialorder %v1970_v13, %v6979_v42 }
 0x4a1   :  { %5790 = vmatpush1.bf16.msk.msra.mxu1 %vm5789_vm2, %v8798_v29  ;;  %vm2093_vm4 = vcmp.gt.f32.partialorder %v1970_v13, %v6983_v20  ;;  %vm2094_vm3 = vcmp.gt.f32.partialorder %v1970_v13, %v6987_v46  ;;  %vm5793_vm15 = vmpackc.low %vm2092_vm10, %vm2089_vm14  ;;  %v5849_v13 = vpack.c.bf16 %v2535_v28, %v2534_v56 }
 0x4a2   :  { %5830 = vmatpush3.bf16.msk.msra.mxu0 %vm5829_vm11, %v8798_v29  ;;  %vm5791_vm6 = vmpackc.low %vm2093_vm4, %vm2090_vm0  ;;  %vm2049_vm0 = vcmp.gt.f32.partialorder %v7398_v36, %v6987_v46 }
 0x4a3   :  { %5792 = vmatprep.subr.msk.bf16.mxu1 %vm5791_vm6, %v8798_v29  ;;  %vm5831_vm12 = vmpackc.low %vm2094_vm3, %vm2091_vm7  ;;  %v1975_v12 = vpop.xlane.xlu0 %1974  ;;  %v1980_v23 = vpop.xlane.xlu1 %1979  ;;  %vm2052_vm7 = vcmp.gt.f32.partialorder %v7400_v58, %v6987_v46 }
 0x4a4   :  { %5832 = vmatprep.subr.msk.bf16.mxu0 %vm5831_vm12, %v8798_v29  ;;  %vm2095_vm8 = vcmp.gt.f32.partialorder %v1975_v12, %v6979_v42  ;;  %vm2096_vm9 = vcmp.gt.f32.partialorder %v1975_v12, %v6983_v20  ;;  %vm2097_vm2 = vcmp.gt.f32.partialorder %v1975_v12, %v6987_v46  ;;  %vm5833_vm13 = vmpackc.low %vm2046_vm5, %vm2043_vm1  ;;  %vm2098_vm14 = vcmp.gt.f32.partialorder %v1980_v23, %v6979_v42  ;;  %v2518_v12 = vld [vmem:[%s8713_s4] sm:$0xff] }
 0x4a5   :  { %5794 = vmatpush1.bf16.msk.msra.mxu1 %vm5793_vm15, %v8798_v29  ;;  %vm2099_vm11 = vcmp.gt.f32.partialorder %v1980_v23, %v6983_v20  ;;  %vm2100_vm10 = vcmp.gt.f32.partialorder %v1980_v23, %v6987_v46  ;;  %vm5797_vm4 = vmpackc.low %vm2098_vm14, %vm2095_vm8  ;;  %v2519_v23 = vld [vmem:[%s8713_s4 + $0x8] sm:$0xff] }
 0x4a6   :  { %5834 = vmatpush3.bf16.msk.msra.mxu0 %vm5833_vm13, %v8798_v29  ;;  %vm5795_vm3 = vmpackc.low %vm2099_vm11, %vm2096_vm9  ;;  %vm2055_vm9 = vcmp.gt.f32.partialorder %v7412_v27, %v6987_v46  ;;  %v8859_v27 = vmov 0.0|0.0  }
 0x4a7   :  { %5796 = vmatprep.subr.msk.bf16.mxu1 %vm5795_vm3, %v8798_v29  ;;  %vm5835_vm1 = vmpackc.low %vm2100_vm10, %vm2097_vm2  ;;  %v1985_v25 = vpop.xlane.xlu0 %1984  ;;  %v1990_v5 = vpop.xlane.xlu1 %1989  ;;  %vm2058_vm2 = vcmp.gt.f32.partialorder %v7414_v32, %v6987_v46 }
 0x4a8   :  { %5836 = vmatprep.subr.msk.bf16.mxu0 %vm5835_vm1, %v8798_v29  ;;  %vm2101_vm5 = vcmp.gt.f32.partialorder %v1985_v25, %v6979_v42  ;;  %vm2102_vm6 = vcmp.gt.f32.partialorder %v1985_v25, %v6983_v20  ;;  %vm2103_vm15 = vcmp.gt.f32.partialorder %v1985_v25, %v6987_v46  ;;  %vm5837_vm12 = vmpackc.low %vm2052_vm7, %vm2049_vm0  ;;  %vm2104_vm8 = vcmp.gt.f32.partialorder %v1990_v5, %v6979_v42 }
 0x4a9   :  { %5798 = vmatpush1.bf16.msk.msra.mxu1 %vm5797_vm4, %v8798_v29  ;;  %vm2105_vm13 = vcmp.gt.f32.partialorder %v1990_v5, %v6983_v20  ;;  %vm2106_vm14 = vcmp.gt.f32.partialorder %v1990_v5, %v6987_v46  ;;  %vm5801_vm11 = vmpackc.low %vm2104_vm8, %vm2101_vm5 }
 0x4aa   :  { %5838 = vmatpush3.bf16.msk.msra.mxu0 %vm5837_vm12, %v8798_v29  ;;  %vm5799_vm10 = vmpackc.low %vm2105_vm13, %vm2102_vm6 }
 0x4ab   :  { %5800 = vmatprep.subr.msk.bf16.mxu1 %vm5799_vm10, %v8798_v29  ;;  %vm5839_vm0 = vmpackc.low %vm2106_vm14, %vm2103_vm15  ;;  %v1995_v36 = vpop.xlane.xlu0 %1994  ;;  %v2000_v58 = vpop.xlane.xlu1 %1999 }
 0x4ac   :  { %5840 = vmatprep.subr.msk.bf16.mxu0 %vm5839_vm0, %v8798_v29  ;;  %vm2107_vm7 = vcmp.gt.f32.partialorder %v1995_v36, %v6979_v42  ;;  %vm2108_vm3 = vcmp.gt.f32.partialorder %v1995_v36, %v6983_v20  ;;  %vm2109_vm4 = vcmp.gt.f32.partialorder %v1995_v36, %v6987_v46  ;;  %vm5841_vm1 = vmpackc.low %vm2058_vm2, %vm2055_vm9  ;;  %vm2110_vm5 = vcmp.gt.f32.partialorder %v2000_v58, %v6979_v42  ;;  %v2536_v36 = vld [vmem:[%s8713_s4 + $0x90] sm:$0xff] }
 0x4ad   :  { %5802 = vmatpush1.bf16.msk.msra.mxu1 %vm5801_vm11, %v8798_v29  ;;  %vm2111_vm6 = vcmp.gt.f32.partialorder %v2000_v58, %v6983_v20  ;;  %vm2112_vm15 = vcmp.gt.f32.partialorder %v2000_v58, %v6987_v46  ;;  %vm5805_vm12 = vmpackc.low %vm2110_vm5, %vm2107_vm7  ;;  %v2537_v58 = vld [vmem:[%s8713_s4 + $0x98] sm:$0xff]  ;;  %vm8865_vm5 = vcmask 1039360  }
 0x4ae   :  { %5842 = vmatpush3.bf16.msk.msra.mxu0 %vm5841_vm1, %v8798_v29  ;;  %vm7590_vm8 = vmpackc.low %vm2112_vm15, %vm2109_vm4  ;;  %vm8801_vm4 = vmmov 0   ;;  %vm8867_vm15 = vnez %v8804_v8 }
 0x4af   :  { %vm5803_vm13 = vmpackc.low %vm2111_vm6, %vm2108_vm3  ;;  %5843 = vmatprep.subr.bf16.mxu0 %v8859_v27  ;;  %v2005_v32 = vpop.xlane.xlu0 %2004  ;;  %v2010_v57 = vpop.xlane.xlu1 %2009  ;;  %vm8866_vm6 = vcmask 1031168  }
 0x4b0   :  { %2295 = vmatmul.mubr.f32.vlgmr.msra.gmra.mrb[4].mxu1 %v8860_v35  ;;  %5804 = vmatprep.subr.msk.bf16.mxu1 %vm5803_vm13, %v8798_v29  ;;  %vm2113_vm9 = vcmp.gt.f32.partialorder %v2005_v32, %v6979_v42  ;;  %vm2114_vm2 = vcmp.gt.f32.partialorder %v2005_v32, %v6983_v20  ;;  %vm2115_vm14 = vcmp.gt.f32.partialorder %v2005_v32, %v6987_v46  ;;  %vm8870_vm13 = vcmask 1014784  }
 0x4b1   :  { %5806 = vmatpush1.bf16.msk.msra.mxu1 %vm5805_vm12, %v8798_v29  ;;  %2437 = vmatmul.mubr.f32.vlgmr.msra.gmra.mrb[6].mxu0 %v8860_v35  ;;  %vm2116_vm11 = vcmp.gt.f32.partialorder %v2010_v57, %v6979_v42  ;;  %vm2117_vm10 = vcmp.gt.f32.partialorder %v2010_v57, %v6983_v20  ;;  %vm2118_vm0 = vcmp.gt.f32.partialorder %v2010_v57, %v6987_v46  ;;  %vm8868_vm12 = vcmask 261120  }
 0x4b2   :  { %5845 = vmatpush3.bf16.msk.msra.mxu0 %vm7590_vm8, %v8798_v29  ;;  %vm7614_vm7 = vmpackc.low %vm2116_vm11, %vm2113_vm9  ;;  %2365 = vmatprep.mubr.f32.mxu1 %v8843_v26  ;;  %v5851_v57 = vpack.c.bf16 %v2519_v23, %v2518_v12  ;;  %v2538_v23 = vld [vmem:[%s8713_s4 + $0xa0] sm:$0xff]  ;;  %vm8871_vm9 = vcmask 1022976   ;;  %vm8874_vm11 = vcmask 891904  }
 0x4b3   :  { %vm7619_vm3 = vmpackc.low %vm2118_vm0, %vm2115_vm14  ;;  %5846 = vmatprep.subr.bf16.mxu0 %v8859_v27  ;;  %v2915_v50 = vpop.permute.xlu0 %2914  ;;  %v2924_v30 = vpop.permute.xlu1 %2923  ;;  %5473 = vmatprep.mubr.msk.f32.mxu0 %vm8801_vm4, %v8843_v26  ;;  %vm8873_vm14 = vcmask 916480   ;;  %vm8876_vm0 = vcmask 785408  }
 0x4b4   :  { %vm5807_vm1 = vmpackc.low %vm2117_vm10, %vm2114_vm2  ;;  %v2916_v25 = vrot.slane %v2915_v50, 1  ;;  %v2925_v5 = vrot.slane %v2924_v30, 1  ;;  %vm8872_vm2 = vcmask 908288   ;;  %vm8875_vm10 = vcmask 900096  }
 0x4b5   :  { %5808 = vmatprep.subr.msk.bf16.mxu1 %vm5807_vm1, %v8798_v29  ;;  %vm8869_vm8 = vmmov %vm8868_vm12  ;;  %vm8879_vm1 = vcmask 777216  }
 0x4b6   :  { %v2917_v55 = vsel %vm8865_vm5, %v2915_v50, %v2916_v25  ;;  %5810 = vmatpush1.bf16.msk.msra.mxu1 %vm7614_vm7, %v8798_v29  ;;  %5848 = vmatpush3.bf16.msk.msra.mxu0 %vm7619_vm3, %v8798_v29  ;;  %v2926_v32 = vsel %vm8866_vm6, %v2924_v30, %v2925_v5  ;;  %v5853_v50 = vpack.c.bf16 %v2537_v58, %v2536_v36  ;;  %v2524_v29 = vld [vmem:[%s8713_s4 + $0x30] sm:$0xff]  ;;  %vm8877_vm7 = vcmask 883712  }
 0x4b7   :  { %2919 = vst.msk [vmem:[#allocation3 + $0x1] ss:$8 sm:$0x3] %vm8867_vm15, %v2917_v55  ;;  %2928 = vst.msk [vmem:[#allocation3 + $0x2] ss:$8 sm:$0x3] %vm8867_vm15, %v2926_v32  ;;  %v2942_v56 = vpop.permute.xlu0 %2941  ;;  %v2933_v28 = vpop.permute.xlu1 %2932  ;;  %5850 = vmatprep.subr.bf16.mxu0 %v5849_v13  ;;  %5881 = vmatprep.subr.bf16.mxu1 %v8859_v27  ;;  %v5855_v36 = vpack.c.bf16 %v2521_v0, %v2520_v11 }
 0x4b8   :  { %v2943_v30 = vrot.slane %v2942_v56, 1  ;;  %v2934_v12 = vrot.slane %v2933_v28, 1  ;;  %v2539_v13 = vld [vmem:[%s8713_s4 + $0xa8] sm:$0xff]  ;;  %v2540_v0 = vld [vmem:[%s8713_s4 + $0xb0] sm:$0xff]  ;;  %vm8878_vm3 = vcmask 769024   ;;  %vm8880_vm5 = vcmask 760832  }
 0x4b9   :  { %5081 = vmatmul.mubr.msk.f32.vlgmr.msra.gmra.mrb[4].mxu1 %vm8868_vm12, %v8860_v35  ;;  %5474 = vmatmul.mubr.msk.f32.vlgmr.msra.gmra.mrb[8].mxu0 %vm8869_vm8, %v8860_v35  ;;  %v5857_v32 = vpack.c.bf16 %v2539_v13, %v2538_v23 }
 0x4ba   :  { %v2944_v25 = vsel %vm8870_vm13, %v2942_v56, %v2943_v30  ;;  %v2935_v5 = vsel %vm8871_vm9, %v2933_v28, %v2934_v12  ;;  %5852 = vmatpush3.bf16.msra.mxu0 %v5851_v57  ;;  %5484 = vmatprep.mubr.msk.f32.mxu1 %vm8801_vm4, %v8843_v26  ;;  %v2522_v56 = vld [vmem:[%s8713_s4 + $0x20] sm:$0xff]  ;;  %v2523_v57 = vld [vmem:[%s8713_s4 + $0x28] sm:$0xff]  ;;  %v2541_v30 = vld [vmem:[%s8713_s4 + $0xb8] sm:$0xff]  ;;  %vm8881_vm13 = vcmask 261120   ;;  %vm8882_vm9 = vcmask 523264  }
 0x4bb   :  { %2946 = vst.msk [vmem:[#allocation3 + $0x4] ss:$8 sm:$0x3] %vm8867_vm15, %v2944_v25  ;;  %2937 = vst.msk [vmem:[#allocation3 + $0x3] ss:$8 sm:$0x3] %vm8867_vm15, %v2935_v5  ;;  %v2960_v58 = vpop.permute.xlu0 %2959  ;;  %v2951_v55 = vpop.permute.xlu1 %2950  ;;  %5854 = vmatprep.subr.bf16.mxu0 %v5853_v50  ;;  %v5859_v23 = vpack.c.bf16 %v2523_v57, %v2522_v56  ;;  %v5861_v5 = vpack.c.bf16 %v2541_v30, %v2540_v0 }
 0x4bc   :  { %v2961_v28 = vrot.slane %v2960_v58, 1  ;;  %v2952_v11 = vrot.slane %v2951_v55, 1  ;;  %v2542_v56 = vld [vmem:[%s8713_s4 + $0xc0] sm:$0xff]  ;;  %v2543_v57 = vld [vmem:[%s8713_s4 + $0xc8] sm:$0xff] }
 0x4be   :  { %v2962_v50 = vsel %vm8872_vm2, %v2960_v58, %v2961_v28  ;;  %v2953_v12 = vsel %vm8873_vm14, %v2951_v55, %v2952_v11  ;;  %5856 = vmatpush3.bf16.msra.mxu0 %v5855_v36  ;;  %v2525_v58 = vld [vmem:[%s8713_s4 + $0x38] sm:$0xff]  ;;  %vm8883_vm2 = vmmov %vm8882_vm9 }
 0x4bf   :  { %2964 = vst.msk [vmem:[#allocation3 + $0x6] ss:$8 sm:$0x3] %vm8867_vm15, %v2962_v50  ;;  %2955 = vst.msk [vmem:[#allocation3 + $0x5] ss:$8 sm:$0x3] %vm8867_vm15, %v2953_v12  ;;  %v2978_v13 = vpop.permute.xlu0 %2977  ;;  %v2969_v25 = vpop.permute.xlu1 %2968  ;;  %5858 = vmatprep.subr.bf16.mxu0 %v5857_v32  ;;  %v5863_v11 = vpack.c.bf16 %v2525_v58, %v2524_v29  ;;  %v5865_v50 = vpack.c.bf16 %v2543_v57, %v2542_v56 }
 0x4c0   :  { %v2979_v36 = vrot.slane %v2978_v13, 1  ;;  %v2970_v55 = vrot.slane %v2969_v25, 1  ;;  %v2526_v12 = vld [vmem:[%s8713_s4 + $0x40] sm:$0xff]  ;;  %v2545_v58 = vld [vmem:[%s8713_s4 + $0xd8] sm:$0xff]  ;;  %vm8884_vm14 = vmmov %vm8883_vm2 }
 0x4c2   :  { %v2980_v32 = vsel %vm8874_vm11, %v2978_v13, %v2979_v36  ;;  %v2971_v28 = vsel %vm8875_vm10, %v2969_v25, %v2970_v55  ;;  %5860 = vmatpush3.bf16.msra.mxu0 %v5859_v23  ;;  %v2527_v13 = vld [vmem:[%s8713_s4 + $0x48] sm:$0xff]  ;;  %v2544_v25 = vld [vmem:[%s8713_s4 + $0xd0] sm:$0xff]  ;;  %vm8885_vm11 = vmmov %vm8883_vm2 }
 0x4c3   :  { %2982 = vst.msk [vmem:[#allocation3 + $0x10] ss:$8 sm:$0x3] %vm8867_vm15, %v2980_v32  ;;  %2973 = vst.msk [vmem:[#allocation3 + $0x7] ss:$8 sm:$0x3] %vm8867_vm15, %v2971_v28  ;;  %v2996_v0 = vpop.permute.xlu0 %2995  ;;  %v2987_v30 = vpop.permute.xlu1 %2986  ;;  %5862 = vmatprep.subr.bf16.mxu0 %v5861_v5  ;;  %v5867_v55 = vpack.c.bf16 %v2527_v13, %v2526_v12  ;;  %v5869_v32 = vpack.c.bf16 %v2545_v58, %v2544_v25 }
 0x4c4   :  { %v2997_v23 = vrot.slane %v2996_v0, 1  ;;  %v2988_v29 = vrot.slane %v2987_v30, 1  ;;  %v2528_v28 = vld [vmem:[%s8713_s4 + $0x50] sm:$0xff]  ;;  %v2546_v58 = vld [vmem:[%s8713_s4 + $0xe0] sm:$0xff]  ;;  %vm8886_vm10 = vmmov %vm8883_vm2 }
 0x4c6   :  { %v2998_v5 = vsel %vm8876_vm0, %v2996_v0, %v2997_v23  ;;  %v2989_v36 = vsel %vm8877_vm7, %v2987_v30, %v2988_v29  ;;  %5864 = vmatpush3.bf16.msra.mxu0 %v5863_v11  ;;  %v2529_v0 = vld [vmem:[%s8713_s4 + $0x58] sm:$0xff]  ;;  %vm8887_vm0 = vmmov %vm8883_vm2 }
 0x4c7   :  { %3000 = vst.msk [vmem:[#allocation3 + $0x12] ss:$8 sm:$0x3] %vm8867_vm15, %v2998_v5  ;;  %2991 = vst.msk [vmem:[#allocation3 + $0x11] ss:$8 sm:$0x3] %vm8867_vm15, %v2989_v36  ;;  %v3014_v56 = vpop.permute.xlu0 %3013  ;;  %v3005_v57 = vpop.permute.xlu1 %3004  ;;  %5866 = vmatprep.subr.bf16.mxu0 %v5865_v50  ;;  %v5871_v23 = vpack.c.bf16 %v2529_v0, %v2528_v28 }
 0x4c8   :  { %v3015_v11 = vrot.slane %v3014_v56, 1  ;;  %v3006_v30 = vrot.slane %v3005_v57, 1  ;;  %v2547_v5 = vld [vmem:[%s8713_s4 + $0xe8] sm:$0xff]  ;;  %vm8888_vm7 = vmmov %vm8887_vm0 }
 0x4c9   :  { %v5873_v36 = vpack.c.bf16 %v2547_v5, %v2546_v58  ;;  %v2551_v28 = vld [vmem:[%s8713_s4 + $0x108] sm:$0xff] }
 0x4ca   :  { %v3016_v12 = vsel %vm8878_vm3, %v3014_v56, %v3015_v11  ;;  %v3007_v13 = vsel %vm8879_vm1, %v3005_v57, %v3006_v30  ;;  %5868 = vmatpush3.bf16.msra.mxu0 %v5867_v55  ;;  %v2530_v55 = vld [vmem:[%s8713_s4 + $0x60] sm:$0xff]  ;;  %v2531_v56 = vld [vmem:[%s8713_s4 + $0x68] sm:$0xff]  ;;  %v2548_v11 = vld [vmem:[%s8713_s4 + $0xf0] sm:$0xff] }
 0x4cb   :  { %3018 = vst.msk [vmem:[#allocation3 + $0x14] ss:$8 sm:$0x3] %vm8867_vm15, %v3016_v12  ;;  %3009 = vst.msk [vmem:[#allocation3 + $0x13] ss:$8 sm:$0x3] %vm8867_vm15, %v3007_v13  ;;  %v3023_v50 = vpop.permute.xlu1 %3022  ;;  %5870 = vmatprep.subr.bf16.mxu0 %v5869_v32  ;;  %v5875_v32 = vpack.c.bf16 %v2531_v56, %v2530_v55 }
 0x4cc   :  { %v3024_v29 = vrot.slane %v3023_v50, 1  ;;  %v2550_v57 = vld [vmem:[%s8713_s4 + $0x100] sm:$0xff]  ;;  %v2549_v30 = vld [vmem:[%s8713_s4 + $0xf8] sm:$0xff]  ;;  %v2532_v12 = vld [vmem:[%s8713_s4 + $0x70] sm:$0xff] }
 0x4cd   :  { %v5882_v0 = vpack.c.bf16 %v2551_v28, %v2550_v57  ;;  %v5877_v13 = vpack.c.bf16 %v2549_v30, %v2548_v11  ;;  %vm8891_vm3 = vmmov %vm8887_vm0 }
 0x4ce   :  { %v3025_v25 = vsel %vm8880_vm5, %v3023_v50, %v3024_v29  ;;  %5872 = vmatpush3.bf16.msra.mxu0 %v5871_v23  ;;  %v2533_v23 = vld [vmem:[%s8713_s4 + $0x78] sm:$0xff]  ;;  %v2552_v50 = vld [vmem:[%s8713_s4 + $0x110] sm:$0xff] }
 0x4cf   :  { %3027 = vst.msk [vmem:[#allocation3 + $0x15] ss:$8 sm:$0x3] %vm8867_vm15, %v3025_v25  ;;  %5874 = vmatprep.subr.bf16.mxu0 %v5873_v36  ;;  %5883 = vmatpush3.bf16.msra.mxu1 %v5882_v0  ;;  %v2553_v29 = vld [vmem:[%s8713_s4 + $0x118] sm:$0xff]  ;;  %v5879_v25 = vpack.c.bf16 %v2533_v23, %v2532_v12 }
 0x4d0   :  { %5884 = vmatprep.subr.bf16.mxu1 %v8859_v27  ;;  %v5885_v58 = vpack.c.bf16 %v2553_v29, %v2552_v50 }
 0x4d2   :  { %5876 = vmatpush3.bf16.msra.mxu0 %v5875_v32 }
 0x4d3   :  { %5878 = vmatprep.subr.bf16.mxu0 %v5877_v13  ;;  %5886 = vmatpush3.bf16.msra.mxu1 %v5885_v58  ;;  %v2554_v13 = vld [vmem:[%s8714_s5] sm:$0x1] }
 0x4d4   :  { %5899 = vmatprep.subr.bf16.mxu1 %v8859_v27 }
 0x4d6   :  { %5880 = vmatpush3.bf16.msra.mxu0 %v5879_v25 }
 0x4d7   :  { %5887 = vmatprep.subr.bf16.mxu0 %v8859_v27 }
 0x584   :  { %v5301_v5 = vpop.f32.mrb[6].mxu0 }
 0x585   :  { %v5302_v36 = vpop.f32.mrb[7].mxu0 }
 0x586   :  { %v5303_v55 = vadd.f32 %v5302_v36, %v5301_v5 }
 0x58c   :  { %v2367_v56 = vpop.f32.mrb[4].mxu1  ;;  %v2508_v57 = vpop.f32.mrb[8].mxu0 }
 0x58d   :  { %v2509_v32 = vadd.f32 %v5303_v55, %v2508_v57  ;;  %v2369_v28 = vpop.f32.mrb[5].mxu1  ;;  %v5475_v0 = vpop.f32.mrb[9].mxu0  ;;  %vm2512_vm12 = vcmp.lt.f32.partialorder %v2367_v56, 48.0 }
 0x58e   :  { %vm2513_vm6 = vcmp.lt.f32.partialorder %v2369_v28, 48.0 }
 0x58f   :  { %vm2514_vm8 = vcmp.lt.f32.partialorder %v2509_v32, 48.0  ;;  %5119 = vmatprep.mubr.msk.f32.mxu0 %vm2513_vm6, %v6983_v20 }
 0x590   :  { %v2517_v11 = vsel %vm2514_vm8, %v6987_v46, 0.0  ;;  %5120 = vmatmul.mubr.msk.f32.vlgmr.msra.gmra.mrb[10].mxu0 %vm2512_vm12, %v6979_v42 }
 0x591   :  { %5485 = vmatmul.mubr.msk.f32.vlgmr.msra.gmra.mrb[6].mxu1 %vm8881_vm13, %v2517_v11  ;;  %5503 = vmatprep.mubr.msk.f32.mxu0 %vm8801_vm4, %v8843_v26 }
 0x592   :  { %5522 = vmatprep.mubr.msk.f32.mxu1 %vm8801_vm4, %v8843_v26 }
 0x663   :  { %v5341_v30 = vpop.f32.mrb[10].mxu0 }
 0x664   :  { %v5342_v12 = vpop.f32.mrb[11].mxu0  ;;  %v2694_v23 = vpop.f32.mrb[6].mxu1 }
 0x665   :  { %v5343_v20 = vadd.f32 %v5342_v12, %v5341_v30  ;;  %v5486_v50 = vpop.f32.mrb[7].mxu1 }
 0x666   :  { %v3047_v50 = vld [vmem:[#allocation2 + $0x1] ss:$2 sm:$0x3] }
 0x667   :  { %v2625_v46 = vadd.f32 %v5343_v20, %v2554_v13  ;;  %v3029_v20 = vld [vmem:[#allocation2 + $0x1] ss:$2 sm:$0x3] }
 0x669   :  { %v7797_v29 = vadd.f32 %v2694_v23, %v2625_v46  ;;  %v3038_v23 = vld [vmem:[#allocation2 + $0x1] ss:$2 sm:$0x3] }
 0x66a   :  { %v3065_v46 = vld [vmem:[#allocation2 + $0x1] ss:$2 sm:$0x3] }
 0x66b   :  { %v7801_v42 = vrot.slane %v7797_v29, %v6956_v34 }
 0x66d   :  { %v2703_v25 = vmul.f32 %v7801_v42, %v6969_v38  ;;  %v2702_v58 = vmul.f32 %v7801_v42, %v6972_v39  ;;  %v2705_v55 = vmul.f32 %v7801_v42, %v6990_v47  ;;  %v2704_v56 = vmul.f32 %v7801_v42, %v6975_v40 }
 0x66e   :  { %v2707_v28 = vmul.f32 %v7801_v42, %v6996_v49  ;;  %v2706_v0 = vmul.f32 %v7801_v42, %v6993_v48  ;;  %v2708_v12 = vmul.f32 %v7801_v42, %v7024_v7 }
 0x66f   :  { %v2713_v5 = vsel %vm8882_vm9, %v2703_v25, 0.0  ;;  %v2710_v36 = vsel %vm8883_vm2, %v2702_v58, 0.0  ;;  %v2719_v57 = vsel %vm8884_vm14, %v2705_v55, 0.0  ;;  %v2716_v32 = vsel %vm8885_vm11, %v2704_v56, 0.0 }
 0x670   :  { %2714 = vadd.xlane.f32.xlu1 %v2713_v5  ;;  %2711 = vadd.xlane.f32.xlu0 %v2710_v36  ;;  %v2725_v11 = vsel %vm8886_vm10, %v2707_v28, 0.0  ;;  %v2722_v30 = vsel %vm8887_vm0, %v2706_v0, 0.0  ;;  %v2728_v13 = vsel %vm8888_vm7, %v2708_v12, 0.0  ;;  %v3083_v25 = vld [vmem:[#allocation2 + $0x1] ss:$2 sm:$0x3]  ;;  %v2709_v36 = vmul.f32 %v7801_v42, %v7032_v24 }
 0x671   :  { %v3101_v58 = vld [vmem:[#allocation2 + $0x1] ss:$2 sm:$0x7]  ;;  %vm8895_vm11 = vcmask 654336   ;;  %vm8896_vm10 = vcmask 752640   ;;  %vm8897_vm0 = vcmask 646144  }
 0x672   :  { %v3119_v5 = vld [vmem:[#allocation2 + $0x1] ss:$2 sm:$0x7]  ;;  %v2731_v55 = vsel %vm8891_vm3, %v2709_v36, 0.0  ;;  %vm8898_vm7 = vcmask 629760  }
 0x673   :  { %v3056_v56 = vld [vmem:[#allocation2 + $0x1] ss:$2 sm:$0x3] }
 0x674   :  { %2720 = vadd.xlane.f32.xlu1 %v2719_v57  ;;  %2717 = vadd.xlane.f32.xlu0 %v2716_v32  ;;  %v3074_v57 = vld [vmem:[#allocation2 + $0x1] ss:$2 sm:$0x3] }
 0x675   :  { %v3092_v32 = vld [vmem:[#allocation2 + $0x1] ss:$2 sm:$0x7] }
 0x676   :  { %v3110_v28 = vld [vmem:[#allocation2 + $0x1] ss:$2 sm:$0x7] }
 0x677   :  { %v3137_v0 = vld [vmem:[%s8711_s2] sm:$0xff]  ;;  %s4954_s2 = sshll.u32 %s6376_s23, 4  ;;  %s4955_s2 = int_to_ptr.vmem [resolvable:$true] %s4954_s2 }
 0x678   :  { %2726 = vadd.xlane.f32.xlu1 %v2725_v11  ;;  %2723 = vadd.xlane.f32.xlu0 %v2722_v30  ;;  %v2824_v11 = vld [vmem:[%s8715_s6] sm:$0xff]  ;;  %v2825_v30 = vld [vmem:[%s8715_s6 + $0x8] sm:$0xff]  ;;  %p6313_p9 = scmp.lt.s32.totalorder %s4955_s2, %s4955_s2 }
 0x679   :  { %v5900_v12 = vpack.c.bf16 %v2825_v30, %v2824_v11 }
 0x67b   :  { %5901 = vmatpush3.bf16.msra.mxu1 %v5900_v12 }
 0x67c   :  { %2729 = vadd.xlane.f32.xlu0 %v2728_v13  ;;  %5902 = vmatprep.subr.bf16.mxu1 %v8859_v27  ;;  %v2826_v13 = vld [vmem:[%s8715_s6 + $0x10] sm:$0xff] }
 0x689   :  { %3040 = vrot.lane.b32.xlu1 %v3038_v23, %s6342_s25  ;;  %s8892_s25 = smov 78   ;;  %v2827_v23 = vld [vmem:[%s8715_s6 + $0x18] sm:$0xff] }
 0x692   :  { %3031 = vrot.lane.b32.xlu0 %v3029_v20, %s6355_s11  ;;  %s8893_s11 = smov 61   ;;  %v5903_v20 = vpack.c.bf16 %v2827_v23, %v2826_v13 }
 0x694   :  { %5904 = vmatpush3.bf16.msra.mxu1 %v5903_v20 }
 0x695   :  { %5905 = vmatprep.subr.bf16.mxu1 %v8859_v27 }
 0x696   :  { %3049 = vrot.lane.b32.xlu0 %v3047_v50, %s6357_s14  ;;  %v2828_v50 = vld [vmem:[%s8715_s6 + $0x20] sm:$0xff] }
 0x69a   :  { %3067 = vrot.lane.b32.xlu0 %v3065_v46, %s8889_s9  ;;  %v2829_v46 = vld [vmem:[%s8715_s6 + $0x28] sm:$0xff] }
 0x69e   :  { %3085 = vrot.lane.b32.xlu0 %v3083_v25, %s8890_s10  ;;  %v5906_v25 = vpack.c.bf16 %v2829_v46, %v2828_v50 }
 0x6a0   :  { %5907 = vmatpush3.bf16.msra.mxu1 %v5906_v25 }
 0x6a1   :  { %5908 = vmatprep.subr.bf16.mxu1 %v8859_v27 }
 0x6a2   :  { %3103 = vrot.lane.b32.xlu0 %v3101_v58, %s6361_s20  ;;  %v2830_v58 = vld [vmem:[%s8715_s6 + $0x30] sm:$0xff] }
 0x6a6   :  { %3121 = vrot.lane.b32.xlu0 %v3119_v5, %s6363_s22  ;;  %v2831_v5 = vld [vmem:[%s8715_s6 + $0x38] sm:$0xff]  ;;  %s8914_s22 = smov 72  }
 0x6a7   :  { %v5909_v36 = vpack.c.bf16 %v2831_v5, %v2830_v58 }
 0x6a9   :  { %5910 = vmatpush3.bf16.msra.mxu1 %v5909_v36 }
 0x6aa   :  { %5921 = vmatprep.subr.bf16.mxu1 %v8859_v27 }
 0x6ad   :  { %2732 = vadd.xlane.f32.xlu1 %v2731_v55 }
 0x6be   :  { %3058 = vrot.lane.b32.xlu1 %v3056_v56, %s8892_s25 }
 0x6c2   :  { %3076 = vrot.lane.b32.xlu1 %v3074_v57, %s6360_s19  ;;  %v8894_v57 = vmov 1.0|1.0  }
 0x6c6   :  { %3094 = vrot.lane.b32.xlu1 %v3092_v32, %s6362_s21 }
 0x6ca   :  { %3112 = vrot.lane.b32.xlu1 %v3110_v28, %s8893_s11 }
 0x6ce   :  { %3140 = vperm.xlu1 %6285, %v3137_v0  }
 0x6fd   :  { %v2715_v55 = vpop.xlane.xlu1 %2714  ;;  %v2712_v56 = vpop.xlane.xlu0 %2711 }
 0x6fe   :  { %vm2735_vm1 = vcmp.gt.f32.partialorder %v2715_v55, %v7801_v42  ;;  %vm2734_vm5 = vcmp.gt.f32.partialorder %v2712_v56, %v7801_v42 }
 0x6ff   :  { %vm5888_vm6 = vmpackc.low %vm2735_vm1, %vm2734_vm5  ;;  %vm8899_vm1 = vcmask 506880   ;;  %vm8900_vm5 = vcmask 490496  }
 0x700   :  { %5889 = vmatpush3.bf16.msk.msra.mxu0 %vm5888_vm6, %v8894_v57 }
 0x701   :  { %v2721_v32 = vpop.xlane.xlu1 %2720  ;;  %v2718_v28 = vpop.xlane.xlu0 %2717  ;;  %5890 = vmatprep.subr.bf16.mxu0 %v8859_v27 }
 0x702   :  { %vm2737_vm12 = vcmp.gt.f32.partialorder %v2721_v32, %v7801_v42  ;;  %vm2736_vm8 = vcmp.gt.f32.partialorder %v2718_v28, %v7801_v42 }
 0x703   :  { %vm5891_vm13 = vmpackc.low %vm2737_vm12, %vm2736_vm8 }
 0x704   :  { %5892 = vmatpush3.bf16.msk.msra.mxu0 %vm5891_vm13, %v8894_v57  ;;  %vm8901_vm13 = vmmov %vm8891_vm3 }
 0x705   :  { %v2727_v0 = vpop.xlane.xlu1 %2726  ;;  %v2724_v11 = vpop.xlane.xlu0 %2723  ;;  %5893 = vmatprep.subr.bf16.mxu0 %v8859_v27 }
 0x706   :  { %vm2739_vm9 = vcmp.gt.f32.partialorder %v2727_v0, %v7801_v42  ;;  %vm2738_vm2 = vcmp.gt.f32.partialorder %v2724_v11, %v7801_v42 }
 0x707   :  { %vm5894_vm14 = vmpackc.low %vm2739_vm9, %vm2738_vm2  ;;  %vm8902_vm9 = vcmask 637952   ;;  %vm8903_vm2 = vcmask 621568  }
 0x708   :  { %5895 = vmatpush3.bf16.msk.msra.mxu0 %vm5894_vm14, %v8894_v57  ;;  %vm8904_vm14 = vcmask 515072  }
 0x709   :  { %v3041_v30 = vpop.permute.xlu1 %3040  ;;  %v2730_v12 = vpop.xlane.xlu0 %2729  ;;  %5896 = vmatprep.subr.bf16.mxu0 %v8859_v27 }
 0x70a   :  { %v3042_v13 = vrot.slane %v3041_v30, 1  ;;  %vm2740_vm6 = vcmp.gt.f32.partialorder %v2730_v12, %v7801_v42 }
 0x70c   :  { %v3043_v23 = vsel %vm8895_vm11, %v3041_v30, %v3042_v13  ;;  %vm8905_vm11 = vcmask 498688  }
 0x70d   :  { %3045 = vst.msk [vmem:[#allocation3 + $0x17] ss:$8 sm:$0x3] %vm8867_vm15, %v3043_v23  ;;  %v3032_v20 = vpop.permute.xlu0 %3031 }
 0x70e   :  { %v3033_v50 = vrot.slane %v3032_v20, 1 }
 0x710   :  { %v3034_v46 = vsel %vm8896_vm10, %v3032_v20, %v3033_v50  ;;  %vm8906_vm10 = vnez %v8806_v22 }
 0x711   :  { %3036 = vst.msk [vmem:[#allocation3 + $0x16] ss:$8 sm:$0x3] %vm8867_vm15, %v3034_v46  ;;  %v3050_v25 = vpop.permute.xlu0 %3049 }
 0x712   :  { %v3051_v58 = vrot.slane %v3050_v25, 1 }
 0x714   :  { %v3052_v5 = vsel %vm8897_vm0, %v3050_v25, %v3051_v58  ;;  %v3130_v58 = vld [vmem:[#allocation3 + $0x8] sm:$0xff] }
 0x715   :  { %3054 = vst.msk [vmem:[#allocation3 + $0x20] ss:$8 sm:$0x3] %vm8867_vm15, %v3052_v5  ;;  %v3068_v36 = vpop.permute.xlu0 %3067 }
 0x716   :  { %v3069_v55 = vrot.slane %v3068_v36, 1 }
 0x718   :  { %v3070_v56 = vsel %vm8898_vm7, %v3068_v36, %v3069_v55  ;;  %v3132_v46 = vld [vmem:[#allocation3 + $0x18] sm:$0xff]  ;;  %v3131_v36 = vld [vmem:[#allocation3 + $0x10] sm:$0xff]  ;;  %vm8908_vm7 = vmmov %vm8891_vm3 }
 0x719   :  { %3072 = vst.msk [vmem:[#allocation3 + $0x22] ss:$8 sm:$0x3] %vm8867_vm15, %v3070_v56  ;;  %v3086_v32 = vpop.permute.xlu0 %3085  ;;  %v5911_v5 = vpack.c.bf16 %v3132_v46, %v3130_v58  ;;  %v3129_v56 = vld [vmem:[#allocation3] sm:$0xff] }
 0x71a   :  { %v3087_v28 = vrot.slane %v3086_v32, 1 }
 0x71c   :  { %v3088_v0 = vsel %vm8891_vm3, %v3086_v32, %v3087_v28  ;;  %v5913_v28 = vpack.c.bf16 %v3131_v36, %v3129_v56 }
 0x71d   :  { %3090 = vst.msk [vmem:[#allocation3 + $0x24] ss:$8 sm:$0x3] %vm8867_vm15, %v3088_v0  ;;  %v3104_v11 = vpop.permute.xlu0 %3103 }
 0x71e   :  { %v3105_v30 = vrot.slane %v3104_v11, 1 }
 0x720   :  { %v3106_v13 = vsel %vm8899_vm1, %v3104_v11, %v3105_v30  ;;  %vm8909_vm1 = vmmov %vm8891_vm3 }
 0x721   :  { %3108 = vst.msk [vmem:[#allocation3 + $0x26] ss:$8 sm:$0x3] %vm8867_vm15, %v3106_v13  ;;  %v3122_v23 = vpop.permute.xlu0 %3121 }
 0x722   :  { %v3123_v20 = vrot.slane %v3122_v23, 1 }
 0x724   :  { %v3124_v50 = vsel %vm8900_vm5, %v3122_v23, %v3123_v20  ;;  %vm8910_vm5 = vmmov %vm8909_vm1 }
 0x725   :  { %3126 = vst.msk [vmem:[#allocation3 + $0x30] ss:$8 sm:$0x3] %vm8867_vm15, %v3124_v50 }
 0x72c   :  { %v3135_v36 = vld [vmem:[#allocation3 + $0x30] sm:$0x1] }
 0x73a   :  { %v2733_v25 = vpop.xlane.xlu1 %2732 }
 0x73b   :  { %vm2741_vm12 = vcmp.gt.f32.partialorder %v2733_v25, %v7801_v42  ;;  %v3136_v25 = vld [vmem:[#allocation3 + $0x38] sm:$0x1] }
 0x73c   :  { %vm5897_vm8 = vmpackc.low %vm2741_vm12, %vm2740_vm6  ;;  %vm8800_vm12 = vcmask 73728  }
 0x73d   :  { %5898 = vmatpush3.bf16.msk.msra.mxu0 %vm5897_vm8, %v8894_v57  ;;  %vm8911_vm6 = vmmov %vm8909_vm1  ;;  %vm8912_vm8 = vcmask 293888  }
 0x73e   :  { %v3059_v55 = vpop.permute.xlu1 %3058  ;;  %5912 = vmatprep.subr.bf16.mxu0 %v5911_v5 }
 0x73f   :  { %v3060_v32 = vrot.slane %v3059_v55, 1 }
 0x740   :  { %5504 = vmatmul.mubr.msk.f32.vlgmr.msra.gmra.mrb[12].mxu0 %vm8901_vm13, %v8860_v35  ;;  %vm8913_vm13 = vnez %v8808_v45 }
 0x741   :  { %v3061_v0 = vsel %vm8902_vm9, %v3059_v55, %v3060_v32  ;;  %5914 = vmatpush1.bf16.msra.mxu0 %v5913_v28  ;;  %3216 = vmatprep.mubr.f32.mxu0 %v8843_v26  ;;  %v3320_v32 = vld [vmem:[#allocation6 + $0xc0] sm:$0xff]  ;;  %v3321_v28 = vld [vmem:[#allocation6 + $0xc8] sm:$0xff]  ;;  %vm8915_vm9 = vnez %v8810_v61 }
 0x742   :  { %3063 = vst.msk [vmem:[#allocation3 + $0x21] ss:$8 sm:$0x3] %vm8867_vm15, %v3061_v0  ;;  %v3077_v42 = vpop.permute.xlu1 %3076  ;;  %v3128_v0 = vld [vmem:[%s8710_s1] sm:$0xff]  ;;  %v5958_v8 = vpack.c.bf16 %v3321_v28, %v3320_v32 }
 0x743   :  { %v3078_v12 = vrot.slane %v3077_v42, 1  ;;  %v3333_v32 = vld [vmem:[#allocation6 + $0x128] sm:$0xff] }
 0x745   :  { %v3079_v11 = vsel %vm8903_vm2, %v3077_v42, %v3078_v12  ;;  %v3322_v42 = vld [vmem:[#allocation6 + $0xd0] sm:$0xff]  ;;  %v3323_v12 = vld [vmem:[#allocation6 + $0xd8] sm:$0xff]  ;;  %vm8916_vm2 = vnez %v8812_v62 }
 0x746   :  { %3081 = vst.msk [vmem:[#allocation3 + $0x23] ss:$8 sm:$0x3] %vm8867_vm15, %v3079_v11  ;;  %v3095_v30 = vpop.permute.xlu1 %3094  ;;  %v5961_v11 = vpack.c.bf16 %v3323_v12, %v3322_v42  ;;  %v3336_v12 = vld [vmem:[#allocation6 + $0x140] sm:$0xff] }
 0x747   :  { %v3096_v13 = vrot.slane %v3095_v30, 1 }
 0x749   :  { %v3097_v23 = vsel %vm8904_vm14, %v3095_v30, %v3096_v13  ;;  %v3324_v30 = vld [vmem:[#allocation6 + $0xe0] sm:$0xff]  ;;  %v3325_v13 = vld [vmem:[#allocation6 + $0xe8] sm:$0xff]  ;;  %vm8917_vm14 = vmand %vm8915_vm9, %vm8916_vm2  ;;  %vm8929_vm9 = vnez %v8828_v15  ;;  %v8939_v15 = vsub.s32 2, %v6786_v43 }
 0x74a   :  { %3099 = vst.msk [vmem:[#allocation3 + $0x25] ss:$8 sm:$0x3] %vm8867_vm15, %v3097_v23  ;;  %v3113_v20 = vpop.permute.xlu1 %3112  ;;  %v5964_v22 = vpack.c.bf16 %v3325_v13, %v3324_v30  ;;  %v3326_v23 = vld [vmem:[#allocation6 + $0xf0] sm:$0xff] }
 0x74b   :  { %v3114_v50 = vrot.slane %v3113_v20, 1  ;;  %v3338_v13 = vld [vmem:[#allocation6 + $0x150] sm:$0xff] }
 0x74d   :  { %v3115_v46 = vsel %vm8905_vm11, %v3113_v20, %v3114_v50  ;;  %v3327_v20 = vld [vmem:[#allocation6 + $0xf8] sm:$0xff]  ;;  %vm8918_vm11 = vcmask 883712  }
 0x74e   :  { %3117 = vst.msk [vmem:[#allocation3 + $0x27] ss:$8 sm:$0x3] %vm8867_vm15, %v3115_v46  ;;  %vm8907_vm15 = vcmask 203776   ;;  %v5967_v50 = vpack.c.bf16 %v3327_v20, %v3326_v23  ;;  %v3328_v46 = vld [vmem:[#allocation6 + $0x100] sm:$0xff] }
 0x74f   :  { %v3340_v20 = vld [vmem:[#allocation6 + $0x160] sm:$0xff] }
 0x755   :  { %v3134_v58 = vld [vmem:[#allocation3 + $0x28] sm:$0xff]  ;;  %v3133_v5 = vld [vmem:[#allocation3 + $0x20] sm:$0xff] }
 0x756   :  { %v5915_v55 = vpack.c.bf16 %v3136_v25, %v3134_v58  ;;  %v5918_v56 = vpack.c.bf16 %v3135_v36, %v3133_v5  ;;  %v3329_v25 = vld [vmem:[#allocation6 + $0x108] sm:$0xff]  ;;  %v3330_v5 = vld [vmem:[#allocation6 + $0x110] sm:$0xff]  ;;  %v3331_v36 = vld [vmem:[#allocation6 + $0x118] sm:$0xff] }
 0x757   :  { %v5970_v58 = vpack.c.bf16 %v3329_v25, %v3328_v46  ;;  %v3342_v25 = vld [vmem:[#allocation6 + $0x170] sm:$0xff] }
 0x758   :  { %5917 = vmatprep.subr.msk.bf16.mxu0 %vm8906_vm10, %v5915_v55  ;;  %v5973_v55 = vpack.c.bf16 %v3331_v36, %v3330_v5  ;;  %v3223_v36 = vld [vmem:[#allocation6] sm:$0xff] }
 0x759   :  { %5920 = vmatpush1.bf16.msk.msra.mxu0 %vm8906_vm10, %v5918_v56  ;;  %v3332_v56 = vld [vmem:[#allocation6 + $0x120] sm:$0xff]  ;;  %vm8919_vm10 = vnez %v8814_v1 }
 0x75a   :  { %5957 = vmatprep.subr.bf16.mxu0 %v8859_v27  ;;  %v5976_v28 = vpack.c.bf16 %v3333_v32, %v3332_v56 }
 0x75c   :  { %5134 = vmatmul.mubr.msk.f32.vlgmr.msra.gmra.mrb[14].mxu0 %vm8907_vm15, %v3128_v0  ;;  %v3334_v0 = vld [vmem:[#allocation6 + $0x130] sm:$0xff]  ;;  %vm8920_vm15 = vnez %v8816_v2 }
 0x75d   :  { %5959 = vmatpush1.bf16.msra.mxu0 %v5958_v8  ;;  %v3335_v8 = vld [vmem:[#allocation6 + $0x138] sm:$0xff] }
 0x75e   :  { %5960 = vmatprep.subr.bf16.mxu0 %v8859_v27  ;;  %v5979_v42 = vpack.c.bf16 %v3335_v8, %v3334_v0  ;;  %v3225_v0 = vld [vmem:[#allocation6 + $0x10] sm:$0xff]  ;;  %v3226_v8 = vld [vmem:[#allocation6 + $0x18] sm:$0xff] }
 0x761   :  { %5962 = vmatpush1.bf16.msra.mxu0 %v5961_v11  ;;  %v3337_v11 = vld [vmem:[#allocation6 + $0x148] sm:$0xff] }
 0x762   :  { %5963 = vmatprep.subr.bf16.mxu0 %v8859_v27  ;;  %v5982_v30 = vpack.c.bf16 %v3337_v11, %v3336_v12  ;;  %v5925_v12 = vpack.c.bf16 %v3226_v8, %v3225_v0  ;;  %v3227_v11 = vld [vmem:[#allocation6 + $0x20] sm:$0xff]  ;;  %v3141_v0 = vpop.permute.xlu1 %3140 }
 0x763   :  { %v3508_v8 = vld [vmem:[#allocation6 + $0x240] sm:$0xff] }
 0x765   :  { %5965 = vmatpush1.bf16.msra.mxu0 %v5964_v22  ;;  %v3339_v22 = vld [vmem:[#allocation6 + $0x158] sm:$0xff] }
 0x766   :  { %5966 = vmatprep.subr.bf16.mxu0 %v8859_v27  ;;  %v5985_v23 = vpack.c.bf16 %v3339_v22, %v3338_v13  ;;  %v3229_v22 = vld [vmem:[#allocation6 + $0x30] sm:$0xff] }
 0x769   :  { %5968 = vmatpush1.bf16.msra.mxu0 %v5967_v50  ;;  %v3341_v50 = vld [vmem:[#allocation6 + $0x168] sm:$0xff] }
 0x76a   :  { %5969 = vmatprep.subr.bf16.mxu0 %v8859_v27  ;;  %v5988_v46 = vpack.c.bf16 %v3341_v50, %v3340_v20  ;;  %v3231_v50 = vld [vmem:[#allocation6 + $0x40] sm:$0xff] }
 0x76d   :  { %5971 = vmatpush1.bf16.msra.mxu0 %v5970_v58  ;;  %v3343_v58 = vld [vmem:[#allocation6 + $0x178] sm:$0xff] }
 0x76e   :  { %5972 = vmatprep.subr.bf16.mxu0 %v8859_v27  ;;  %v5991_v5 = vpack.c.bf16 %v3343_v58, %v3342_v25  ;;  %v3233_v25 = vld [vmem:[#allocation6 + $0x50] sm:$0xff]  ;;  %v3234_v58 = vld [vmem:[#allocation6 + $0x58] sm:$0xff] }
 0x771   :  { %5974 = vmatpush1.bf16.msra.mxu0 %v5973_v55  ;;  %v3224_v55 = vld [vmem:[#allocation6 + $0x8] sm:$0xff] }
 0x772   :  { %5975 = vmatprep.subr.bf16.mxu0 %v8859_v27  ;;  %v5922_v32 = vpack.c.bf16 %v3224_v55, %v3223_v36  ;;  %v3235_v36 = vld [vmem:[#allocation6 + $0x60] sm:$0xff]  ;;  %v3236_v55 = vld [vmem:[#allocation6 + $0x68] sm:$0xff] }
 0x775   :  { %5977 = vmatpush1.bf16.msra.mxu0 %v5976_v28 }
 0x776   :  { %5978 = vmatprep.subr.bf16.mxu0 %v8859_v27 }
 0x779   :  { %5980 = vmatpush1.bf16.msra.mxu0 %v5979_v42 }
 0x77a   :  { %5981 = vmatprep.subr.bf16.mxu0 %v8859_v27 }
 0x77d   :  { %5983 = vmatpush1.bf16.msra.mxu0 %v5982_v30  ;;  %v3228_v30 = vld [vmem:[#allocation6 + $0x28] sm:$0xff] }
 0x77e   :  { %5984 = vmatprep.subr.bf16.mxu0 %v8859_v27  ;;  %v5928_v13 = vpack.c.bf16 %v3228_v30, %v3227_v11 }
 0x781   :  { %5986 = vmatpush1.bf16.msra.mxu0 %v5985_v23  ;;  %v3230_v23 = vld [vmem:[#allocation6 + $0x38] sm:$0xff] }
 0x782   :  { %5987 = vmatprep.subr.bf16.mxu0 %v8859_v27  ;;  %v5931_v20 = vpack.c.bf16 %v3230_v23, %v3229_v22  ;;  %v3239_v22 = vld [vmem:[#allocation6 + $0x80] sm:$0xff]  ;;  %v3240_v23 = vld [vmem:[#allocation6 + $0x88] sm:$0xff] }
 0x785   :  { %5989 = vmatpush1.bf16.msra.mxu0 %v5988_v46 }
 0x786   :  { %5990 = vmatprep.subr.bf16.mxu0 %v8859_v27 }
 0x789   :  { %5992 = vmatpush1.bf16.msra.mxu0 %v5991_v5  ;;  %v5937_v5 = vpack.c.bf16 %v3234_v58, %v3233_v25  ;;  %v5946_v25 = vpack.c.bf16 %v3240_v23, %v3239_v22  ;;  %v3241_v58 = vld [vmem:[#allocation6 + $0x90] sm:$0xff]  ;;  %v3246_v22 = vld [vmem:[#allocation6 + $0xb8] sm:$0xff] }
 0x78a   :  { %6029 = vmatprep.subr.bf16.mxu0 %v8859_v27 }
 0x813   :  { %v2818_v56 = vpop.f32.mrb[12].mxu0 }
 0x814   :  { %vm2822_vm0 = vcmp.lt.f32.partialorder %v2818_v56, 12.0  ;;  %v5505_v28 = vpop.f32.mrb[13].mxu0  ;;  %v5940_v56 = vpack.c.bf16 %v3236_v55, %v3235_v36  ;;  %v3512_v55 = vld [vmem:[#allocation6 + $0x260] sm:$0xff] }
 0x815   :  { %v2823_v42 = vsel %vm2822_vm0, %v7797_v29, 0.0  ;;  %v3232_v29 = vld [vmem:[#allocation6 + $0x48] sm:$0xff]  ;;  %v3238_v28 = vld [vmem:[#allocation6 + $0x78] sm:$0xff]  ;;  %vm8921_vm0 = vmand %vm8919_vm10, %vm8920_vm15  ;;  %vm8933_vm10 = vnez %v8832_v18 }
 0x816   :  { %5523 = vmatmul.mubr.msk.f32.vlgmr.msra.gmra.mrb[8].mxu1 %vm8908_vm7, %v2823_v42  ;;  %v5934_v46 = vpack.c.bf16 %v3232_v29, %v3231_v50  ;;  %v3509_v42 = vld [vmem:[#allocation6 + $0x248] sm:$0xff]  ;;  %v3510_v29 = vld [vmem:[#allocation6 + $0x250] sm:$0xff]  ;;  %vm8922_vm7 = vnez %v8818_v4 }
 0x817   :  { %5923 = vmatpush1.bf16.msra.mxu1 %v5922_v32  ;;  %v3237_v32 = vld [vmem:[#allocation6 + $0x70] sm:$0xff]  ;;  %v6030_v50 = vpack.c.bf16 %v3509_v42, %v3508_v8 }
 0x818   :  { %5924 = vmatprep.subr.bf16.mxu1 %v8859_v27  ;;  %v5943_v11 = vpack.c.bf16 %v3238_v28, %v3237_v32  ;;  %v3243_v28 = vld [vmem:[#allocation6 + $0xa0] sm:$0xff]  ;;  %v3514_v42 = vld [vmem:[#allocation6 + $0x270] sm:$0xff] }
 0x81b   :  { %5926 = vmatpush1.bf16.msra.mxu1 %v5925_v12 }
 0x81c   :  { %5927 = vmatprep.subr.bf16.mxu1 %v8859_v27 }
 0x81f   :  { %5929 = vmatpush1.bf16.msra.mxu1 %v5928_v13 }
 0x820   :  { %5930 = vmatprep.subr.bf16.mxu1 %v8859_v27 }
 0x823   :  { %5932 = vmatpush1.bf16.msra.mxu1 %v5931_v20 }
 0x824   :  { %5933 = vmatprep.subr.bf16.mxu1 %v8859_v27 }
 0x827   :  { %5935 = vmatpush1.bf16.msra.mxu1 %v5934_v46  ;;  %v3511_v46 = vld [vmem:[#allocation6 + $0x258] sm:$0xff] }
 0x828   :  { %5936 = vmatprep.subr.bf16.mxu1 %v8859_v27  ;;  %v6033_v36 = vpack.c.bf16 %v3511_v46, %v3510_v29  ;;  %v3517_v29 = vld [vmem:[#allocation6 + $0x288] sm:$0xff] }
 0x82b   :  { %5938 = vmatpush1.bf16.msra.mxu1 %v5937_v5  ;;  %v3242_v5 = vld [vmem:[#allocation6 + $0x98] sm:$0xff] }
 0x82c   :  { %5939 = vmatprep.subr.bf16.mxu1 %v8859_v27  ;;  %v5949_v32 = vpack.c.bf16 %v3242_v5, %v3241_v58  ;;  %v3415_v58 = vld [vmem:[#allocation6 + $0x188] sm:$0xff] }
 0x82f   :  { %5941 = vmatpush1.bf16.msra.mxu1 %v5940_v56  ;;  %v3218_v12 = vpop.f32.mrb[14].mxu0  ;;  %v3513_v56 = vld [vmem:[#allocation6 + $0x268] sm:$0xff] }
 0x830   :  { %v7949_v30 = vadd.f32 %v3218_v12, %v3141_v0  ;;  %v3220_v13 = vpop.f32.mrb[15].mxu0  ;;  %5942 = vmatprep.subr.bf16.mxu1 %v8859_v27  ;;  %v6036_v8 = vpack.c.bf16 %v3513_v56, %v3512_v55  ;;  %v3515_v12 = vld [vmem:[#allocation6 + $0x278] sm:$0xff] }
 0x831   :  { %v3221_v20 = vadd.f32 %v3220_v13, %v3141_v0  ;;  %v3244_v0 = vld [vmem:[#allocation6 + $0xa8] sm:$0xff]  ;;  %v3245_v13 = vld [vmem:[#allocation6 + $0xb0] sm:$0xff]  ;;  %v6039_v23 = vpack.c.bf16 %v3515_v12, %v3514_v42  ;;  %v3519_v55 = vld [vmem:[#allocation6 + $0x298] sm:$0xff] }
 0x832   :  { %v5955_v46 = vpack.c.bf16 %v3246_v22, %v3245_v13  ;;  %v3521_v42 = vld [vmem:[#allocation6 + $0x2a8] sm:$0xff] }
 0x833   :  { %5944 = vmatpush1.bf16.msra.mxu1 %v5943_v11  ;;  %5136 = vmatprep.mubr.msk.f32.mxu0 %vm8891_vm3, %v3221_v20  ;;  %v5952_v11 = vpack.c.bf16 %v3244_v0, %v3243_v28  ;;  %v3417_v28 = vld [vmem:[#allocation6 + $0x198] sm:$0xff]  ;;  %v3419_v13 = vld [vmem:[#allocation6 + $0x1a8] sm:$0xff]  ;;  %vm8923_vm3 = vnez %v8820_v6 }
 0x834   :  { %3409 = vmatmul.mubr.f32.vlgmr.msra.gmra.mrb[16].mxu0 %v7949_v30  ;;  %5945 = vmatprep.subr.bf16.mxu1 %v8859_v27 }
 0x835   :  { %6031 = vmatpush1.bf16.msra.mxu0 %v6030_v50  ;;  %5135 = vmatprep.mubr.msk.f32.mxu1 %vm8909_vm1, %v3221_v20  ;;  %v3516_v50 = vld [vmem:[#allocation6 + $0x280] sm:$0xff]  ;;  %vm8924_vm1 = vmand %vm8922_vm7, %vm8923_vm3  ;;  %vm8936_vm7 = vnez %v8837_v21 }
 0x836   :  { %6032 = vmatprep.subr.bf16.mxu0 %v8859_v27  ;;  %5138 = vmatprep.mubr.msk.f32.mxu0 %vm8910_vm5, %v3221_v20  ;;  %v6042_v5 = vpack.c.bf16 %v3517_v29, %v3516_v50  ;;  %v3523_v50 = vld [vmem:[#allocation6 + $0x2b8] sm:$0xff]  ;;  %vm8925_vm5 = vnez %v8822_v9 }
 0x837   :  { %5947 = vmatpush1.bf16.msra.mxu1 %v5946_v25  ;;  %v3414_v25 = vld [vmem:[#allocation6 + $0x180] sm:$0xff] }
 0x838   :  { %5948 = vmatprep.subr.bf16.mxu1 %v8859_v27  ;;  %v5994_v56 = vpack.c.bf16 %v3415_v58, %v3414_v25  ;;  %v3421_v25 = vld [vmem:[#allocation6 + $0x1b8] sm:$0xff] }
 0x839   :  { %6034 = vmatpush1.bf16.msra.mxu0 %v6033_v36  ;;  %v3518_v36 = vld [vmem:[#allocation6 + $0x290] sm:$0xff] }
 0x83a   :  { %6035 = vmatprep.subr.bf16.mxu0 %v8859_v27  ;;  %v6045_v0 = vpack.c.bf16 %v3519_v55, %v3518_v36  ;;  %v3422_v55 = vld [vmem:[#allocation6 + $0x1c0] sm:$0xff] }
 0x83b   :  { %5950 = vmatpush1.bf16.msra.mxu1 %v5949_v32  ;;  %v3416_v32 = vld [vmem:[#allocation6 + $0x190] sm:$0xff] }
 0x83c   :  { %5951 = vmatprep.subr.bf16.mxu1 %v8859_v27  ;;  %v5997_v12 = vpack.c.bf16 %v3417_v28, %v3416_v32  ;;  %v3526_v28 = vld [vmem:[#allocation6 + $0x2d0] sm:$0xff] }
 0x83d   :  { %6037 = vmatpush1.bf16.msra.mxu0 %v6036_v8  ;;  %v3520_v8 = vld [vmem:[#allocation6 + $0x2a0] sm:$0xff] }
 0x83e   :  { %6038 = vmatprep.subr.bf16.mxu0 %v8859_v27  ;;  %v6048_v22 = vpack.c.bf16 %v3521_v42, %v3520_v8  ;;  %v3424_v42 = vld [vmem:[#allocation6 + $0x1d0] sm:$0xff] }
 0x83f   :  { %5953 = vmatpush1.bf16.msra.mxu1 %v5952_v11  ;;  %v3418_v11 = vld [vmem:[#allocation6 + $0x1a0] sm:$0xff] }
 0x840   :  { %5954 = vmatprep.subr.bf16.mxu1 %v8859_v27  ;;  %v6000_v29 = vpack.c.bf16 %v3419_v13, %v3418_v11  ;;  %v3528_v13 = vld [vmem:[#allocation6 + $0x2e0] sm:$0xff] }
 0x841   :  { %6040 = vmatpush1.bf16.msra.mxu0 %v6039_v23  ;;  %v3522_v23 = vld [vmem:[#allocation6 + $0x2b0] sm:$0xff] }
 0x842   :  { %6041 = vmatprep.subr.bf16.mxu0 %v8859_v27  ;;  %v6051_v58 = vpack.c.bf16 %v3523_v50, %v3522_v23  ;;  %v3426_v50 = vld [vmem:[#allocation6 + $0x1e0] sm:$0xff] }
 0x843   :  { %5956 = vmatpush1.bf16.msra.mxu1 %v5955_v46  ;;  %v3420_v46 = vld [vmem:[#allocation6 + $0x1b0] sm:$0xff] }
 0x844   :  { %5993 = vmatprep.subr.bf16.mxu1 %v8859_v27  ;;  %v6003_v36 = vpack.c.bf16 %v3421_v25, %v3420_v46  ;;  %v3530_v25 = vld [vmem:[#allocation6 + $0x2f0] sm:$0xff] }
 0x845   :  { %6043 = vmatpush1.bf16.msra.mxu0 %v6042_v5  ;;  %v3525_v5 = vld [vmem:[#allocation6 + $0x2c8] sm:$0xff] }
 0x846   :  { %3315 = vmatmul.mubr.f32.vlgmr.msra.gmra.mrb[10].mxu1 %v7949_v30  ;;  %6044 = vmatprep.subr.bf16.mxu0 %v8859_v27 }
 0x847   :  { %5995 = vmatpush1.bf16.msra.mxu1 %v5994_v56  ;;  %5137 = vmatprep.mubr.msk.f32.mxu1 %vm8911_vm6, %v3221_v20  ;;  %v3524_v20 = vld [vmem:[#allocation6 + $0x2c0] sm:$0xff]  ;;  %v3423_v56 = vld [vmem:[#allocation6 + $0x1c8] sm:$0xff]  ;;  %vm8926_vm6 = vnez %v8824_v10  ;;  %v8938_v10 = vsub.s32 1, %v6786_v43 }
 0x848   :  { %5996 = vmatprep.subr.bf16.mxu1 %v8859_v27  ;;  %v6054_v32 = vpack.c.bf16 %v3525_v5, %v3524_v20  ;;  %v6006_v8 = vpack.c.bf16 %v3423_v56, %v3422_v55  ;;  %v3428_v5 = vld [vmem:[#allocation6 + $0x1f0] sm:$0xff] }
 0x849   :  { %6046 = vmatpush1.bf16.msra.mxu0 %v6045_v0  ;;  %v3527_v0 = vld [vmem:[#allocation6 + $0x2d8] sm:$0xff] }
 0x84a   :  { %6047 = vmatprep.subr.bf16.mxu0 %v8859_v27  ;;  %v6057_v11 = vpack.c.bf16 %v3527_v0, %v3526_v28  ;;  %v3431_v28 = vld [vmem:[#allocation6 + $0x208] sm:$0xff] }
 0x84b   :  { %5998 = vmatpush1.bf16.msra.mxu1 %v5997_v12  ;;  %v3425_v12 = vld [vmem:[#allocation6 + $0x1d8] sm:$0xff] }
 0x84c   :  { %5999 = vmatprep.subr.bf16.mxu1 %v8859_v27  ;;  %v6009_v23 = vpack.c.bf16 %v3425_v12, %v3424_v42  ;;  %v3433_v42 = vld [vmem:[#allocation6 + $0x218] sm:$0xff] }
 0x84d   :  { %6049 = vmatpush1.bf16.msra.mxu0 %v6048_v22  ;;  %v3529_v22 = vld [vmem:[#allocation6 + $0x2e8] sm:$0xff] }
 0x84e   :  { %6050 = vmatprep.subr.bf16.mxu0 %v8859_v27  ;;  %v6060_v46 = vpack.c.bf16 %v3529_v22, %v3528_v13  ;;  %v3435_v13 = vld [vmem:[#allocation6 + $0x228] sm:$0xff] }
 0x84f   :  { %6001 = vmatpush1.bf16.msra.mxu1 %v6000_v29  ;;  %v3427_v29 = vld [vmem:[#allocation6 + $0x1e8] sm:$0xff] }
 0x850   :  { %6002 = vmatprep.subr.bf16.mxu1 %v8859_v27  ;;  %v6012_v20 = vpack.c.bf16 %v3427_v29, %v3426_v50  ;;  %v3437_v50 = vld [vmem:[#allocation6 + $0x238] sm:$0xff] }
 0x851   :  { %6052 = vmatpush1.bf16.msra.mxu0 %v6051_v58  ;;  %v3531_v58 = vld [vmem:[#allocation6 + $0x2f8] sm:$0xff] }
 0x852   :  { %6053 = vmatprep.subr.bf16.mxu0 %v8859_v27  ;;  %v6063_v55 = vpack.c.bf16 %v3531_v58, %v3530_v25 }
 0x853   :  { %6004 = vmatpush1.bf16.msra.mxu1 %v6003_v36  ;;  %v3429_v36 = vld [vmem:[#allocation6 + $0x1f8] sm:$0xff] }
 0x854   :  { %6005 = vmatprep.subr.bf16.mxu1 %v8859_v27  ;;  %v6015_v56 = vpack.c.bf16 %v3429_v36, %v3428_v5 }
 0x855   :  { %6055 = vmatpush1.bf16.msra.mxu0 %v6054_v32  ;;  %v3430_v32 = vld [vmem:[#allocation6 + $0x200] sm:$0xff] }
 0x856   :  { %6056 = vmatprep.subr.bf16.mxu0 %v8859_v27  ;;  %v6018_v0 = vpack.c.bf16 %v3431_v28, %v3430_v32 }
 0x857   :  { %6007 = vmatpush1.bf16.msra.mxu1 %v6006_v8  ;;  %v3432_v8 = vld [vmem:[#allocation6 + $0x210] sm:$0xff] }
 0x858   :  { %6008 = vmatprep.subr.bf16.mxu1 %v8859_v27  ;;  %v6021_v12 = vpack.c.bf16 %v3433_v42, %v3432_v8 }
 0x859   :  { %6058 = vmatpush1.bf16.msra.mxu0 %v6057_v11  ;;  %v3434_v11 = vld [vmem:[#allocation6 + $0x220] sm:$0xff] }
 0x85a   :  { %6059 = vmatprep.subr.bf16.mxu0 %v8859_v27  ;;  %v6024_v22 = vpack.c.bf16 %v3435_v13, %v3434_v11 }
 0x85b   :  { %6010 = vmatpush1.bf16.msra.mxu1 %v6009_v23  ;;  %v3436_v23 = vld [vmem:[#allocation6 + $0x230] sm:$0xff] }
 0x85c   :  { %6011 = vmatprep.subr.bf16.mxu1 %v8859_v27  ;;  %v6027_v29 = vpack.c.bf16 %v3437_v50, %v3436_v23 }
 0x85d   :  { %6061 = vmatpush1.bf16.msra.mxu0 %v6060_v46  ;;  %v2832_v46 = vld [vmem:[%s8716_s7] sm:$0x1] }
 0x85e   :  { %6062 = vmatprep.subr.bf16.mxu0 %v8859_v27 }
 0x85f   :  { %6013 = vmatpush1.bf16.msra.mxu1 %v6012_v20 }
 0x860   :  { %6014 = vmatprep.subr.bf16.mxu1 %v8859_v27 }
 0x861   :  { %6064 = vmatpush1.bf16.msra.mxu0 %v6063_v55 }
 0x863   :  { %6016 = vmatpush1.bf16.msra.mxu1 %v6015_v56 }
 0x864   :  { %3597 = vmatmul.mubr.f32.vlgmr.msra.gmra.mrb[18].mxu0 %v7949_v30  ;;  %6017 = vmatprep.subr.bf16.mxu1 %v8859_v27 }
 0x865   :  { %4479 = vmatprep.mubr.f32.mxu0 %v8860_v35 }
 0x867   :  { %6019 = vmatpush1.bf16.msra.mxu1 %v6018_v0 }
 0x868   :  { %6020 = vmatprep.subr.bf16.mxu1 %v8859_v27 }
 0x86b   :  { %6022 = vmatpush1.bf16.msra.mxu1 %v6021_v12 }
 0x86c   :  { %6023 = vmatprep.subr.bf16.mxu1 %v8859_v27 }
 0x86f   :  { %6025 = vmatpush1.bf16.msra.mxu1 %v6024_v22 }
 0x870   :  { %6026 = vmatprep.subr.bf16.mxu1 %v8859_v27 }
 0x873   :  { %6028 = vmatpush1.bf16.msra.mxu1 %v6027_v29 }
 0x876   :  { %3503 = vmatmul.mubr.f32.vlgmr.msra.gmra.mrb[12].mxu1 %v7949_v30 }
 0x877   :  { %4337 = vmatprep.mubr.f32.mxu1 %v8860_v35 }
 0x8e9   :  { %v2902_v25 = vpop.f32.mrb[8].mxu1 }
 0x8ea   :  { %v2903_v58 = vadd.f32 %v2902_v25, %v2832_v46  ;;  %v5524_v20 = vpop.f32.mrb[9].mxu1 }
 0x8ec   :  { %2907 = vst.msk [vmem:[#allocation9] sm:$0x1] %vm8800_vm12, %v2903_v58 }
 0x907   :  { %v3410_v5 = vpop.f32.mrb[16].mxu0 }
 0x908   :  { %v3412_v36 = vpop.f32.mrb[17].mxu0 }
 0x919   :  { %v3316_v55 = vpop.f32.mrb[10].mxu1 }
 0x91a   :  { %v3602_v56 = vmax.f32 %v3316_v55, %v3410_v5  ;;  %v3318_v32 = vpop.f32.mrb[11].mxu1 }
 0x937   :  { %v3598_v28 = vpop.f32.mrb[18].mxu0 }
 0x938   :  { %v3600_v0 = vpop.f32.mrb[19].mxu0 }
 0x949   :  { %v3504_v30 = vpop.f32.mrb[12].mxu1 }
 0x94a   :  { %v3603_v8 = vmax.f32 %v3504_v30, %v3598_v28  ;;  %v3506_v42 = vpop.f32.mrb[13].mxu1 }
 0x94c   :  { %v3604_v12 = vmax.f32 %v3602_v56, %v3603_v8 }
 0x94e   :  { %3605 = vst.msk [vmem:[#allocation4] sm:$0xff] %vm8912_vm8, %v3604_v12  ;;  %vm8927_vm8 = vmand %vm8925_vm5, %vm8926_vm6 }
 0x955   :  { %v5141_v11 = vld.sshfl [vmem:[#allocation4 + $0x3] sm:$0x1 pattern:$0x75316420]  ;;  %v3606_v13 = vld [vmem:[#allocation4] sm:$0x1] }
 0x956   :  { %v3663_v22 = vrot.slane %v5141_v11, %v6789_v44  ;;  %v5139_v23 = vld.sshfl [vmem:[#allocation4 + $0x1] sm:$0x1 pattern:$0x75316420]  ;;  %3607 = vst.msk [vmem:[#allocation5] sm:$0x1] %vm8913_vm13, %v3606_v13  ;;  %vm8928_vm13 = vnez %v8826_v14 }
 0x957   :  { %v3623_v50 = vrot.slane %v5139_v23, %v6789_v44  ;;  %v5140_v29 = vld.sshfl [vmem:[#allocation4 + $0x2] sm:$0x1 pattern:$0x75316420]  ;;  %vm8930_vm2 = vmand %vm8928_vm13, %vm8929_vm9 }
 0x958   :  { %3664 = vrot.lane.b32.xlu0 %v3663_v22, %s6352_s30  ;;  %v5142_v46 = vld.sshfl [vmem:[#allocation4 + $0x4] sm:$0x1 pattern:$0x75316420]  ;;  %v3643_v25 = vrot.slane %v5140_v29, %v6789_v44 }
 0x959   :  { %3624 = vrot.lane.b32.xlu1 %v3623_v50, %s6370_s15  ;;  %v3685_v58 = vrot.slane %v5142_v46, %v6789_v44  ;;  %v5145_v20 = vld.sshfl [vmem:[#allocation4 + $0x7] sm:$0x1 pattern:$0x75316420] }
 0x95a   :  { %v5143_v5 = vld.sshfl [vmem:[#allocation4 + $0x5] sm:$0x1 pattern:$0x75316420]  ;;  %v3745_v45 = vrot.slane %v5145_v20, %v6789_v44 }
 0x95b   :  { %v3705_v36 = vrot.slane %v5143_v5, %v6789_v44  ;;  %v5144_v55 = vld.sshfl [vmem:[#allocation4 + $0x6] sm:$0x1 pattern:$0x75316420] }
 0x95c   :  { %3644 = vrot.lane.b32.xlu0 %v3643_v25, %s8914_s22  ;;  %v3725_v56 = vrot.slane %v5144_v55, %v6789_v44 }
 0x95d   :  { %3686 = vrot.lane.b32.xlu1 %v3685_v58, %s6339_s17 }
 0x960   :  { %3746 = vrot.lane.b32.xlu0 %v3745_v45, %s6347_s24 }
 0x961   :  { %3706 = vrot.lane.b32.xlu1 %v3705_v36, %s6372_s16 }
 0x964   :  { %3726 = vrot.lane.b32.xlu0 %v3725_v56, %s6371_s18 }
 0x9ca   :  { %v3665_v32 = vpop.permute.xlu0 %3664 }
 0x9cb   :  { %v3666_v28 = vrot.slane %v3665_v32, 7  ;;  %v3625_v0 = vpop.permute.xlu1 %3624 }
 0x9cc   :  { %3627 = vst.msk [vmem:[#allocation5] sm:$0x1] %vm8917_vm14, %v3625_v0  ;;  %vm8931_vm14 = vcmask 1014784  }
 0x9cd   :  { %v3667_v8 = vsel %vm8918_vm11, %v3666_v28, %v3665_v32  ;;  %vm8932_vm11 = vnez %v8830_v17 }
 0x9ce   :  { %v3645_v30 = vpop.permute.xlu0 %3644  ;;  %vm8934_vm15 = vmand %vm8932_vm11, %vm8933_vm10 }
 0x9cf   :  { %3647 = vst.msk [vmem:[#allocation5] sm:$0x1] %vm8921_vm0, %v3645_v30  ;;  %v3687_v44 = vpop.permute.xlu1 %3686  ;;  %vm8935_vm0 = vnez %v8835_v19 }
 0x9d0   :  { %3669 = vst.msk [vmem:[#allocation5] sm:$0x3] %vm8924_vm1, %v3667_v8  ;;  %vm8937_vm3 = vmand %vm8935_vm0, %vm8936_vm7  ;;  %vm8940_vm1 = vcmask 261120  }
 0x9d1   :  { %3689 = vst.msk [vmem:[#allocation5 + $0x1] sm:$0x1] %vm8927_vm8, %v3687_v44  ;;  %vm8956_vm5 = vmmov %vm8940_vm1 }
 0x9d2   :  { %v3747_v61 = vpop.permute.xlu0 %3746  ;;  %vm8957_vm6 = vmmov %vm8940_vm1 }
 0x9d3   :  { %v3748_v62 = vrot.slane %v3747_v61, 7  ;;  %v3707_v1 = vpop.permute.xlu1 %3706  ;;  %vm8958_vm8 = vmmov %vm8940_vm1 }
 0x9d4   :  { %3709 = vst.msk [vmem:[#allocation5 + $0x1] sm:$0x1] %vm8930_vm2, %v3707_v1  ;;  %vm8959_vm13 = vmmov %vm8940_vm1 }
 0x9d5   :  { %v3749_v4 = vsel %vm8931_vm14, %v3748_v62, %v3747_v61 }
 0x9d6   :  { %v3727_v2 = vpop.permute.xlu0 %3726 }
 0x9d7   :  { %3729 = vst.msk [vmem:[#allocation5 + $0x1] sm:$0x1] %vm8934_vm15, %v3727_v2 }
 0x9d8   :  { %3751 = vst.msk [vmem:[#allocation5 + $0x1] sm:$0x3] %vm8937_vm3, %v3749_v4 }
 0x9df   :  { %v3752_v6 = vld [vmem:[#allocation5] sm:$0x7] }
 0x9e0   :  { %v8048_v9 = vrot.slane %v3752_v6, %v6956_v34  ;;  %v8052_v14 = vrot.slane %v3752_v6, %v8938_v10  ;;  %v8056_v17 = vrot.slane %v3752_v6, %v8939_v15 }
 0x9e2   :  { %v8059_v18 = vmul.f32 0.0, %v8052_v14  ;;  %v3771_v19 = vmul.f32 0.0, %v8056_v17  ;;  %v3772_v21 = vmul.f32 %v8048_v9, %v6969_v38  ;;  %v3769_v42 = vmul.f32 %v8048_v9, %v6972_v39 }
 0x9e3   :  { %v3775_v12 = vmul.f32 %v8048_v9, %v6975_v40  ;;  %v3778_v11 = vmul.f32 %v8048_v9, %v6990_v47  ;;  %v3781_v23 = vmul.f32 %v8048_v9, %v6993_v48  ;;  %v3784_v50 = vmul.f32 %v8048_v9, %v6996_v49 }
 0x9e4   :  { %v8071_v43 = vsel %vm8940_vm1, %v3771_v19, 0.0  ;;  %v3882_v13 = vadd.f32 %v3772_v21, %v8059_v18  ;;  %v3877_v22 = vadd.f32 %v8059_v18, %v3769_v42  ;;  %v3787_v5 = vmul.f32 %v8048_v9, %v7024_v7 }
 0x9e5   :  { %v3887_v25 = vadd.f32 %v3775_v12, %v8059_v18  ;;  %v3892_v58 = vadd.f32 %v3778_v11, %v8059_v18  ;;  %v3897_v20 = vadd.f32 %v3781_v23, %v8059_v18  ;;  %v3902_v55 = vadd.f32 %v3784_v50, %v8059_v18 }
 0x9e6   :  { %v3884_v29 = vadd.f32 %v3882_v13, %v8071_v43  ;;  %v3879_v46 = vadd.f32 %v8071_v43, %v3877_v22  ;;  %v3790_v56 = vmul.f32 %v8048_v9, %v7032_v24  ;;  %v3793_v32 = vmul.f32 %v8048_v9, %v7049_v41 }
 0x9e7   :  { %v3889_v45 = vadd.f32 %v3887_v25, %v8071_v43  ;;  %v3894_v36 = vadd.f32 %v3892_v58, %v8071_v43  ;;  %v3796_v28 = vmul.f32 %v8048_v9, %v7052_v51  ;;  %v3899_v0 = vadd.f32 %v3897_v20, %v8071_v43 }
 0x9e8   :  { %3885 = vadd.xlane.f32.xlu0 %v3884_v29  ;;  %3880 = vadd.xlane.f32.xlu1 %v3879_v46  ;;  %v3904_v30 = vadd.f32 %v3902_v55, %v8071_v43  ;;  %v3907_v8 = vadd.f32 %v3787_v5, %v8059_v18  ;;  %v3912_v44 = vadd.f32 %v3790_v56, %v8059_v18  ;;  %v8941_v29 = vld [vmem:[#allocation12_spill] sm:$0xff]  ;;  %v8944_v55 = vld [vmem:[#allocation15_spill] sm:$0xff] }
 0x9e9   :  { %v3799_v61 = vmul.f32 %v8048_v9, %v7055_v52  ;;  %v3802_v62 = vmul.f32 %v8048_v9, %v7070_v63  ;;  %v3917_v1 = vadd.f32 %v3793_v32, %v8059_v18  ;;  %v3922_v2 = vadd.f32 %v3796_v28, %v8059_v18 }
 0x9ea   :  { %v3909_v41 = vadd.f32 %v3907_v8, %v8071_v43  ;;  %v3914_v51 = vadd.f32 %v3912_v44, %v8071_v43  ;;  %v3805_v4 = vmul.f32 %v8048_v9, %v7073_v3  ;;  %v3808_v6 = vmul.f32 %v8048_v9, %v7080_v16  ;;  %v8945_v44 = vld [vmem:[#allocation16_spill] sm:$0xff] }
 0x9eb   :  { %v3919_v52 = vadd.f32 %v3917_v1, %v8071_v43  ;;  %v3924_v63 = vadd.f32 %v3922_v2, %v8071_v43  ;;  %v3927_v10 = vadd.f32 %v3799_v61, %v8059_v18  ;;  %v3932_v15 = vadd.f32 %v3802_v62, %v8059_v18  ;;  %v8946_v2 = vld [vmem:[#allocation17_spill] sm:$0xff] }
 0x9ec   :  { %3890 = vadd.xlane.f32.xlu0 %v3889_v45  ;;  %3895 = vadd.xlane.f32.xlu1 %v3894_v36  ;;  %v3811_v19 = vmul.f32 %v8048_v9, %v7099_v37  ;;  %v3814_v21 = vmul.f32 %v8048_v9, %v7107_v59  ;;  %v3937_v42 = vadd.f32 %v3805_v4, %v8059_v18  ;;  %v8128_v37 = vmul.f32 0.0, %v8048_v9  ;;  %v8943_v45 = vld [vmem:[#allocation14_spill] sm:$0xff] }
 0x9ed   :  { %v3929_v3 = vadd.f32 %v3927_v10, %v8071_v43  ;;  %v3934_v16 = vadd.f32 %v3932_v15, %v8071_v43  ;;  %v3942_v12 = vadd.f32 %v3808_v6, %v8059_v18  ;;  %v3818_v11 = vmul.f32 %v8052_v14, %v7124_v31  ;;  %v8942_v31 = vld [vmem:[#allocation13_spill] sm:$0xff]  ;;  %v8947_v6 = vld [vmem:[#allocation18_spill] sm:$0xff] }
 0x9ee   :  { %v3821_v13 = vmul.f32 %v8052_v14, %v7127_v33  ;;  %v3939_v59 = vadd.f32 %v3937_v42, %v8071_v43  ;;  %v3947_v23 = vadd.f32 %v3811_v19, %v8059_v18  ;;  %v3952_v50 = vadd.f32 %v3814_v21, %v8059_v18  ;;  %v8948_v19 = vld [vmem:[#allocation19_spill] sm:$0xff] }
 0x9ef   :  { %v3944_v22 = vadd.f32 %v3942_v12, %v8071_v43  ;;  %v3824_v46 = vmul.f32 %v8052_v14, %v8941_v29  ;;  %v3827_v25 = vmul.f32 %v8052_v14, %v8942_v31  ;;  %v3957_v20 = vadd.f32 %v3818_v11, %v8128_v37 }
 0x9f0   :  { %3900 = vadd.xlane.f32.xlu0 %v3899_v0  ;;  %3905 = vadd.xlane.f32.xlu1 %v3904_v30  ;;  %v3949_v33 = vadd.f32 %v3947_v23, %v8071_v43  ;;  %v3954_v58 = vadd.f32 %v3952_v50, %v8071_v43  ;;  %v3962_v5 = vadd.f32 %v3821_v13, %v8128_v37  ;;  %v8951_v23 = vld [vmem:[#allocation22_spill] sm:$0xff] }
 0x9f1   :  { %v3830_v36 = vmul.f32 %v8052_v14, %v8943_v45  ;;  %v3833_v56 = vmul.f32 %v8052_v14, %v8944_v55  ;;  %v3959_v32 = vadd.f32 %v3957_v20, %v8071_v43  ;;  %v3967_v0 = vadd.f32 %v3824_v46, %v8128_v37 }
 0x9f2   :  { %v3964_v28 = vadd.f32 %v3962_v5, %v8071_v43  ;;  %v3972_v30 = vadd.f32 %v3827_v25, %v8128_v37  ;;  %v3836_v8 = vmul.f32 %v8052_v14, %v7182_v53  ;;  %v3839_v61 = vmul.f32 %v8052_v14, %v8945_v44 }
 0x9f3   :  { %v3969_v62 = vadd.f32 %v3967_v0, %v8071_v43  ;;  %v3982_v1 = vadd.f32 %v3833_v56, %v8128_v37  ;;  %v3842_v4 = vmul.f32 %v8052_v14, %v8946_v2  ;;  %v3848_v21 = vmul.f32 %v8052_v14, %v8948_v19  ;;  %v8953_v0 = vld [vmem:[#allocation24_spill] sm:$0xff] }
 0x9f4   :  { %3910 = vadd.xlane.f32.xlu0 %v3909_v41  ;;  %3915 = vadd.xlane.f32.xlu1 %v3914_v51  ;;  %v3974_v41 = vadd.f32 %v3972_v30, %v8071_v43  ;;  %v3977_v51 = vadd.f32 %v3830_v36, %v8128_v37  ;;  %v3987_v10 = vadd.f32 %v3836_v8, %v8128_v37 }
 0x9f5   :  { %v3992_v15 = vadd.f32 %v3839_v61, %v8128_v37  ;;  %v3997_v11 = vadd.f32 %v3842_v4, %v8128_v37  ;;  %v3857_v50 = vmul.f32 %v8052_v14, %v8951_v23  ;;  %v4007_v31 = vadd.f32 %v3848_v21, %v8128_v37 }
 0x9f6   :  { %v3979_v53 = vadd.f32 %v3977_v51, %v8071_v43  ;;  %v3989_v42 = vadd.f32 %v3987_v10, %v8071_v43  ;;  %v3870_v30 = vmul.f32 %v8056_v17, %v8953_v0  ;;  %v4037_v61 = vadd.f32 %v8128_v37, %v8059_v18  ;;  %v8955_v51 = vld [vmem:[#allocation26_spill] sm:$0xff] }
 0x9f7   :  { %v3994_v12 = vadd.f32 %v3992_v15, %v8071_v43  ;;  %v3999_v29 = vadd.f32 %v3997_v11, %v8071_v43  ;;  %v4009_v20 = vadd.f32 %v4007_v31, %v8071_v43  ;;  %v4022_v36 = vadd.f32 %v3857_v50, %v8128_v37 }
 0x9f8   :  { %3920 = vadd.xlane.f32.xlu0 %v3919_v52  ;;  %3925 = vadd.xlane.f32.xlu1 %v3924_v63  ;;  %v3845_v52 = vmul.f32 %v8052_v14, %v8947_v6  ;;  %v3984_v63 = vadd.f32 %v3982_v1, %v8071_v43  ;;  %v3876_v1 = vmul.f32 %v8056_v17, %v8955_v51  ;;  %v4043_v4 = vsel %vm8957_vm6, %v3870_v30, 0.0  ;;  %v4578_v51 = vld [vmem:[%s8713_s4 + $0x88] sm:$0xff] }
 0x9f9   :  { %v4024_v56 = vadd.f32 %v4022_v36, %v8071_v43 }
 0x9fa   :  { %v4002_v13 = vadd.f32 %v3845_v52, %v8128_v37  ;;  %v4044_v52 = vadd.f32 %v4043_v4, %v4037_v61  ;;  %v4562_v4 = vld [vmem:[%s8713_s4 + $0x8] sm:$0xff] }
 0x9fc   :  { %3930 = vadd.xlane.f32.xlu0 %v3929_v3  ;;  %3935 = vadd.xlane.f32.xlu1 %v3934_v16  ;;  %v8949_v3 = vld [vmem:[#allocation20_spill] sm:$0xff]  ;;  %v4004_v46 = vadd.f32 %v4002_v13, %v8071_v43 }
 0x9fd   :  { %v3851_v16 = vmul.f32 %v8052_v14, %v8949_v3 }
 0x9ff   :  { %v4012_v25 = vadd.f32 %v3851_v16, %v8128_v37 }
 0xa00   :  { %3940 = vadd.xlane.f32.xlu0 %v3939_v59  ;;  %3945 = vadd.xlane.f32.xlu1 %v3944_v22  ;;  %v8950_v59 = vld [vmem:[#allocation21_spill] sm:$0xff] }
 0xa01   :  { %v3854_v22 = vmul.f32 %v8052_v14, %v8950_v59  ;;  %v4014_v5 = vadd.f32 %v4012_v25, %v8071_v43 }
 0xa03   :  { %v4017_v45 = vadd.f32 %v3854_v22, %v8128_v37 }
 0xa04   :  { %3950 = vadd.xlane.f32.xlu0 %v3949_v33  ;;  %3955 = vadd.xlane.f32.xlu1 %v3954_v58  ;;  %v3860_v33 = vmul.f32 %v8052_v14, %v7253_v54  ;;  %v3863_v58 = vmul.f32 %v8052_v14, %v7256_v60 }
 0xa05   :  { %v4019_v55 = vadd.f32 %v4017_v45, %v8071_v43 }
 0xa06   :  { %v4032_v54 = vadd.f32 %v3863_v58, %v8128_v37 }
 0xa08   :  { %3960 = vadd.xlane.f32.xlu0 %v3959_v32  ;;  %3965 = vadd.xlane.f32.xlu1 %v3964_v28  ;;  %v4027_v32 = vadd.f32 %v3860_v33, %v8128_v37  ;;  %v8952_v28 = vld [vmem:[#allocation23_spill] sm:$0xff]  ;;  %v4034_v44 = vadd.f32 %v4032_v54, %v8071_v43 }
 0xa09   :  { %v3867_v60 = vmul.f32 %v8056_v17, %v8952_v28 }
 0xa0a   :  { %v4029_v8 = vadd.f32 %v4027_v32, %v8071_v43  ;;  %v4053_v43 = vsel %vm8959_vm13, %v3876_v1, 0.0 }
 0xa0b   :  { %v4038_v2 = vsel %vm8956_vm5, %v3867_v60, 0.0  ;;  %v4054_v37 = vadd.f32 %v4053_v43, %v4037_v61 }
 0xa0c   :  { %3970 = vadd.xlane.f32.xlu0 %v3969_v62  ;;  %3975 = vadd.xlane.f32.xlu1 %v3974_v41  ;;  %v8954_v62 = vld [vmem:[#allocation25_spill] sm:$0xff]  ;;  %v4039_v6 = vadd.f32 %v4038_v2, %v4037_v61 }
 0xa0d   :  { %v3873_v41 = vmul.f32 %v8056_v17, %v8954_v62  ;;  %v4561_v2 = vld [vmem:[%s8713_s4] sm:$0xff] }
 0xa10   :  { %3980 = vadd.xlane.f32.xlu0 %v3979_v53  ;;  %3985 = vadd.xlane.f32.xlu1 %v3984_v63  ;;  %v4048_v53 = vsel %vm8958_vm8, %v3873_v41, 0.0  ;;  %v4577_v41 = vld [vmem:[%s8713_s4 + $0x80] sm:$0xff] }
 0xa11   :  { %v4049_v18 = vadd.f32 %v4048_v53, %v4037_v61  ;;  %v6175_v1 = vpack.c.bf16 %v4578_v51, %v4577_v41  ;;  %v6177_v53 = vpack.c.bf16 %v4562_v4, %v4561_v2  ;;  %v4576_v51 = vld [vmem:[%s8713_s4 + $0x78] sm:$0xff] }
 0xa12   :  { %v4596_v2 = vld [vmem:[%s8713_s4 + $0x118] sm:$0xff] }
 0xa14   :  { %3990 = vadd.xlane.f32.xlu0 %v3989_v42  ;;  %3995 = vadd.xlane.f32.xlu1 %v3994_v12 }
 0xa18   :  { %4000 = vadd.xlane.f32.xlu0 %v3999_v29  ;;  %4005 = vadd.xlane.f32.xlu1 %v4004_v46 }
 0xa1c   :  { %4010 = vadd.xlane.f32.xlu0 %v4009_v20  ;;  %4015 = vadd.xlane.f32.xlu1 %v4014_v5 }
 0xa20   :  { %4020 = vadd.xlane.f32.xlu0 %v4019_v55  ;;  %4025 = vadd.xlane.f32.xlu1 %v4024_v56 }
 0xa24   :  { %4030 = vadd.xlane.f32.xlu0 %v4029_v8  ;;  %4035 = vadd.xlane.f32.xlu1 %v4034_v44  ;;  %v4591_v44 = vld [vmem:[%s8713_s4 + $0xf0] sm:$0xff] }
 0xa28   :  { %4040 = vadd.xlane.f32.xlu0 %v4039_v6  ;;  %4045 = vadd.xlane.f32.xlu1 %v4044_v52  ;;  %v4579_v6 = vld [vmem:[%s8713_s4 + $0x90] sm:$0xff]  ;;  %v4580_v52 = vld [vmem:[%s8713_s4 + $0x98] sm:$0xff] }
 0xa29   :  { %v6179_v43 = vpack.c.bf16 %v4580_v52, %v4579_v6 }
 0xa2c   :  { %4050 = vadd.xlane.f32.xlu0 %v4049_v18  ;;  %4055 = vadd.xlane.f32.xlu1 %v4054_v37  ;;  %v4563_v18 = vld [vmem:[%s8713_s4 + $0x10] sm:$0xff]  ;;  %v4564_v37 = vld [vmem:[%s8713_s4 + $0x18] sm:$0xff] }
 0xa75   :  { %v8210_v63 = vpop.xlane.xlu0 %3885  ;;  %v8212_v10 = vpop.xlane.xlu1 %3880 }
 0xa76   :  { %vm4060_vm9 = vcmp.gt.f32.partialorder %v8210_v63, %v8048_v9  ;;  %vm4061_vm2 = vcmp.gt.f32.partialorder %v8210_v63, %v8052_v14  ;;  %vm4057_vm14 = vcmp.gt.f32.partialorder %v8212_v10, %v8048_v9  ;;  %vm4058_vm11 = vcmp.gt.f32.partialorder %v8212_v10, %v8052_v14 }
 0xa77   :  { %vm6067_vm10 = vmpackc.low %vm4060_vm9, %vm4057_vm14 }
 0xa78   :  { %vm6065_vm15 = vmpackc.low %vm4061_vm2, %vm4058_vm11 }
 0xa79   :  { %v8222_v15 = vpop.xlane.xlu0 %3890  ;;  %v8224_v19 = vpop.xlane.xlu1 %3895  ;;  %6066 = vmatprep.subr.msk.bf16.mxu1 %vm6065_vm15, %v8894_v57 }
 0xa7a   :  { %vm4063_vm0 = vcmp.gt.f32.partialorder %v8222_v15, %v8048_v9  ;;  %vm4064_vm7 = vcmp.gt.f32.partialorder %v8222_v15, %v8052_v14  ;;  %vm4066_vm3 = vcmp.gt.f32.partialorder %v8224_v19, %v8048_v9  ;;  %6068 = vmatpush1.bf16.msk.msra.mxu1 %vm6067_vm10, %v8894_v57  ;;  %vm4067_vm1 = vcmp.gt.f32.partialorder %v8224_v19, %v8052_v14 }
 0xa7b   :  { %vm6071_vm5 = vmpackc.low %vm4066_vm3, %vm4063_vm0 }
 0xa7c   :  { %vm6069_vm6 = vmpackc.low %vm4067_vm1, %vm4064_vm7 }
 0xa7d   :  { %v8236_v21 = vpop.xlane.xlu0 %3900  ;;  %v8238_v3 = vpop.xlane.xlu1 %3905  ;;  %6070 = vmatprep.subr.msk.bf16.mxu1 %vm6069_vm6, %v8894_v57 }
 0xa7e   :  { %vm4069_vm8 = vcmp.gt.f32.partialorder %v8236_v21, %v8048_v9  ;;  %vm4070_vm13 = vcmp.gt.f32.partialorder %v8236_v21, %v8052_v14  ;;  %vm4072_vm9 = vcmp.gt.f32.partialorder %v8238_v3, %v8048_v9  ;;  %6072 = vmatpush1.bf16.msk.msra.mxu1 %vm6071_vm5, %v8894_v57  ;;  %vm4073_vm2 = vcmp.gt.f32.partialorder %v8238_v3, %v8052_v14 }
 0xa7f   :  { %vm6075_vm14 = vmpackc.low %vm4072_vm9, %vm4069_vm8 }
 0xa80   :  { %vm6073_vm11 = vmpackc.low %vm4073_vm2, %vm4070_vm13 }
 0xa81   :  { %v8250_v16 = vpop.xlane.xlu0 %3910  ;;  %v8252_v42 = vpop.xlane.xlu1 %3915  ;;  %6074 = vmatprep.subr.msk.bf16.mxu1 %vm6073_vm11, %v8894_v57 }
 0xa82   :  { %vm4075_vm10 = vcmp.gt.f32.partialorder %v8250_v16, %v8048_v9  ;;  %vm4076_vm15 = vcmp.gt.f32.partialorder %v8250_v16, %v8052_v14  ;;  %vm4078_vm0 = vcmp.gt.f32.partialorder %v8252_v42, %v8048_v9  ;;  %6076 = vmatpush1.bf16.msk.msra.mxu1 %vm6075_vm14, %v8894_v57  ;;  %vm4079_vm7 = vcmp.gt.f32.partialorder %v8252_v42, %v8052_v14 }
 0xa83   :  { %vm6079_vm3 = vmpackc.low %vm4078_vm0, %vm4075_vm10 }
 0xa84   :  { %vm6077_vm1 = vmpackc.low %vm4079_vm7, %vm4076_vm15 }
 0xa85   :  { %v8264_v12 = vpop.xlane.xlu0 %3920  ;;  %v8266_v11 = vpop.xlane.xlu1 %3925  ;;  %6078 = vmatprep.subr.msk.bf16.mxu1 %vm6077_vm1, %v8894_v57 }
 0xa86   :  { %vm4081_vm5 = vcmp.gt.f32.partialorder %v8264_v12, %v8048_v9  ;;  %vm4082_vm6 = vcmp.gt.f32.partialorder %v8264_v12, %v8052_v14  ;;  %vm4084_vm8 = vcmp.gt.f32.partialorder %v8266_v11, %v8048_v9  ;;  %6080 = vmatpush1.bf16.msk.msra.mxu1 %vm6079_vm3, %v8894_v57  ;;  %vm4085_vm13 = vcmp.gt.f32.partialorder %v8266_v11, %v8052_v14 }
 0xa87   :  { %vm6083_vm9 = vmpackc.low %vm4084_vm8, %vm4081_vm5 }
 0xa88   :  { %vm6081_vm2 = vmpackc.low %vm4085_vm13, %vm4082_vm6 }
 0xa89   :  { %v8278_v13 = vpop.xlane.xlu0 %3930  ;;  %v8280_v59 = vpop.xlane.xlu1 %3935  ;;  %6082 = vmatprep.subr.msk.bf16.mxu1 %vm6081_vm2, %v8894_v57 }
 0xa8a   :  { %vm4087_vm14 = vcmp.gt.f32.partialorder %v8278_v13, %v8048_v9  ;;  %vm4088_vm11 = vcmp.gt.f32.partialorder %v8278_v13, %v8052_v14  ;;  %vm4090_vm10 = vcmp.gt.f32.partialorder %v8280_v59, %v8048_v9  ;;  %6084 = vmatpush1.bf16.msk.msra.mxu1 %vm6083_vm9, %v8894_v57  ;;  %vm4091_vm15 = vcmp.gt.f32.partialorder %v8280_v59, %v8052_v14 }
 0xa8b   :  { %vm6087_vm0 = vmpackc.low %vm4090_vm10, %vm4087_vm14 }
 0xa8c   :  { %vm6085_vm7 = vmpackc.low %vm4091_vm15, %vm4088_vm11 }
 0xa8d   :  { %v8292_v22 = vpop.xlane.xlu0 %3940  ;;  %v8294_v23 = vpop.xlane.xlu1 %3945  ;;  %6086 = vmatprep.subr.msk.bf16.mxu1 %vm6085_vm7, %v8894_v57 }
 0xa8e   :  { %vm4093_vm3 = vcmp.gt.f32.partialorder %v8292_v22, %v8048_v9  ;;  %vm4094_vm1 = vcmp.gt.f32.partialorder %v8292_v22, %v8052_v14  ;;  %vm4096_vm5 = vcmp.gt.f32.partialorder %v8294_v23, %v8048_v9  ;;  %6088 = vmatpush1.bf16.msk.msra.mxu1 %vm6087_vm0, %v8894_v57  ;;  %vm4097_vm6 = vcmp.gt.f32.partialorder %v8294_v23, %v8052_v14 }
 0xa8f   :  { %vm6091_vm8 = vmpackc.low %vm4096_vm5, %vm4093_vm3  ;;  %vm4062_vm5 = vcmp.gt.f32.partialorder %v8210_v63, %v8056_v17  ;;  %v4581_v63 = vld [vmem:[%s8713_s4 + $0xa0] sm:$0xff] }
 0xa90   :  { %vm6089_vm13 = vmpackc.low %vm4097_vm6, %vm4094_vm1  ;;  %vm4059_vm6 = vcmp.gt.f32.partialorder %v8212_v10, %v8056_v17  ;;  %v4582_v10 = vld [vmem:[%s8713_s4 + $0xa8] sm:$0xff] }
 0xa91   :  { %v8306_v50 = vpop.xlane.xlu0 %3950  ;;  %v8308_v29 = vpop.xlane.xlu1 %3955  ;;  %6090 = vmatprep.subr.msk.bf16.mxu1 %vm6089_vm13, %v8894_v57 }
 0xa92   :  { %vm4099_vm9 = vcmp.gt.f32.partialorder %v8306_v50, %v8048_v9  ;;  %vm4100_vm2 = vcmp.gt.f32.partialorder %v8306_v50, %v8052_v14  ;;  %vm4102_vm14 = vcmp.gt.f32.partialorder %v8308_v29, %v8048_v9  ;;  %6092 = vmatpush1.bf16.msk.msra.mxu1 %vm6091_vm8, %v8894_v57  ;;  %vm4103_vm11 = vcmp.gt.f32.partialorder %v8308_v29, %v8052_v14 }
 0xa93   :  { %vm6095_vm10 = vmpackc.low %vm4102_vm14, %vm4099_vm9  ;;  %vm4065_vm14 = vcmp.gt.f32.partialorder %v8222_v15, %v8056_v17  ;;  %v6181_v15 = vpack.c.bf16 %v4564_v37, %v4563_v18 }
 0xa94   :  { %vm6093_vm15 = vmpackc.low %vm4103_vm11, %vm4100_vm2 }
 0xa95   :  { %v3961_v46 = vpop.xlane.xlu0 %3960  ;;  %v3966_v31 = vpop.xlane.xlu1 %3965  ;;  %6094 = vmatprep.subr.msk.bf16.mxu1 %vm6093_vm15, %v8894_v57  ;;  %vm6139_vm15 = vmpackc.low %vm4062_vm5, %vm4059_vm6 }
 0xa96   :  { %vm4105_vm0 = vcmp.gt.f32.partialorder %v3961_v46, %v8048_v9  ;;  %vm4106_vm7 = vcmp.gt.f32.partialorder %v3961_v46, %v8052_v14  ;;  %vm4107_vm3 = vcmp.gt.f32.partialorder %v3961_v46, %v8056_v17  ;;  %vm4108_vm1 = vcmp.gt.f32.partialorder %v3966_v31, %v8048_v9  ;;  %6096 = vmatpush1.bf16.msk.msra.mxu1 %vm6095_vm10, %v8894_v57  ;;  %v4569_v46 = vld [vmem:[%s8713_s4 + $0x40] sm:$0xff] }
 0xa97   :  { %vm4109_vm8 = vcmp.gt.f32.partialorder %v3966_v31, %v8052_v14  ;;  %vm4110_vm13 = vcmp.gt.f32.partialorder %v3966_v31, %v8056_v17  ;;  %vm6099_vm9 = vmpackc.low %vm4108_vm1, %vm4105_vm0  ;;  %v4570_v31 = vld [vmem:[%s8713_s4 + $0x48] sm:$0xff] }
 0xa98   :  { %vm6097_vm2 = vmpackc.low %vm4109_vm8, %vm4106_vm7  ;;  %vm4068_vm7 = vcmp.gt.f32.partialorder %v8224_v19, %v8056_v17  ;;  %vm4071_vm8 = vcmp.gt.f32.partialorder %v8236_v21, %v8056_v17  ;;  %v6183_v19 = vpack.c.bf16 %v4582_v10, %v4581_v63  ;;  %v4565_v21 = vld [vmem:[%s8713_s4 + $0x20] sm:$0xff] }
 0xa99   :  { %6098 = vmatprep.subr.msk.bf16.mxu1 %vm6097_vm2, %v8894_v57  ;;  %vm6137_vm11 = vmpackc.low %vm4110_vm13, %vm4107_vm3  ;;  %v3971_v25 = vpop.xlane.xlu0 %3970  ;;  %v3976_v33 = vpop.xlane.xlu1 %3975 }
 0xa9a   :  { %6138 = vmatprep.subr.msk.bf16.mxu0 %vm6137_vm11, %v8894_v57  ;;  %vm4111_vm12 = vcmp.gt.f32.partialorder %v3971_v25, %v8048_v9  ;;  %vm4112_vm10 = vcmp.gt.f32.partialorder %v3971_v25, %v8052_v14  ;;  %vm4113_vm4 = vcmp.gt.f32.partialorder %v3971_v25, %v8056_v17  ;;  %vm4114_vm0 = vcmp.gt.f32.partialorder %v3976_v33, %v8048_v9  ;;  %v4587_v25 = vld [vmem:[%s8713_s4 + $0xd0] sm:$0xff] }
 0xa9b   :  { %6100 = vmatpush1.bf16.msk.msra.mxu1 %vm6099_vm9, %v8894_v57  ;;  %6140 = vmatpush3.bf16.msk.msra.mxu0 %vm6139_vm15, %v8894_v57  ;;  %vm4115_vm3 = vcmp.gt.f32.partialorder %v3976_v33, %v8052_v14  ;;  %vm4116_vm1 = vcmp.gt.f32.partialorder %v3976_v33, %v8056_v17  ;;  %vm6103_vm5 = vmpackc.low %vm4114_vm0, %vm4111_vm12  ;;  %v4588_v33 = vld [vmem:[%s8713_s4 + $0xd8] sm:$0xff] }
 0xa9c   :  { %vm6101_vm6 = vmpackc.low %vm4115_vm3, %vm4112_vm10  ;;  %vm4074_vm10 = vcmp.gt.f32.partialorder %v8238_v3, %v8056_v17  ;;  %vm4077_vm3 = vcmp.gt.f32.partialorder %v8250_v16, %v8056_v17  ;;  %v4566_v3 = vld [vmem:[%s8713_s4 + $0x28] sm:$0xff]  ;;  %v4583_v16 = vld [vmem:[%s8713_s4 + $0xb0] sm:$0xff] }
 0xa9d   :  { %6102 = vmatprep.subr.msk.bf16.mxu1 %vm6101_vm6, %v8894_v57  ;;  %vm6141_vm13 = vmpackc.low %vm4116_vm1, %vm4113_vm4  ;;  %v3981_v58 = vpop.xlane.xlu0 %3980  ;;  %v3986_v20 = vpop.xlane.xlu1 %3985 }
 0xa9e   :  { %vm6143_vm9 = vmpackc.low %vm4068_vm7, %vm4065_vm14  ;;  %6142 = vmatprep.subr.msk.bf16.mxu0 %vm6141_vm13, %v8894_v57  ;;  %vm4117_vm2 = vcmp.gt.f32.partialorder %v3981_v58, %v8048_v9  ;;  %vm4118_vm11 = vcmp.gt.f32.partialorder %v3981_v58, %v8052_v14  ;;  %vm4119_vm12 = vcmp.gt.f32.partialorder %v3981_v58, %v8056_v17  ;;  %vm4120_vm15 = vcmp.gt.f32.partialorder %v3986_v20, %v8048_v9 }
 0xa9f   :  { %6104 = vmatpush1.bf16.msk.msra.mxu1 %vm6103_vm5, %v8894_v57  ;;  %6144 = vmatpush3.bf16.msk.msra.mxu0 %vm6143_vm9, %v8894_v57  ;;  %vm4121_vm4 = vcmp.gt.f32.partialorder %v3986_v20, %v8052_v14  ;;  %vm4122_vm14 = vcmp.gt.f32.partialorder %v3986_v20, %v8056_v17  ;;  %vm6107_vm0 = vmpackc.low %vm4120_vm15, %vm4117_vm2  ;;  %v6193_v58 = vpack.c.bf16 %v4570_v31, %v4569_v46 }
 0xaa0   :  { %vm6105_vm7 = vmpackc.low %vm4121_vm4, %vm4118_vm11  ;;  %vm4080_vm11 = vcmp.gt.f32.partialorder %v8252_v42, %v8056_v17  ;;  %vm4083_vm4 = vcmp.gt.f32.partialorder %v8264_v12, %v8056_v17  ;;  %v4584_v42 = vld [vmem:[%s8713_s4 + $0xb8] sm:$0xff]  ;;  %v6185_v12 = vpack.c.bf16 %v4566_v3, %v4565_v21  ;;  %v6195_v20 = vpack.c.bf16 %v4588_v33, %v4587_v25  ;;  %v4866_v33 = vld [vmem:[%s8715_s6 + $0x8] sm:$0xff] }
 0xaa1   :  { %6106 = vmatprep.subr.msk.bf16.mxu1 %vm6105_vm7, %v8894_v57  ;;  %vm6145_vm1 = vmpackc.low %vm4122_vm14, %vm4119_vm12  ;;  %v3991_v5 = vpop.xlane.xlu0 %3990  ;;  %v3996_v45 = vpop.xlane.xlu1 %3995 }
 0xaa2   :  { %vm6147_vm5 = vmpackc.low %vm4074_vm10, %vm4071_vm8  ;;  %6146 = vmatprep.subr.msk.bf16.mxu0 %vm6145_vm1, %v8894_v57  ;;  %vm4123_vm6 = vcmp.gt.f32.partialorder %v3991_v5, %v8048_v9  ;;  %vm4124_vm13 = vcmp.gt.f32.partialorder %v3991_v5, %v8052_v14  ;;  %vm4125_vm9 = vcmp.gt.f32.partialorder %v3991_v5, %v8056_v17  ;;  %vm4126_vm2 = vcmp.gt.f32.partialorder %v3996_v45, %v8048_v9  ;;  %v4571_v5 = vld [vmem:[%s8713_s4 + $0x50] sm:$0xff] }
 0xaa3   :  { %6108 = vmatpush1.bf16.msk.msra.mxu1 %vm6107_vm0, %v8894_v57  ;;  %6148 = vmatpush3.bf16.msk.msra.mxu0 %vm6147_vm5, %v8894_v57  ;;  %vm4127_vm12 = vcmp.gt.f32.partialorder %v3996_v45, %v8052_v14  ;;  %vm4128_vm8 = vcmp.gt.f32.partialorder %v3996_v45, %v8056_v17  ;;  %vm6111_vm15 = vmpackc.low %vm4126_vm2, %vm4123_vm6  ;;  %v4572_v45 = vld [vmem:[%s8713_s4 + $0x58] sm:$0xff] }
 0xaa4   :  { %vm6109_vm10 = vmpackc.low %vm4127_vm12, %vm4124_vm13  ;;  %vm4086_vm13 = vcmp.gt.f32.partialorder %v8266_v11, %v8056_v17  ;;  %vm4089_vm12 = vcmp.gt.f32.partialorder %v8278_v13, %v8056_v17  ;;  %v6187_v11 = vpack.c.bf16 %v4584_v42, %v4583_v16  ;;  %v4567_v13 = vld [vmem:[%s8713_s4 + $0x30] sm:$0xff]  ;;  %v4597_v16 = vld [vmem:[%s8714_s5] sm:$0x1] }
 0xaa5   :  { %6110 = vmatprep.subr.msk.bf16.mxu1 %vm6109_vm10, %v8894_v57  ;;  %vm6149_vm14 = vmpackc.low %vm4128_vm8, %vm4125_vm9  ;;  %v4001_v36 = vpop.xlane.xlu0 %4000  ;;  %v4006_v55 = vpop.xlane.xlu1 %4005 }
 0xaa6   :  { %vm6151_vm0 = vmpackc.low %vm4080_vm11, %vm4077_vm3  ;;  %6150 = vmatprep.subr.msk.bf16.mxu0 %vm6149_vm14, %v8894_v57  ;;  %vm4129_vm7 = vcmp.gt.f32.partialorder %v4001_v36, %v8048_v9  ;;  %vm4130_vm1 = vcmp.gt.f32.partialorder %v4001_v36, %v8052_v14  ;;  %vm4131_vm5 = vcmp.gt.f32.partialorder %v4001_v36, %v8056_v17  ;;  %vm4132_vm6 = vcmp.gt.f32.partialorder %v4006_v55, %v8048_v9  ;;  %v4589_v36 = vld [vmem:[%s8713_s4 + $0xe0] sm:$0xff] }
 0xaa7   :  { %6112 = vmatpush1.bf16.msk.msra.mxu1 %vm6111_vm15, %v8894_v57  ;;  %6152 = vmatpush3.bf16.msk.msra.mxu0 %vm6151_vm0, %v8894_v57  ;;  %vm4133_vm9 = vcmp.gt.f32.partialorder %v4006_v55, %v8052_v14  ;;  %vm4134_vm3 = vcmp.gt.f32.partialorder %v4006_v55, %v8056_v17  ;;  %vm6115_vm2 = vmpackc.low %vm4132_vm6, %vm4129_vm7  ;;  %v4590_v55 = vld [vmem:[%s8713_s4 + $0xe8] sm:$0xff] }
 0xaa8   :  { %vm6113_vm11 = vmpackc.low %vm4133_vm9, %vm4130_vm1  ;;  %vm4092_vm1 = vcmp.gt.f32.partialorder %v8280_v59, %v8056_v17  ;;  %vm4095_vm9 = vcmp.gt.f32.partialorder %v8292_v22, %v8056_v17  ;;  %v4568_v59 = vld [vmem:[%s8713_s4 + $0x38] sm:$0xff]  ;;  %v4585_v22 = vld [vmem:[%s8713_s4 + $0xc0] sm:$0xff] }
 0xaa9   :  { %6114 = vmatprep.subr.msk.bf16.mxu1 %vm6113_vm11, %v8894_v57  ;;  %vm6153_vm8 = vmpackc.low %vm4134_vm3, %vm4131_vm5  ;;  %v4011_v56 = vpop.xlane.xlu0 %4010  ;;  %v4016_v32 = vpop.xlane.xlu1 %4015 }
 0xaaa   :  { %vm6155_vm15 = vmpackc.low %vm4086_vm13, %vm4083_vm4  ;;  %6154 = vmatprep.subr.msk.bf16.mxu0 %vm6153_vm8, %v8894_v57  ;;  %vm4135_vm10 = vcmp.gt.f32.partialorder %v4011_v56, %v8048_v9  ;;  %vm4136_vm14 = vcmp.gt.f32.partialorder %v4011_v56, %v8052_v14  ;;  %vm4137_vm0 = vcmp.gt.f32.partialorder %v4011_v56, %v8056_v17  ;;  %vm4138_vm7 = vcmp.gt.f32.partialorder %v4016_v32, %v8048_v9 }
 0xaab   :  { %6116 = vmatpush1.bf16.msk.msra.mxu1 %vm6115_vm2, %v8894_v57  ;;  %6156 = vmatpush3.bf16.msk.msra.mxu0 %vm6155_vm15, %v8894_v57  ;;  %vm4139_vm5 = vcmp.gt.f32.partialorder %v4016_v32, %v8052_v14  ;;  %vm4140_vm4 = vcmp.gt.f32.partialorder %v4016_v32, %v8056_v17  ;;  %vm6119_vm6 = vmpackc.low %vm4138_vm7, %vm4135_vm10  ;;  %v6197_v56 = vpack.c.bf16 %v4572_v45, %v4571_v5  ;;  %v4869_v5 = vld [vmem:[%s8715_s6 + $0x20] sm:$0xff]  ;;  %v4870_v45 = vld [vmem:[%s8715_s6 + $0x28] sm:$0xff] }
 0xaac   :  { %vm6117_vm13 = vmpackc.low %vm4139_vm5, %vm4136_vm14  ;;  %vm4098_vm14 = vcmp.gt.f32.partialorder %v8294_v23, %v8056_v17  ;;  %vm4101_vm5 = vcmp.gt.f32.partialorder %v8306_v50, %v8056_v17  ;;  %v4586_v23 = vld [vmem:[%s8713_s4 + $0xc8] sm:$0xff]  ;;  %v6189_v50 = vpack.c.bf16 %v4568_v59, %v4567_v13  ;;  %v6199_v32 = vpack.c.bf16 %v4590_v55, %v4589_v36 }
 0xaad   :  { %6118 = vmatprep.subr.msk.bf16.mxu1 %vm6117_vm13, %v8894_v57  ;;  %vm6157_vm3 = vmpackc.low %vm4140_vm4, %vm4137_vm0  ;;  %v4021_v54 = vpop.xlane.xlu0 %4020  ;;  %v4026_v28 = vpop.xlane.xlu1 %4025  ;;  %v6232_v36 = vpack.c.bf16 %v4870_v45, %v4869_v5 }
 0xaae   :  { %vm6159_vm2 = vmpackc.low %vm4092_vm1, %vm4089_vm12  ;;  %6158 = vmatprep.subr.msk.bf16.mxu0 %vm6157_vm3, %v8894_v57  ;;  %vm4141_vm11 = vcmp.gt.f32.partialorder %v4021_v54, %v8048_v9  ;;  %vm4142_vm8 = vcmp.gt.f32.partialorder %v4021_v54, %v8052_v14  ;;  %vm4143_vm15 = vcmp.gt.f32.partialorder %v4021_v54, %v8056_v17  ;;  %vm4144_vm10 = vcmp.gt.f32.partialorder %v4026_v28, %v8048_v9  ;;  %v4573_v54 = vld [vmem:[%s8713_s4 + $0x60] sm:$0xff] }
 0xaaf   :  { %6120 = vmatpush1.bf16.msk.msra.mxu1 %vm6119_vm6, %v8894_v57  ;;  %6160 = vmatpush3.bf16.msk.msra.mxu0 %vm6159_vm2, %v8894_v57  ;;  %vm4145_vm0 = vcmp.gt.f32.partialorder %v4026_v28, %v8052_v14  ;;  %vm4146_vm12 = vcmp.gt.f32.partialorder %v4026_v28, %v8056_v17  ;;  %vm6123_vm7 = vmpackc.low %vm4144_vm10, %vm4141_vm11  ;;  %v4574_v28 = vld [vmem:[%s8713_s4 + $0x68] sm:$0xff] }
 0xab0   :  { %vm6121_vm1 = vmpackc.low %vm4145_vm0, %vm4142_vm8  ;;  %vm4104_vm8 = vcmp.gt.f32.partialorder %v8308_v29, %v8056_v17  ;;  %v6191_v29 = vpack.c.bf16 %v4586_v23, %v4585_v22 }
 0xab1   :  { %6122 = vmatprep.subr.msk.bf16.mxu1 %vm6121_vm1, %v8894_v57  ;;  %vm6161_vm4 = vmpackc.low %vm4146_vm12, %vm4143_vm15  ;;  %v4031_v60 = vpop.xlane.xlu0 %4030  ;;  %v4036_v0 = vpop.xlane.xlu1 %4035 }
 0xab2   :  { %vm6163_vm6 = vmpackc.low %vm4098_vm14, %vm4095_vm9  ;;  %6162 = vmatprep.subr.msk.bf16.mxu0 %vm6161_vm4, %v8894_v57  ;;  %vm4147_vm13 = vcmp.gt.f32.partialorder %v4031_v60, %v8048_v9  ;;  %vm4148_vm3 = vcmp.gt.f32.partialorder %v4031_v60, %v8052_v14  ;;  %vm4149_vm2 = vcmp.gt.f32.partialorder %v4031_v60, %v8056_v17  ;;  %vm4150_vm11 = vcmp.gt.f32.partialorder %v4036_v0, %v8048_v9 }
 0xab3   :  { %6124 = vmatpush1.bf16.msk.msra.mxu1 %vm6123_vm7, %v8894_v57  ;;  %6164 = vmatpush3.bf16.msk.msra.mxu0 %vm6163_vm6, %v8894_v57  ;;  %vm4151_vm15 = vcmp.gt.f32.partialorder %v4036_v0, %v8052_v14  ;;  %vm4152_vm9 = vcmp.gt.f32.partialorder %v4036_v0, %v8056_v17  ;;  %vm6127_vm10 = vmpackc.low %vm4150_vm11, %vm4147_vm13  ;;  %v6201_v60 = vpack.c.bf16 %v4574_v28, %v4573_v54  ;;  %v4593_v0 = vld [vmem:[%s8713_s4 + $0x100] sm:$0xff] }
 0xab4   :  { %vm6125_vm14 = vmpackc.low %vm4151_vm15, %vm4148_vm3 }
 0xab5   :  { %6126 = vmatprep.subr.msk.bf16.mxu1 %vm6125_vm14, %v8894_v57  ;;  %vm6165_vm0 = vmpackc.low %vm4152_vm9, %vm4149_vm2  ;;  %v4041_v30 = vpop.xlane.xlu0 %4040  ;;  %v4046_v8 = vpop.xlane.xlu1 %4045 }
 0xab6   :  { %vm6167_vm12 = vmpackc.low %vm4104_vm8, %vm4101_vm5  ;;  %6166 = vmatprep.subr.msk.bf16.mxu0 %vm6165_vm0, %v8894_v57  ;;  %vm4153_vm7 = vcmp.gt.f32.partialorder %v4041_v30, %v8048_v9  ;;  %vm4154_vm1 = vcmp.gt.f32.partialorder %v4041_v30, %v8052_v14  ;;  %vm4155_vm4 = vcmp.gt.f32.partialorder %v4041_v30, %v8056_v17  ;;  %vm4156_vm6 = vcmp.gt.f32.partialorder %v4046_v8, %v8048_v9  ;;  %v4594_v30 = vld [vmem:[%s8713_s4 + $0x108] sm:$0xff] }
 0xab7   :  { %6128 = vmatpush1.bf16.msk.msra.mxu1 %vm6127_vm10, %v8894_v57  ;;  %6168 = vmatpush3.bf16.msk.msra.mxu0 %vm6167_vm12, %v8894_v57  ;;  %vm4157_vm13 = vcmp.gt.f32.partialorder %v4046_v8, %v8052_v14  ;;  %vm4158_vm3 = vcmp.gt.f32.partialorder %v4046_v8, %v8056_v17  ;;  %vm6131_vm2 = vmpackc.low %vm4156_vm6, %vm4153_vm7  ;;  %vm8963_vm6 = vcmask 261120   ;;  %v6208_v8 = vpack.c.bf16 %v4594_v30, %v4593_v0 }
 0xab8   :  { %vm8461_vm5 = vmpackc.low %vm4158_vm3, %vm4155_vm4  ;;  %6169 = vmatprep.subr.bf16.mxu0 %v8859_v27 }
 0xab9   :  { %vm6129_vm11 = vmpackc.low %vm4157_vm13, %vm4154_vm1  ;;  %v4051_v61 = vpop.xlane.xlu0 %4050  ;;  %v4056_v62 = vpop.xlane.xlu1 %4055  ;;  %vm8962_vm1 = vmmov 0  }
 0xaba   :  { %4338 = vmatmul.mubr.f32.vlgmr.msra.gmra.mrb[14].mxu1 %v8860_v35  ;;  %6130 = vmatprep.subr.msk.bf16.mxu1 %vm6129_vm11, %v8894_v57  ;;  %vm4159_vm8 = vcmp.gt.f32.partialorder %v4051_v61, %v8048_v9  ;;  %vm4160_vm15 = vcmp.gt.f32.partialorder %v4051_v61, %v8052_v14  ;;  %vm4161_vm9 = vcmp.gt.f32.partialorder %v4051_v61, %v8056_v17  ;;  %vm8964_vm13 = vmmov %vm8963_vm6  ;;  %v4592_v61 = vld [vmem:[%s8713_s4 + $0xf8] sm:$0xff] }
 0xabb   :  { %6132 = vmatpush1.bf16.msk.msra.mxu1 %vm6131_vm2, %v8894_v57  ;;  %4480 = vmatmul.mubr.f32.vlgmr.msra.gmra.mrb[20].mxu0 %v8860_v35  ;;  %vm4162_vm10 = vcmp.gt.f32.partialorder %v4056_v62, %v8048_v9  ;;  %vm4163_vm14 = vcmp.gt.f32.partialorder %v4056_v62, %v8052_v14  ;;  %vm4164_vm0 = vcmp.gt.f32.partialorder %v4056_v62, %v8056_v17  ;;  %v4575_v62 = vld [vmem:[%s8713_s4 + $0x70] sm:$0xff]  ;;  %vm8965_vm11 = vmmov %vm8963_vm6 }
 0xabc   :  { %6171 = vmatpush3.bf16.msk.msra.mxu0 %vm8461_vm5, %v8894_v57  ;;  %vm6135_vm12 = vmpackc.low %vm4162_vm10, %vm4159_vm8  ;;  %4408 = vmatprep.mubr.f32.mxu1 %v8843_v26  ;;  %v6203_v41 = vpack.c.bf16 %v4592_v61, %v4591_v44  ;;  %v6205_v4 = vpack.c.bf16 %v4576_v51, %v4575_v62  ;;  %vm8966_vm8 = vcmask 523264   ;;  %v4872_v44 = vld [vmem:[%s8715_s6 + $0x38] sm:$0xff] }
 0xabd   :  { %vm6173_vm7 = vmpackc.low %vm4164_vm0, %vm4161_vm9  ;;  %6172 = vmatprep.subr.bf16.mxu0 %v8859_v27  ;;  %5533 = vmatprep.mubr.msk.f32.mxu0 %vm8962_vm1, %v8843_v26 }
 0xabe   :  { %vm6133_vm4 = vmpackc.low %vm4163_vm14, %vm4160_vm15 }
 0xabf   :  { %6134 = vmatprep.subr.msk.bf16.mxu1 %vm6133_vm4, %v8894_v57  ;;  %vm8967_vm15 = vmmov %vm8966_vm8 }
 0xac0   :  { %6136 = vmatpush1.bf16.msk.msra.mxu1 %vm6135_vm12, %v8894_v57  ;;  %6174 = vmatpush3.bf16.msk.msra.mxu0 %vm6173_vm7, %v8894_v57  ;;  %vm8968_vm9 = vmmov %vm8966_vm8 }
 0xac1   :  { %6176 = vmatprep.subr.bf16.mxu0 %v6175_v1  ;;  %6207 = vmatprep.subr.bf16.mxu1 %v8859_v27  ;;  %v4595_v1 = vld [vmem:[%s8713_s4 + $0x110] sm:$0xff]  ;;  %vm8969_vm10 = vmmov %vm8966_vm8 }
 0xac2   :  { %v6211_v6 = vpack.c.bf16 %v4596_v2, %v4595_v1  ;;  %vm8970_vm14 = vmmov %vm8966_vm8 }
 0xac3   :  { %5218 = vmatmul.mubr.msk.f32.vlgmr.msra.gmra.mrb[14].mxu1 %vm8963_vm6, %v8860_v35  ;;  %5534 = vmatmul.mubr.msk.f32.vlgmr.msra.gmra.mrb[22].mxu0 %vm8964_vm13, %v8860_v35  ;;  %vm8971_vm0 = vmmov %vm8966_vm8 }
 0xac4   :  { %6178 = vmatpush3.bf16.msra.mxu0 %v6177_v53  ;;  %5544 = vmatprep.mubr.msk.f32.mxu1 %vm8962_vm1, %v8843_v26  ;;  %vm8972_vm12 = vmmov %vm8971_vm0 }
 0xac5   :  { %6180 = vmatprep.subr.bf16.mxu0 %v6179_v43  ;;  %6209 = vmatpush3.bf16.msra.mxu1 %v6208_v8  ;;  %vm8973_vm7 = vmmov %vm8971_vm0  ;;  %v4871_v8 = vld [vmem:[%s8715_s6 + $0x30] sm:$0xff] }
 0xac6   :  { %6210 = vmatprep.subr.bf16.mxu1 %v8859_v27  ;;  %v6235_v61 = vpack.c.bf16 %v4872_v44, %v4871_v8 }
 0xac8   :  { %6182 = vmatpush3.bf16.msra.mxu0 %v6181_v15 }
 0xac9   :  { %6184 = vmatprep.subr.bf16.mxu0 %v6183_v19  ;;  %6212 = vmatpush3.bf16.msra.mxu1 %v6211_v6 }
 0xaca   :  { %6225 = vmatprep.subr.bf16.mxu1 %v8859_v27 }
 0xacc   :  { %6186 = vmatpush3.bf16.msra.mxu0 %v6185_v12 }
 0xacd   :  { %6188 = vmatprep.subr.bf16.mxu0 %v6187_v11 }
 0xad0   :  { %6190 = vmatpush3.bf16.msra.mxu0 %v6189_v50 }
 0xad1   :  { %6192 = vmatprep.subr.bf16.mxu0 %v6191_v29 }
 0xad4   :  { %6194 = vmatpush3.bf16.msra.mxu0 %v6193_v58  ;;  %v4868_v58 = vld [vmem:[%s8715_s6 + $0x18] sm:$0xff] }
 0xad5   :  { %6196 = vmatprep.subr.bf16.mxu0 %v6195_v20 }
 0xad8   :  { %6198 = vmatpush3.bf16.msra.mxu0 %v6197_v56 }
 0xad9   :  { %6200 = vmatprep.subr.bf16.mxu0 %v6199_v32 }
 0xadc   :  { %6202 = vmatpush3.bf16.msra.mxu0 %v6201_v60 }
 0xadd   :  { %6204 = vmatprep.subr.bf16.mxu0 %v6203_v41 }
 0xae0   :  { %6206 = vmatpush3.bf16.msra.mxu0 %v6205_v4 }
 0xae1   :  { %6213 = vmatprep.subr.bf16.mxu0 %v8859_v27 }
 0xb8e   :  { %v5399_v52 = vpop.f32.mrb[20].mxu0 }
 0xb8f   :  { %v5400_v53 = vpop.f32.mrb[21].mxu0 }
 0xb90   :  { %v5401_v43 = vadd.f32 %v5400_v53, %v5399_v52 }
 0xb96   :  { %v4410_v18 = vpop.f32.mrb[14].mxu1  ;;  %v4551_v37 = vpop.f32.mrb[22].mxu0 }
 0xb97   :  { %v4552_v63 = vadd.f32 %v5401_v43, %v4551_v37  ;;  %v4412_v10 = vpop.f32.mrb[15].mxu1  ;;  %v5535_v15 = vpop.f32.mrb[23].mxu0  ;;  %vm4555_vm2 = vcmp.lt.f32.partialorder %v4410_v18, 48.0 }
 0xb98   :  { %vm4556_vm3 = vcmp.lt.f32.partialorder %v4412_v10, 48.0 }
 0xb99   :  { %vm4557_vm5 = vcmp.lt.f32.partialorder %v4552_v63, 48.0  ;;  %5256 = vmatprep.mubr.msk.f32.mxu0 %vm4556_vm3, %v8052_v14 }
 0xb9a   :  { %v4560_v19 = vsel %vm4557_vm5, %v8056_v17, 0.0  ;;  %5257 = vmatmul.mubr.msk.f32.vlgmr.msra.gmra.mrb[24].mxu0 %vm4555_vm2, %v8048_v9 }
 0xb9b   :  { %5545 = vmatmul.mubr.msk.f32.vlgmr.msra.gmra.mrb[16].mxu1 %vm8965_vm11, %v4560_v19  ;;  %5563 = vmatprep.mubr.msk.f32.mxu0 %vm8962_vm1, %v8843_v26 }
 0xb9c   :  { %5582 = vmatprep.mubr.msk.f32.mxu1 %vm8962_vm1, %v8843_v26 }
 0xc6d   :  { %v5439_v21 = vpop.f32.mrb[24].mxu0 }
 0xc6e   :  { %v5440_v3 = vpop.f32.mrb[25].mxu0  ;;  %v4737_v42 = vpop.f32.mrb[16].mxu1 }
 0xc6f   :  { %v5441_v14 = vadd.f32 %v5440_v3, %v5439_v21  ;;  %v5546_v12 = vpop.f32.mrb[17].mxu1 }
 0xc71   :  { %v4668_v17 = vadd.f32 %v5441_v14, %v4597_v16 }
 0xc73   :  { %v8617_v11 = vadd.f32 %v4737_v42, %v4668_v17 }
 0xc75   :  { %v8621_v9 = vrot.slane %v8617_v11, %v6956_v34 }
 0xc77   :  { %v4746_v13 = vmul.f32 %v8621_v9, %v6969_v38  ;;  %v4745_v26 = vmul.f32 %v8621_v9, %v6972_v39  ;;  %v4748_v23 = vmul.f32 %v8621_v9, %v6990_v47  ;;  %v4747_v50 = vmul.f32 %v8621_v9, %v6975_v40 }
 0xc78   :  { %v4750_v38 = vmul.f32 %v8621_v9, %v6996_v49  ;;  %v4749_v39 = vmul.f32 %v8621_v9, %v6993_v48  ;;  %v4752_v40 = vmul.f32 %v8621_v9, %v7032_v24  ;;  %v4751_v31 = vmul.f32 %v8621_v9, %v7024_v7  ;;  %v4865_v48 = vld [vmem:[%s8715_s6] sm:$0xff]  ;;  %v4867_v7 = vld [vmem:[%s8715_s6 + $0x10] sm:$0xff]  ;;  %s6308_s6 = scalar_lea.vmem %s4955_s2, 32 }
 0xc79   :  { %v4756_v59 = vsel %vm8966_vm8, %v4746_v13, 0.0  ;;  %v4753_v22 = vsel %vm8967_vm15, %v4745_v26, 0.0  ;;  %v4762_v34 = vsel %vm8968_vm9, %v4748_v23, 0.0  ;;  %v4759_v29 = vsel %vm8969_vm10, %v4747_v50, 0.0  ;;  %p6309_p8 = scmp.ne.s32.totalorder %s4955_s2, %s6308_s6  ;;  %p6314_p10 = scmp.lt.s32.totalorder %s6308_s6, %s6308_s6 }
 0xc7a   :  { %4757 = vadd.xlane.f32.xlu1 %v4756_v59  ;;  %4754 = vadd.xlane.f32.xlu0 %v4753_v22  ;;  %v4768_v46 = vsel %vm8970_vm14, %v4750_v38, 0.0  ;;  %v4765_v47 = vsel %vm8971_vm0, %v4749_v39, 0.0  ;;  %v4774_v25 = vsel %vm8972_vm12, %v4752_v40, 0.0  ;;  %v4771_v49 = vsel %vm8973_vm7, %v4751_v31, 0.0  ;;  %vm8974_vm14 = vmmov %vm8971_vm0 }
 0xc7b   :  { %v6226_v24 = vpack.c.bf16 %v4866_v33, %v4865_v48  ;;  %v6229_v20 = vpack.c.bf16 %v4868_v58, %v4867_v7  ;;  %vm8975_vm12 = vmmov %vm8973_vm7  ;;  %vm8976_vm7 = vcmask 73728   ;;  %p6315_p11 = por %p6314_p10, %p6313_p9 }
 0xc7d   :  { %6227 = vmatpush3.bf16.msra.mxu1 %v6226_v24  ;;  %p6316_p12 = pnand %p6315_p11, %p6309_p8 }
 0xc7e   :  { %4763 = vadd.xlane.f32.xlu1 %v4762_v34  ;;  %4760 = vadd.xlane.f32.xlu0 %v4759_v29 }
 0xc7f   :  { %6228 = vmatprep.subr.bf16.mxu1 %v8859_v27 }
 0xc81   :  { %6230 = vmatpush3.bf16.msra.mxu1 %v6229_v20 }
 0xc82   :  { %4769 = vadd.xlane.f32.xlu1 %v4768_v46  ;;  %4766 = vadd.xlane.f32.xlu0 %v4765_v47 }
 0xc83   :  { %6231 = vmatprep.subr.bf16.mxu1 %v8859_v27 }
 0xc85   :  { %6233 = vmatpush3.bf16.msra.mxu1 %v6232_v36 }
 0xc86   :  { %4775 = vadd.xlane.f32.xlu1 %v4774_v25  ;;  %4772 = vadd.xlane.f32.xlu0 %v4771_v49 }
 0xc87   :  { %6234 = vmatprep.subr.bf16.mxu1 %v8859_v27 }
 0xc89   :  { %6236 = vmatpush3.bf16.msra.mxu1 %v6235_v61 }
 0xd07   :  { %v4758_v55 = vpop.xlane.xlu1 %4757  ;;  %v4755_v56 = vpop.xlane.xlu0 %4754 }
 0xd08   :  { %vm4778_vm1 = vcmp.gt.f32.partialorder %v4758_v55, %v8621_v9  ;;  %vm4777_vm4 = vcmp.gt.f32.partialorder %v4755_v56, %v8621_v9 }
 0xd09   :  { %vm6214_vm6 = vmpackc.low %vm4778_vm1, %vm4777_vm4 }
 0xd0a   :  { %6215 = vmatpush3.bf16.msk.msra.mxu0 %vm6214_vm6, %v8894_v57 }
 0xd0b   :  { %v4764_v32 = vpop.xlane.xlu1 %4763  ;;  %v4761_v54 = vpop.xlane.xlu0 %4760  ;;  %6216 = vmatprep.subr.bf16.mxu0 %v8859_v27 }
 0xd0c   :  { %vm4780_vm13 = vcmp.gt.f32.partialorder %v4764_v32, %v8621_v9  ;;  %vm4779_vm3 = vcmp.gt.f32.partialorder %v4761_v54, %v8621_v9 }
 0xd0d   :  { %vm6217_vm2 = vmpackc.low %vm4780_vm13, %vm4779_vm3 }
 0xd0e   :  { %6218 = vmatpush3.bf16.msk.msra.mxu0 %vm6217_vm2, %v8894_v57 }
 0xd0f   :  { %v4770_v28 = vpop.xlane.xlu1 %4769  ;;  %v4767_v60 = vpop.xlane.xlu0 %4766  ;;  %6219 = vmatprep.subr.bf16.mxu0 %v8859_v27 }
 0xd10   :  { %vm4782_vm5 = vcmp.gt.f32.partialorder %v4770_v28, %v8621_v9  ;;  %vm4781_vm11 = vcmp.gt.f32.partialorder %v4767_v60, %v8621_v9 }
 0xd11   :  { %vm6220_vm8 = vmpackc.low %vm4782_vm5, %vm4781_vm11 }
 0xd12   :  { %6221 = vmatpush3.bf16.msk.msra.mxu0 %vm6220_vm8, %v8894_v57 }
 0xd13   :  { %v4776_v0 = vpop.xlane.xlu1 %4775  ;;  %v4773_v30 = vpop.xlane.xlu0 %4772  ;;  %6222 = vmatprep.subr.bf16.mxu0 %v8859_v27 }
 0xd14   :  { %vm4784_vm15 = vcmp.gt.f32.partialorder %v4776_v0, %v8621_v9  ;;  %vm4783_vm9 = vcmp.gt.f32.partialorder %v4773_v30, %v8621_v9 }
 0xd15   :  { %vm6223_vm10 = vmpackc.low %vm4784_vm15, %vm4783_vm9 }
 0xd16   :  { %6224 = vmatpush3.bf16.msk.msra.mxu0 %vm6223_vm10, %v8894_v57 }
 0xd19   :  { %5564 = vmatmul.mubr.msk.f32.vlgmr.msra.gmra.mrb[26].mxu0 %vm8974_vm14, %v8860_v35  ;;  %v4873_v35 = vld [vmem:[%s8716_s7] sm:$0x1] }
 0xdec   :  { %v4859_v27 = vpop.f32.mrb[26].mxu0 }
 0xded   :  { %vm4863_vm0 = vcmp.lt.f32.partialorder %v4859_v27, 12.0  ;;  %v5565_v62 = vpop.f32.mrb[27].mxu0 }
 0xdee   :  { %v4864_v41 = vsel %vm4863_vm0, %v8617_v11, 0.0 }
 0xdef   :  { %5583 = vmatmul.mubr.msk.f32.vlgmr.msra.gmra.mrb[18].mxu1 %vm8975_vm12, %v4864_v41 }
 0xec2   :  { %v4943_v57 = vpop.f32.mrb[18].mxu1 }
 0xec3   :  { %v4944_v51 = vadd.f32 %v4943_v57, %v4873_v35  ;;  %v5584_v1 = vpop.f32.mrb[19].mxu1 }
 0xec5   :  { %4947 = vst.msk [vmem:[#allocation9 + $0x1] sm:$0x1] %vm8976_vm7, %v4944_v51 }
 0xec6   :  { %6319 = shalt.err (!%p6316_p12)
}
 0xec7   :  { %s6320_s28 = scalar_lea.hbm %s8717_s8, 32 }
 0xec8   :  { %p6321_p13 = scmp.ne.s32.totalorder %s8717_s8, %s6320_s28  ;;  %p6324_p0 = scmp.lt.u32.totalorder %s6320_s28, %s8717_s8 }
 0xeca   :  { %p6326_p1 = pnand %p6324_p0, %p6321_p13 }
 0xecc   :  { %6329 = shalt.err (!%p6326_p1)
}
 0xecd   :  { %4957 = dma.vmem_to_hbm [thread:$0]  %s4955_s2, 32, %s8717_s8, [#allocation8]  }
 0xece   :  { %6332 = dma.done.wait [#allocation8], 32  }
 0xecf   :  { %6333 = vsyncadd [#allocation8], 4294967264 }
 0xed0   :  { %4961 = vsyncpa [#allocation7], 1 }
 0xed1   :  { %4962 = vsyncpa [#allocation8], 1 }

</bundles_post_ra>
